<compile_context>
chip_gen: v7x
topology: tpu7x:2x2x1
jax: 0.10.0
libtpu: 0.0.40
codegen_flags: <defaults>
</compile_context>

<pallas_src>
import math
import jax
import jax.numpy as jnp
from jax.experimental import pallas as pl
from jax.experimental.pallas import tpu as pltpu

# ---------------- problem sizes ---------------------------------------------
B, T, S, D, H, F = 2, 8, 8, 32, 4, 64     # batch, tgt len, src len, d_model, heads, d_ff
DK = D // H
EPS = 1e-6
SCALE = 1.0 / math.sqrt(DK)

# ---------------- parameter-slab layout (rows x 128 lanes, f32) -------------
QK_W_ROW = 0      # rows   0: 32  per-head Q/K weights, 16 bands of 8 lanes
WVO_ROW = 32      # rows  32: 96  per-head (wv_h @ wo_h), 32:64 self / 64:96 cross
FF_ROW = 96       # rows  96:128  ff_w1 in lanes 0:64, ff_w2.T in lanes 64:128
QK_B_ROW = 128    # row 128       per-head Q/K biases, 16 bands of 8 lanes
BVO_ROW = 129     # rows 129,130  per-head (bv_h @ wo_h), self / cross, 4x32 lanes
VEC_ROW = 131     # rows 131-133  bo/ln/ff bias vectors, 32-lane bands
P_ROWS = 136      # padded to a multiple of 8 sublanes


# ---------------- in-kernel math helpers -------------------------------------
def _recip(x):
    # EUP approx reciprocal + one Newton step -> ~f32 accuracy, off the VPU.
    r = pl.reciprocal(x, approx=True)
    return r * (2.0 - x * r)


def _layer_norm(x, a, b):
    # Annotated-Transformer LayerNorm: unbiased std (ddof=1), (std + eps)
    mean = jnp.mean(x, axis=-1, keepdims=True)
    var = jnp.sum((x - mean) ** 2, axis=-1, keepdims=True) * (1.0 / (x.shape[-1] - 1))
    std = jnp.sqrt(var)
    return a * (x - mean) * _recip(std + EPS) + b


def _softmax(s):
    m = jnp.max(s, axis=-1, keepdims=True)
    e = jnp.exp(s - m)
    return e * _recip(jnp.sum(e, axis=-1, keepdims=True))


def _attention(p_ref, a, q_in, kv_in, neg):
    """One multi-head attention (without the trailing Wo bias).

    a     : 0 = self-attention params, 1 = cross-attention params
    q_in  : (R, D)   layer-normed queries (all batch rows stacked)
    kv_in : (Rk, D)  keys/values source (x or memory), all batch rows stacked
    neg   : (R, Rk)  precomputed additive mask (0 / -1e9, block-diag over batch)
    """
    acc = None
    for h in range(H):
        jq = a * 8 + 0 * 4 + h            # lane band of this head's Q weight
        jk = a * 8 + 1 * 4 + h            # lane band of this head's K weight
        wq = p_ref[QK_W_ROW:QK_W_ROW + D, 8 * jq:8 * jq + 8]       # (D, DK) pre-scaled
        bq = p_ref[QK_B_ROW:QK_B_ROW + 1, 8 * jq:8 * jq + 8]       # (1, DK) pre-scaled
        wk = p_ref[QK_W_ROW:QK_W_ROW + D, 8 * jk:8 * jk + 8]
        bk = p_ref[QK_B_ROW:QK_B_ROW + 1, 8 * jk:8 * jk + 8]
        wvo = p_ref[WVO_ROW + 32 * a:WVO_ROW + 32 * a + D, 32 * h:32 * h + 32]  # (D, D)
        bvo = p_ref[BVO_ROW + a:BVO_ROW + a + 1, 32 * h:32 * h + 32]            # (1, D)

        q = jnp.dot(q_in, wq, preferred_element_type=jnp.float32) + bq     # (R, DK)
        k = jnp.dot(kv_in, wk, preferred_element_type=jnp.float32) + bk    # (Rk, DK)
        s = jnp.einsum("td,sd->ts", q, k,
                       preferred_element_type=jnp.float32) + neg           # (R, Rk)
        p = _softmax(s)                                 # dropout(p) == p (eval mode)
        vo = jnp.dot(kv_in, wvo, preferred_element_type=jnp.float32) + bvo  # (Rk, D)
        c = jnp.dot(p, vo, preferred_element_type=jnp.float32)              # (R, D)
        acc = c if acc is None else acc + c
    return acc


# ---------------- the Pallas kernel -------------------------------------------
def decoder_layer_kernel(x_ref, mem_ref, ntgt_ref, nsrc_ref, p_ref, out_ref):
    x = x_ref[...]                        # (B*T, D)
    mem = mem_ref[...]                    # (B*S, D)
    neg_t = ntgt_ref[...]                 # (B*T, B*T) additive mask
    neg_s = nsrc_ref[...]                 # (B*T, B*S) additive mask

    def vec32(r, c):                      # (1, 32) slice from the vector rows
        return p_ref[VEC_ROW + r:VEC_ROW + r + 1, 32 * c:32 * (c + 1)]

    sa_bo, ca_bo, ff_b2, ln0_a = vec32(0, 0), vec32(0, 1), vec32(0, 2), vec32(0, 3)
    ln0_b, ln1_a, ln1_b, ln2_a = vec32(1, 0), vec32(1, 1), vec32(1, 2), vec32(1, 3)
    ln2_b = vec32(2, 0)
    ff_b1 = p_ref[VEC_ROW + 2:VEC_ROW + 3, 32:32 + F]                 # (1, F)
    w1 = p_ref[FF_ROW:FF_ROW + D, 0:F]                                # (D, F)
    w2t = p_ref[FF_ROW:FF_ROW + D, F:2 * F]                           # (D, F) == ff_w2.T

    # ---- sublayer 0: self-attention ------------------------------------------
    xn = _layer_norm(x, ln0_a, ln0_b)
    x = x + _attention(p_ref, 0, xn, xn, neg_t) + sa_bo

    # ---- sublayer 1: source (cross) attention ---------------------------------
    xn = _layer_norm(x, ln1_a, ln1_b)
    x = x + _attention(p_ref, 1, xn, mem, neg_s) + ca_bo

    # ---- sublayer 2: position-wise feed forward --------------------------------
    xn = _layer_norm(x, ln2_a, ln2_b)
    h1 = jnp.maximum(
        jnp.dot(xn, w1, preferred_element_type=jnp.float32) + ff_b1, 0.0)
    ff = jnp.einsum("rf,df->rd", h1, w2t,
                    preferred_element_type=jnp.float32) + ff_b2
    out_ref[...] = x + ff


# ---------------- wrapper -------------------------------------------------------
def decoder_layer(x, memory, src_mask, tgt_mask, param_slab):
    b, t, d = x.shape
    s = memory.shape[1]
    assert (d, t, s) == (D, T, S) and b == B

    # Additive f32 masks with the batch block-diagonal folded in (built once per
    # sequence in the wrapper; reused by every layer of a decoder stack).
    same_b = jnp.arange(b)[:, None] == jnp.arange(b)[None, :]                  # (B, B)
    allow_t = same_b[:, None, :, None] & (tgt_mask[:, :, None, :] != 0)        # (B,T,B,T)
    neg_t = jnp.where(allow_t, 0.0, -1e9).astype(jnp.float32).reshape(b * t, b * t)
    allow_s = same_b[:, None, :, None] & (src_mask[:, :1, None, :] != 0)       # (B,1,B,S)
    neg_s = jnp.where(jnp.broadcast_to(allow_s, (b, t, b, s)),
                      0.0, -1e9).astype(jnp.float32).reshape(b * t, b * s)

    x2 = x.reshape(b * t, d)
    m2 = memory.reshape(b * s, d)

    grid_spec = pltpu.PrefetchScalarGridSpec(
        num_scalar_prefetch=0,
        grid=(1,),                                   # whole problem in one step
        in_specs=[
            pl.BlockSpec((b * t, d), lambda i: (0, 0)),
            pl.BlockSpec((b * s, d), lambda i: (0, 0)),
            pl.BlockSpec((b * t, b * t), lambda i: (0, 0)),
            pl.BlockSpec((b * t, b * s), lambda i: (0, 0)),
            pl.BlockSpec(param_slab.shape, lambda i: (0, 0)),
        ],
        out_specs=pl.BlockSpec((b * t, d), lambda i: (0, 0)),
    )

    out = pl.pallas_call(
        decoder_layer_kernel,
        out_shape=jax.ShapeDtypeStruct((b * t, d), jnp.float32),
        grid_spec=grid_spec,
        compiler_params=pltpu.CompilerParams(dimension_semantics=("arbitrary",)),
    )(x2, m2, neg_t, neg_s, param_slab)
    return out.reshape(b, t, d)


# ---------------- parameter packing (host side, once) ---------------------------
def pack_params(p):
    slab = jnp.zeros((P_ROWS, 128), jnp.float32)

    # per-head Q / K weights + biases (Q pre-scaled by 1/sqrt(d_k))
    for a, pre in enumerate(("sa", "ca")):
        for w, nm in enumerate(("q", "k")):
            W = p[f"{pre}_w{nm}"]
            bias = p[f"{pre}_b{nm}"]
            if nm == "q":
                W = W * SCALE
                bias = bias * SCALE
            for h in range(H):
                j = a * 8 + w * 4 + h
                slab = slab.at[QK_W_ROW:QK_W_ROW + D, 8 * j:8 * j + 8].set(
                    W[:, 8 * h:8 * h + 8])
                slab = slab.at[QK_B_ROW, 8 * j:8 * j + 8].set(bias[0, 8 * h:8 * h + 8])

    # per-head fused V * Wo  (wvo_h = wv_h @ wo_h, bvo_h = bv_h @ wo_h)
    for a, pre in enumerate(("sa", "ca")):
        wv, bv, wo = p[f"{pre}_wv"], p[f"{pre}_bv"], p[f"{pre}_wo"]
        for h in range(H):
            sl = slice(8 * h, 8 * h + 8)
            slab = slab.at[WVO_ROW + 32 * a:WVO_ROW + 32 * a + D,
                           32 * h:32 * h + 32].set(wv[:, sl] @ wo[sl, :])
            slab = slab.at[BVO_ROW + a, 32 * h:32 * h + 32].set((bv[:, sl] @ wo[sl, :])[0])

    # FFN (w2 stored transposed so both matrices share one lane-dense row block)
    slab = slab.at[FF_ROW:FF_ROW + D, 0:F].set(p["ff_w1"])
    slab = slab.at[FF_ROW:FF_ROW + D, F:2 * F].set(p["ff_w2"].T)

    # small vectors, 32-lane bands
    def vec(r, c, v):
        return slab.at[VEC_ROW + r, 32 * c:32 * (c + 1)].set(v.reshape(-1))

    slab = vec(0, 0, p["sa_bo"]); slab = vec(0, 1, p["ca_bo"])
    slab = vec(0, 2, p["ff_b2"]); slab = vec(0, 3, p["ln0_a"])
    slab = vec(1, 0, p["ln0_b"]); slab = vec(1, 1, p["ln1_a"])
    slab = vec(1, 2, p["ln1_b"]); slab = vec(1, 3, p["ln2_a"])
    slab = vec(2, 0, p["ln2_b"])
    slab = slab.at[VEC_ROW + 2, 32:32 + F].set(p["ff_b1"].reshape(-1))
    return slab


# ---------------- pure-JAX reference (correctness check) -------------------------
def reference(x, memory, src_mask, tgt_mask, p):
    def ln(xx, a, b):
        mean = jnp.mean(xx, -1, keepdims=True)
        var = jnp.sum((xx - mean) ** 2, -1, keepdims=True) / (xx.shape[-1] - 1)
        return a * (xx - mean) / (jnp.sqrt(var) + EPS) + b

    def mha(qi, kvi, mask, wq, bq, wk, bk, wv, bv, wo, bo):
        q = qi @ wq + bq
        k = kvi @ wk + bk
        v = kvi @ wv + bv
        out = None
        for h in range(H):
            sl = slice(h * DK, (h + 1) * DK)
            sc = (q[:, sl] @ k[:, sl].T) / math.sqrt(DK)
            sc = jnp.where(mask == 0, -1e9, sc)
            prob = jax.nn.softmax(sc, axis=-1)
            c = (prob @ v[:, sl]) @ wo[sl, :]
            out = c if out is None else out + c
        return out + bo

    outs = []
    for b in range(x.shape[0]):
        xb, mb = x[b], memory[b]
        tm, sm = tgt_mask[b], src_mask[b]
        xn = ln(xb, p["ln0_a"], p["ln0_b"])
        xb = xb + mha(xn, xn, tm, p["sa_wq"], p["sa_bq"], p["sa_wk"], p["sa_bk"],
                      p["sa_wv"], p["sa_bv"], p["sa_wo"], p["sa_bo"])
        xn = ln(xb, p["ln1_a"], p["ln1_b"])
        xb = xb + mha(xn, mb, sm, p["ca_wq"], p["ca_bq"], p["ca_wk"], p["ca_bk"],
                      p["ca_wv"], p["ca_bv"], p["ca_wo"], p["ca_bo"])
        xn = ln(xb, p["ln2_a"], p["ln2_b"])
        xb = xb + (jnp.maximum(xn @ p["ff_w1"] + p["ff_b1"], 0.0) @ p["ff_w2"]
                   + p["ff_b2"])
        outs.append(xb)
    return jnp.stack(outs, 0)


# ---------------- main ------------------------------------------------------------
if __name__ == "__main__":
    keys = jax.random.split(jax.random.PRNGKey(0), 32)
    ki = iter(keys)

    def rnd(shape, scale=0.1):
        return (scale * jax.random.normal(next(ki), shape)).astype(jnp.float32)

    raw = dict(
        sa_wq=rnd((D, D)), sa_bq=rnd((1, D)), sa_wk=rnd((D, D)), sa_bk=rnd((1, D)),
        sa_wv=rnd((D, D)), sa_bv=rnd((1, D)), sa_wo=rnd((D, D)), sa_bo=rnd((1, D)),
        ca_wq=rnd((D, D)), ca_bq=rnd((1, D)), ca_wk=rnd((D, D)), ca_bk=rnd((1, D)),
        ca_wv=rnd((D, D)), ca_bv=rnd((1, D)), ca_wo=rnd((D, D)), ca_bo=rnd((1, D)),
        ff_w1=rnd((D, F)), ff_b1=rnd((1, F)), ff_w2=rnd((F, D)), ff_b2=rnd((1, D)),
        ln0_a=jnp.ones((1, D), jnp.float32), ln0_b=jnp.zeros((1, D), jnp.float32),
        ln1_a=jnp.ones((1, D), jnp.float32), ln1_b=jnp.zeros((1, D), jnp.float32),
        ln2_a=jnp.ones((1, D), jnp.float32), ln2_b=jnp.zeros((1, D), jnp.float32),
    )
    param_slab = pack_params(raw)

    x = rnd((B, T, D), scale=1.0)
    memory = rnd((B, S, D), scale=1.0)
    # causal target mask (B, T, T)
    tgt_mask = jnp.broadcast_to(
        jnp.tril(jnp.ones((T, T), jnp.int32)), (B, T, T)).astype(jnp.int32)
    # source mask (B, 1, S): batch 1 has last two source positions padded out
    src_mask = jnp.ones((B, 1, S), jnp.int32)
    src_mask = src_mask.at[1, 0, S - 2:].set(0)

    out = decoder_layer(x, memory, src_mask, tgt_mask, param_slab)
    out = jax.block_until_ready(out)

    ref = reference(x, memory, src_mask, tgt_mask, raw)
    assert out.shape == (B, T, D)
    assert jnp.allclose(out, ref, atol=1e-4, rtol=1e-4), (
        float(jnp.max(jnp.abs(out - ref))))

    # TODO(synk): dropout inside SublayerConnection / attention / FFN is
    #             treated as identity (eval mode); no RNG dropout implemented.
    print("KERNEL_OK")
</pallas_src>

<mosaic_0001>
module attributes {stable_mosaic.version = 11 : i64} {
  func.func @decoder_layer_kernel(%arg0: i32, %arg1: memref<16x32xf32, #tpu.memory_space<vmem>>, %arg2: memref<16x32xf32, #tpu.memory_space<vmem>>, %arg3: memref<16x16xf32, #tpu.memory_space<vmem>>, %arg4: memref<16x16xf32, #tpu.memory_space<vmem>>, %arg5: memref<136x128xf32, #tpu.memory_space<vmem>>, %arg6: memref<16x32xf32, #tpu.memory_space<vmem>>) attributes {dimension_semantics = [#tpu.dimension_semantics<arbitrary>], iteration_bounds = array<i64: 1>, scalar_prefetch = 0 : i64, scratch_operands = 0 : i64, tpu.core_type = #tpu.core_type<tc>, window_params = [{pipeline_mode = #tpu.pipeline_mode<synchronous>, transform_indices = @transform_0, window_bounds = array<i64: 16, 32>}, {pipeline_mode = #tpu.pipeline_mode<synchronous>, transform_indices = @transform_1, window_bounds = array<i64: 16, 32>}, {pipeline_mode = #tpu.pipeline_mode<synchronous>, transform_indices = @transform_2, window_bounds = array<i64: 16, 16>}, {pipeline_mode = #tpu.pipeline_mode<synchronous>, transform_indices = @transform_3, window_bounds = array<i64: 16, 16>}, {pipeline_mode = #tpu.pipeline_mode<synchronous>, transform_indices = @transform_4, window_bounds = array<i64: 136, 128>}, {pipeline_mode = #tpu.pipeline_mode<synchronous>, transform_indices = @transform_5, window_bounds = array<i64: 16, 32>}]} {
    %c0 = arith.constant 0 : index
    %c0_0 = arith.constant 0 : index
    %0 = vector.load %arg1[%c0, %c0_0] : memref<16x32xf32, #tpu.memory_space<vmem>>, vector<16x32xf32>
    %c0_1 = arith.constant 0 : index
    %c0_2 = arith.constant 0 : index
    %1 = vector.load %arg2[%c0_1, %c0_2] : memref<16x32xf32, #tpu.memory_space<vmem>>, vector<16x32xf32>
    %c0_3 = arith.constant 0 : index
    %c0_4 = arith.constant 0 : index
    %2 = vector.load %arg3[%c0_3, %c0_4] : memref<16x16xf32, #tpu.memory_space<vmem>>, vector<16x16xf32>
    %c0_5 = arith.constant 0 : index
    %c0_6 = arith.constant 0 : index
    %3 = vector.load %arg4[%c0_5, %c0_6] : memref<16x16xf32, #tpu.memory_space<vmem>>, vector<16x16xf32>
    %c131 = arith.constant 131 : index
    %c0_7 = arith.constant 0 : index
    %4 = vector.load %arg5[%c131, %c0_7] : memref<136x128xf32, #tpu.memory_space<vmem>>, vector<1x32xf32>
    %c131_8 = arith.constant 131 : index
    %c32 = arith.constant 32 : index
    %5 = vector.load %arg5[%c131_8, %c32] : memref<136x128xf32, #tpu.memory_space<vmem>>, vector<1x32xf32>
    %c131_9 = arith.constant 131 : index
    %c64 = arith.constant 64 : index
    %6 = vector.load %arg5[%c131_9, %c64] : memref<136x128xf32, #tpu.memory_space<vmem>>, vector<1x32xf32>
    %c131_10 = arith.constant 131 : index
    %c96 = arith.constant 96 : index
    %7 = vector.load %arg5[%c131_10, %c96] : memref<136x128xf32, #tpu.memory_space<vmem>>, vector<1x32xf32>
    %c132 = arith.constant 132 : index
    %c0_11 = arith.constant 0 : index
    %8 = vector.load %arg5[%c132, %c0_11] : memref<136x128xf32, #tpu.memory_space<vmem>>, vector<1x32xf32>
    %c132_12 = arith.constant 132 : index
    %c32_13 = arith.constant 32 : index
    %9 = vector.load %arg5[%c132_12, %c32_13] : memref<136x128xf32, #tpu.memory_space<vmem>>, vector<1x32xf32>
    %c132_14 = arith.constant 132 : index
    %c64_15 = arith.constant 64 : index
    %10 = vector.load %arg5[%c132_14, %c64_15] : memref<136x128xf32, #tpu.memory_space<vmem>>, vector<1x32xf32>
    %c132_16 = arith.constant 132 : index
    %c96_17 = arith.constant 96 : index
    %11 = vector.load %arg5[%c132_16, %c96_17] : memref<136x128xf32, #tpu.memory_space<vmem>>, vector<1x32xf32>
    %c133 = arith.constant 133 : index
    %c0_18 = arith.constant 0 : index
    %12 = vector.load %arg5[%c133, %c0_18] : memref<136x128xf32, #tpu.memory_space<vmem>>, vector<1x32xf32>
    %c133_19 = arith.constant 133 : index
    %c32_20 = arith.constant 32 : index
    %13 = vector.load %arg5[%c133_19, %c32_20] : memref<136x128xf32, #tpu.memory_space<vmem>>, vector<1x64xf32>
    %c96_21 = arith.constant 96 : index
    %c0_22 = arith.constant 0 : index
    %14 = vector.load %arg5[%c96_21, %c0_22] : memref<136x128xf32, #tpu.memory_space<vmem>>, vector<32x64xf32>
    %c96_23 = arith.constant 96 : index
    %c64_24 = arith.constant 64 : index
    %15 = vector.load %arg5[%c96_23, %c64_24] : memref<136x128xf32, #tpu.memory_space<vmem>>, vector<32x64xf32>
    %cst = arith.constant dense<0.000000e+00> : vector<16xf32>
    %16 = vector.multi_reduction <add>, %0, %cst [1] : vector<16x32xf32> to vector<16xf32>
    %17 = vector.shape_cast %16 : vector<16xf32> to vector<16x1xf32>
    %cst_25 = arith.constant 3.200000e+01 : f32
    %18 = vector.broadcast %cst_25 : f32 to vector<16x1xf32>
    %19 = arith.divf %17, %18 : vector<16x1xf32>
    %20 = vector.broadcast %19 : vector<16x1xf32> to vector<16x32xf32>
    %21 = arith.subf %0, %20 : vector<16x32xf32>
    %22 = arith.mulf %21, %21 : vector<16x32xf32>
    %cst_26 = arith.constant dense<0.000000e+00> : vector<16xf32>
    %23 = vector.multi_reduction <add>, %22, %cst_26 [1] : vector<16x32xf32> to vector<16xf32>
    %24 = vector.shape_cast %23 : vector<16xf32> to vector<16x1xf32>
    %cst_27 = arith.constant 0.0322580636 : f32
    %25 = vector.broadcast %cst_27 : f32 to vector<16x1xf32>
    %26 = arith.mulf %24, %25 : vector<16x1xf32>
    %27 = math.sqrt %26 : vector<16x1xf32>
    %28 = vector.broadcast %19 : vector<16x1xf32> to vector<16x32xf32>
    %29 = arith.subf %0, %28 : vector<16x32xf32>
    %30 = vector.broadcast %7 : vector<1x32xf32> to vector<16x32xf32>
    %31 = arith.mulf %30, %29 : vector<16x32xf32>
    %cst_28 = arith.constant 9.99999997E-7 : f32
    %32 = vector.broadcast %cst_28 : f32 to vector<16x1xf32>
    %33 = arith.addf %27, %32 : vector<16x1xf32>
    %34 = tpu.reciprocal %33 {approx = true} : vector<16x1xf32> -> vector<16x1xf32>
    %35 = arith.mulf %33, %34 : vector<16x1xf32>
    %cst_29 = arith.constant 2.000000e+00 : f32
    %36 = vector.broadcast %cst_29 : f32 to vector<16x1xf32>
    %37 = arith.subf %36, %35 : vector<16x1xf32>
    %38 = arith.mulf %34, %37 : vector<16x1xf32>
    %39 = vector.broadcast %38 : vector<16x1xf32> to vector<16x32xf32>
    %40 = arith.mulf %31, %39 : vector<16x32xf32>
    %41 = vector.broadcast %8 : vector<1x32xf32> to vector<16x32xf32>
    %42 = arith.addf %40, %41 : vector<16x32xf32>
    %c0_30 = arith.constant 0 : index
    %c0_31 = arith.constant 0 : index
    %43 = vector.load %arg5[%c0_30, %c0_31] : memref<136x128xf32, #tpu.memory_space<vmem>>, vector<32x8xf32>
    %c128 = arith.constant 128 : index
    %c0_32 = arith.constant 0 : index
    %44 = vector.load %arg5[%c128, %c0_32] : memref<136x128xf32, #tpu.memory_space<vmem>>, vector<1x8xf32>
    %c0_33 = arith.constant 0 : index
    %c32_34 = arith.constant 32 : index
    %45 = vector.load %arg5[%c0_33, %c32_34] : memref<136x128xf32, #tpu.memory_space<vmem>>, vector<32x8xf32>
    %c128_35 = arith.constant 128 : index
    %c32_36 = arith.constant 32 : index
    %46 = vector.load %arg5[%c128_35, %c32_36] : memref<136x128xf32, #tpu.memory_space<vmem>>, vector<1x8xf32>
    %c32_37 = arith.constant 32 : index
    %c0_38 = arith.constant 0 : index
    %47 = vector.load %arg5[%c32_37, %c0_38] : memref<136x128xf32, #tpu.memory_space<vmem>>, vector<32x32xf32>
    %c129 = arith.constant 129 : index
    %c0_39 = arith.constant 0 : index
    %48 = vector.load %arg5[%c129, %c0_39] : memref<136x128xf32, #tpu.memory_space<vmem>>, vector<1x32xf32>
    %cst_40 = arith.constant dense<0.000000e+00> : vector<16x8xf32>
    %49 = tpu.matmul %42, %43, %cst_40 {dimension_numbers = #tpu.dot_dimension_numbers<[1], [0], [0], [1], [0, 0, 1, 1], [], []>} : vector<16x32xf32>, vector<32x8xf32>, vector<16x8xf32> -> vector<16x8xf32>
    %50 = vector.broadcast %44 : vector<1x8xf32> to vector<16x8xf32>
    %51 = arith.addf %49, %50 : vector<16x8xf32>
    %cst_41 = arith.constant dense<0.000000e+00> : vector<16x8xf32>
    %52 = tpu.matmul %42, %45, %cst_41 {dimension_numbers = #tpu.dot_dimension_numbers<[1], [0], [0], [1], [0, 0, 1, 1], [], []>} : vector<16x32xf32>, vector<32x8xf32>, vector<16x8xf32> -> vector<16x8xf32>
    %53 = vector.broadcast %46 : vector<1x8xf32> to vector<16x8xf32>
    %54 = arith.addf %52, %53 : vector<16x8xf32>
    "tpu.trace_start"() <{level = 10 : i32, message = "td,sd->ts"}> : () -> ()
    %cst_42 = arith.constant dense<0.000000e+00> : vector<16x16xf32>
    %55 = tpu.matmul %51, %54, %cst_42 {dimension_numbers = #tpu.dot_dimension_numbers<[1], [1], [0], [0], [0, 0, 1, 0], [], []>} : vector<16x8xf32>, vector<16x8xf32>, vector<16x16xf32> -> vector<16x16xf32>
    "tpu.trace_stop"() : () -> ()
    %56 = arith.addf %55, %2 : vector<16x16xf32>
    %cst_43 = arith.constant dense<0xFF800000> : vector<16xf32>
    %57 = vector.multi_reduction <maximumf>, %56, %cst_43 [1] : vector<16x16xf32> to vector<16xf32>
    %58 = vector.shape_cast %57 : vector<16xf32> to vector<16x1xf32>
    %59 = vector.broadcast %58 : vector<16x1xf32> to vector<16x16xf32>
    %60 = arith.subf %56, %59 : vector<16x16xf32>
    %61 = math.exp %60 : vector<16x16xf32>
    %cst_44 = arith.constant dense<0.000000e+00> : vector<16xf32>
    %62 = vector.multi_reduction <add>, %61, %cst_44 [1] : vector<16x16xf32> to vector<16xf32>
    %63 = vector.shape_cast %62 : vector<16xf32> to vector<16x1xf32>
    %64 = tpu.reciprocal %63 {approx = true} : vector<16x1xf32> -> vector<16x1xf32>
    %65 = arith.mulf %63, %64 : vector<16x1xf32>
    %cst_45 = arith.constant 2.000000e+00 : f32
    %66 = vector.broadcast %cst_45 : f32 to vector<16x1xf32>
    %67 = arith.subf %66, %65 : vector<16x1xf32>
    %68 = arith.mulf %64, %67 : vector<16x1xf32>
    %69 = vector.broadcast %68 : vector<16x1xf32> to vector<16x16xf32>
    %70 = arith.mulf %61, %69 : vector<16x16xf32>
    %cst_46 = arith.constant dense<0.000000e+00> : vector<16x32xf32>
    %71 = tpu.matmul %42, %47, %cst_46 {dimension_numbers = #tpu.dot_dimension_numbers<[1], [0], [0], [1], [0, 0, 1, 1], [], []>} : vector<16x32xf32>, vector<32x32xf32>, vector<16x32xf32> -> vector<16x32xf32>
    %72 = vector.broadcast %48 : vector<1x32xf32> to vector<16x32xf32>
    %73 = arith.addf %71, %72 : vector<16x32xf32>
    %cst_47 = arith.constant dense<0.000000e+00> : vector<16x32xf32>
    %74 = tpu.matmul %70, %73, %cst_47 {dimension_numbers = #tpu.dot_dimension_numbers<[1], [0], [0], [1], [0, 0, 1, 1], [], []>} : vector<16x16xf32>, vector<16x32xf32>, vector<16x32xf32> -> vector<16x32xf32>
    %c0_48 = arith.constant 0 : index
    %c8 = arith.constant 8 : index
    %75 = vector.load %arg5[%c0_48, %c8] : memref<136x128xf32, #tpu.memory_space<vmem>>, vector<32x8xf32>
    %c128_49 = arith.constant 128 : index
    %c8_50 = arith.constant 8 : index
    %76 = vector.load %arg5[%c128_49, %c8_50] : memref<136x128xf32, #tpu.memory_space<vmem>>, vector<1x8xf32>
    %c0_51 = arith.constant 0 : index
    %c40 = arith.constant 40 : index
    %77 = vector.load %arg5[%c0_51, %c40] : memref<136x128xf32, #tpu.memory_space<vmem>>, vector<32x8xf32>
    %c128_52 = arith.constant 128 : index
    %c40_53 = arith.constant 40 : index
    %78 = vector.load %arg5[%c128_52, %c40_53] : memref<136x128xf32, #tpu.memory_space<vmem>>, vector<1x8xf32>
    %c32_54 = arith.constant 32 : index
    %c32_55 = arith.constant 32 : index
    %79 = vector.load %arg5[%c32_54, %c32_55] : memref<136x128xf32, #tpu.memory_space<vmem>>, vector<32x32xf32>
    %c129_56 = arith.constant 129 : index
    %c32_57 = arith.constant 32 : index
    %80 = vector.load %arg5[%c129_56, %c32_57] : memref<136x128xf32, #tpu.memory_space<vmem>>, vector<1x32xf32>
    %cst_58 = arith.constant dense<0.000000e+00> : vector<16x8xf32>
    %81 = tpu.matmul %42, %75, %cst_58 {dimension_numbers = #tpu.dot_dimension_numbers<[1], [0], [0], [1], [0, 0, 1, 1], [], []>} : vector<16x32xf32>, vector<32x8xf32>, vector<16x8xf32> -> vector<16x8xf32>
    %82 = vector.broadcast %76 : vector<1x8xf32> to vector<16x8xf32>
    %83 = arith.addf %81, %82 : vector<16x8xf32>
    %cst_59 = arith.constant dense<0.000000e+00> : vector<16x8xf32>
    %84 = tpu.matmul %42, %77, %cst_59 {dimension_numbers = #tpu.dot_dimension_numbers<[1], [0], [0], [1], [0, 0, 1, 1], [], []>} : vector<16x32xf32>, vector<32x8xf32>, vector<16x8xf32> -> vector<16x8xf32>
    %85 = vector.broadcast %78 : vector<1x8xf32> to vector<16x8xf32>
    %86 = arith.addf %84, %85 : vector<16x8xf32>
    "tpu.trace_start"() <{level = 10 : i32, message = "td,sd->ts"}> : () -> ()
    %cst_60 = arith.constant dense<0.000000e+00> : vector<16x16xf32>
    %87 = tpu.matmul %83, %86, %cst_60 {dimension_numbers = #tpu.dot_dimension_numbers<[1], [1], [0], [0], [0, 0, 1, 0], [], []>} : vector<16x8xf32>, vector<16x8xf32>, vector<16x16xf32> -> vector<16x16xf32>
    "tpu.trace_stop"() : () -> ()
    %88 = arith.addf %87, %2 : vector<16x16xf32>
    %cst_61 = arith.constant dense<0xFF800000> : vector<16xf32>
    %89 = vector.multi_reduction <maximumf>, %88, %cst_61 [1] : vector<16x16xf32> to vector<16xf32>
    %90 = vector.shape_cast %89 : vector<16xf32> to vector<16x1xf32>
    %91 = vector.broadcast %90 : vector<16x1xf32> to vector<16x16xf32>
    %92 = arith.subf %88, %91 : vector<16x16xf32>
    %93 = math.exp %92 : vector<16x16xf32>
    %cst_62 = arith.constant dense<0.000000e+00> : vector<16xf32>
    %94 = vector.multi_reduction <add>, %93, %cst_62 [1] : vector<16x16xf32> to vector<16xf32>
    %95 = vector.shape_cast %94 : vector<16xf32> to vector<16x1xf32>
    %96 = tpu.reciprocal %95 {approx = true} : vector<16x1xf32> -> vector<16x1xf32>
    %97 = arith.mulf %95, %96 : vector<16x1xf32>
    %cst_63 = arith.constant 2.000000e+00 : f32
    %98 = vector.broadcast %cst_63 : f32 to vector<16x1xf32>
    %99 = arith.subf %98, %97 : vector<16x1xf32>
    %100 = arith.mulf %96, %99 : vector<16x1xf32>
    %101 = vector.broadcast %100 : vector<16x1xf32> to vector<16x16xf32>
    %102 = arith.mulf %93, %101 : vector<16x16xf32>
    %cst_64 = arith.constant dense<0.000000e+00> : vector<16x32xf32>
    %103 = tpu.matmul %42, %79, %cst_64 {dimension_numbers = #tpu.dot_dimension_numbers<[1], [0], [0], [1], [0, 0, 1, 1], [], []>} : vector<16x32xf32>, vector<32x32xf32>, vector<16x32xf32> -> vector<16x32xf32>
    %104 = vector.broadcast %80 : vector<1x32xf32> to vector<16x32xf32>
    %105 = arith.addf %103, %104 : vector<16x32xf32>
    %cst_65 = arith.constant dense<0.000000e+00> : vector<16x32xf32>
    %106 = tpu.matmul %102, %105, %cst_65 {dimension_numbers = #tpu.dot_dimension_numbers<[1], [0], [0], [1], [0, 0, 1, 1], [], []>} : vector<16x16xf32>, vector<16x32xf32>, vector<16x32xf32> -> vector<16x32xf32>
    %107 = arith.addf %74, %106 : vector<16x32xf32>
    %c0_66 = arith.constant 0 : index
    %c16 = arith.constant 16 : index
    %108 = vector.load %arg5[%c0_66, %c16] : memref<136x128xf32, #tpu.memory_space<vmem>>, vector<32x8xf32>
    %c128_67 = arith.constant 128 : index
    %c16_68 = arith.constant 16 : index
    %109 = vector.load %arg5[%c128_67, %c16_68] : memref<136x128xf32, #tpu.memory_space<vmem>>, vector<1x8xf32>
    %c0_69 = arith.constant 0 : index
    %c48 = arith.constant 48 : index
    %110 = vector.load %arg5[%c0_69, %c48] : memref<136x128xf32, #tpu.memory_space<vmem>>, vector<32x8xf32>
    %c128_70 = arith.constant 128 : index
    %c48_71 = arith.constant 48 : index
    %111 = vector.load %arg5[%c128_70, %c48_71] : memref<136x128xf32, #tpu.memory_space<vmem>>, vector<1x8xf32>
    %c32_72 = arith.constant 32 : index
    %c64_73 = arith.constant 64 : index
    %112 = vector.load %arg5[%c32_72, %c64_73] : memref<136x128xf32, #tpu.memory_space<vmem>>, vector<32x32xf32>
    %c129_74 = arith.constant 129 : index
    %c64_75 = arith.constant 64 : index
    %113 = vector.load %arg5[%c129_74, %c64_75] : memref<136x128xf32, #tpu.memory_space<vmem>>, vector<1x32xf32>
    %cst_76 = arith.constant dense<0.000000e+00> : vector<16x8xf32>
    %114 = tpu.matmul %42, %108, %cst_76 {dimension_numbers = #tpu.dot_dimension_numbers<[1], [0], [0], [1], [0, 0, 1, 1], [], []>} : vector<16x32xf32>, vector<32x8xf32>, vector<16x8xf32> -> vector<16x8xf32>
    %115 = vector.broadcast %109 : vector<1x8xf32> to vector<16x8xf32>
    %116 = arith.addf %114, %115 : vector<16x8xf32>
    %cst_77 = arith.constant dense<0.000000e+00> : vector<16x8xf32>
    %117 = tpu.matmul %42, %110, %cst_77 {dimension_numbers = #tpu.dot_dimension_numbers<[1], [0], [0], [1], [0, 0, 1, 1], [], []>} : vector<16x32xf32>, vector<32x8xf32>, vector<16x8xf32> -> vector<16x8xf32>
    %118 = vector.broadcast %111 : vector<1x8xf32> to vector<16x8xf32>
    %119 = arith.addf %117, %118 : vector<16x8xf32>
    "tpu.trace_start"() <{level = 10 : i32, message = "td,sd->ts"}> : () -> ()
    %cst_78 = arith.constant dense<0.000000e+00> : vector<16x16xf32>
    %120 = tpu.matmul %116, %119, %cst_78 {dimension_numbers = #tpu.dot_dimension_numbers<[1], [1], [0], [0], [0, 0, 1, 0], [], []>} : vector<16x8xf32>, vector<16x8xf32>, vector<16x16xf32> -> vector<16x16xf32>
    "tpu.trace_stop"() : () -> ()
    %121 = arith.addf %120, %2 : vector<16x16xf32>
    %cst_79 = arith.constant dense<0xFF800000> : vector<16xf32>
    %122 = vector.multi_reduction <maximumf>, %121, %cst_79 [1] : vector<16x16xf32> to vector<16xf32>
    %123 = vector.shape_cast %122 : vector<16xf32> to vector<16x1xf32>
    %124 = vector.broadcast %123 : vector<16x1xf32> to vector<16x16xf32>
    %125 = arith.subf %121, %124 : vector<16x16xf32>
    %126 = math.exp %125 : vector<16x16xf32>
    %cst_80 = arith.constant dense<0.000000e+00> : vector<16xf32>
    %127 = vector.multi_reduction <add>, %126, %cst_80 [1] : vector<16x16xf32> to vector<16xf32>
    %128 = vector.shape_cast %127 : vector<16xf32> to vector<16x1xf32>
    %129 = tpu.reciprocal %128 {approx = true} : vector<16x1xf32> -> vector<16x1xf32>
    %130 = arith.mulf %128, %129 : vector<16x1xf32>
    %cst_81 = arith.constant 2.000000e+00 : f32
    %131 = vector.broadcast %cst_81 : f32 to vector<16x1xf32>
    %132 = arith.subf %131, %130 : vector<16x1xf32>
    %133 = arith.mulf %129, %132 : vector<16x1xf32>
    %134 = vector.broadcast %133 : vector<16x1xf32> to vector<16x16xf32>
    %135 = arith.mulf %126, %134 : vector<16x16xf32>
    %cst_82 = arith.constant dense<0.000000e+00> : vector<16x32xf32>
    %136 = tpu.matmul %42, %112, %cst_82 {dimension_numbers = #tpu.dot_dimension_numbers<[1], [0], [0], [1], [0, 0, 1, 1], [], []>} : vector<16x32xf32>, vector<32x32xf32>, vector<16x32xf32> -> vector<16x32xf32>
    %137 = vector.broadcast %113 : vector<1x32xf32> to vector<16x32xf32>
    %138 = arith.addf %136, %137 : vector<16x32xf32>
    %cst_83 = arith.constant dense<0.000000e+00> : vector<16x32xf32>
    %139 = tpu.matmul %135, %138, %cst_83 {dimension_numbers = #tpu.dot_dimension_numbers<[1], [0], [0], [1], [0, 0, 1, 1], [], []>} : vector<16x16xf32>, vector<16x32xf32>, vector<16x32xf32> -> vector<16x32xf32>
    %140 = arith.addf %107, %139 : vector<16x32xf32>
    %c0_84 = arith.constant 0 : index
    %c24 = arith.constant 24 : index
    %141 = vector.load %arg5[%c0_84, %c24] : memref<136x128xf32, #tpu.memory_space<vmem>>, vector<32x8xf32>
    %c128_85 = arith.constant 128 : index
    %c24_86 = arith.constant 24 : index
    %142 = vector.load %arg5[%c128_85, %c24_86] : memref<136x128xf32, #tpu.memory_space<vmem>>, vector<1x8xf32>
    %c0_87 = arith.constant 0 : index
    %c56 = arith.constant 56 : index
    %143 = vector.load %arg5[%c0_87, %c56] : memref<136x128xf32, #tpu.memory_space<vmem>>, vector<32x8xf32>
    %c128_88 = arith.constant 128 : index
    %c56_89 = arith.constant 56 : index
    %144 = vector.load %arg5[%c128_88, %c56_89] : memref<136x128xf32, #tpu.memory_space<vmem>>, vector<1x8xf32>
    %c32_90 = arith.constant 32 : index
    %c96_91 = arith.constant 96 : index
    %145 = vector.load %arg5[%c32_90, %c96_91] : memref<136x128xf32, #tpu.memory_space<vmem>>, vector<32x32xf32>
    %c129_92 = arith.constant 129 : index
    %c96_93 = arith.constant 96 : index
    %146 = vector.load %arg5[%c129_92, %c96_93] : memref<136x128xf32, #tpu.memory_space<vmem>>, vector<1x32xf32>
    %cst_94 = arith.constant dense<0.000000e+00> : vector<16x8xf32>
    %147 = tpu.matmul %42, %141, %cst_94 {dimension_numbers = #tpu.dot_dimension_numbers<[1], [0], [0], [1], [0, 0, 1, 1], [], []>} : vector<16x32xf32>, vector<32x8xf32>, vector<16x8xf32> -> vector<16x8xf32>
    %148 = vector.broadcast %142 : vector<1x8xf32> to vector<16x8xf32>
    %149 = arith.addf %147, %148 : vector<16x8xf32>
    %cst_95 = arith.constant dense<0.000000e+00> : vector<16x8xf32>
    %150 = tpu.matmul %42, %143, %cst_95 {dimension_numbers = #tpu.dot_dimension_numbers<[1], [0], [0], [1], [0, 0, 1, 1], [], []>} : vector<16x32xf32>, vector<32x8xf32>, vector<16x8xf32> -> vector<16x8xf32>
    %151 = vector.broadcast %144 : vector<1x8xf32> to vector<16x8xf32>
    %152 = arith.addf %150, %151 : vector<16x8xf32>
    "tpu.trace_start"() <{level = 10 : i32, message = "td,sd->ts"}> : () -> ()
    %cst_96 = arith.constant dense<0.000000e+00> : vector<16x16xf32>
    %153 = tpu.matmul %149, %152, %cst_96 {dimension_numbers = #tpu.dot_dimension_numbers<[1], [1], [0], [0], [0, 0, 1, 0], [], []>} : vector<16x8xf32>, vector<16x8xf32>, vector<16x16xf32> -> vector<16x16xf32>
    "tpu.trace_stop"() : () -> ()
    %154 = arith.addf %153, %2 : vector<16x16xf32>
    %cst_97 = arith.constant dense<0xFF800000> : vector<16xf32>
    %155 = vector.multi_reduction <maximumf>, %154, %cst_97 [1] : vector<16x16xf32> to vector<16xf32>
    %156 = vector.shape_cast %155 : vector<16xf32> to vector<16x1xf32>
    %157 = vector.broadcast %156 : vector<16x1xf32> to vector<16x16xf32>
    %158 = arith.subf %154, %157 : vector<16x16xf32>
    %159 = math.exp %158 : vector<16x16xf32>
    %cst_98 = arith.constant dense<0.000000e+00> : vector<16xf32>
    %160 = vector.multi_reduction <add>, %159, %cst_98 [1] : vector<16x16xf32> to vector<16xf32>
    %161 = vector.shape_cast %160 : vector<16xf32> to vector<16x1xf32>
    %162 = tpu.reciprocal %161 {approx = true} : vector<16x1xf32> -> vector<16x1xf32>
    %163 = arith.mulf %161, %162 : vector<16x1xf32>
    %cst_99 = arith.constant 2.000000e+00 : f32
    %164 = vector.broadcast %cst_99 : f32 to vector<16x1xf32>
    %165 = arith.subf %164, %163 : vector<16x1xf32>
    %166 = arith.mulf %162, %165 : vector<16x1xf32>
    %167 = vector.broadcast %166 : vector<16x1xf32> to vector<16x16xf32>
    %168 = arith.mulf %159, %167 : vector<16x16xf32>
    %cst_100 = arith.constant dense<0.000000e+00> : vector<16x32xf32>
    %169 = tpu.matmul %42, %145, %cst_100 {dimension_numbers = #tpu.dot_dimension_numbers<[1], [0], [0], [1], [0, 0, 1, 1], [], []>} : vector<16x32xf32>, vector<32x32xf32>, vector<16x32xf32> -> vector<16x32xf32>
    %170 = vector.broadcast %146 : vector<1x32xf32> to vector<16x32xf32>
    %171 = arith.addf %169, %170 : vector<16x32xf32>
    %cst_101 = arith.constant dense<0.000000e+00> : vector<16x32xf32>
    %172 = tpu.matmul %168, %171, %cst_101 {dimension_numbers = #tpu.dot_dimension_numbers<[1], [0], [0], [1], [0, 0, 1, 1], [], []>} : vector<16x16xf32>, vector<16x32xf32>, vector<16x32xf32> -> vector<16x32xf32>
    %173 = arith.addf %140, %172 : vector<16x32xf32>
    %174 = arith.addf %0, %173 : vector<16x32xf32>
    %175 = vector.broadcast %4 : vector<1x32xf32> to vector<16x32xf32>
    %176 = arith.addf %174, %175 : vector<16x32xf32>
    %cst_102 = arith.constant dense<0.000000e+00> : vector<16xf32>
    %177 = vector.multi_reduction <add>, %176, %cst_102 [1] : vector<16x32xf32> to vector<16xf32>
    %178 = vector.shape_cast %177 : vector<16xf32> to vector<16x1xf32>
    %cst_103 = arith.constant 3.200000e+01 : f32
    %179 = vector.broadcast %cst_103 : f32 to vector<16x1xf32>
    %180 = arith.divf %178, %179 : vector<16x1xf32>
    %181 = vector.broadcast %180 : vector<16x1xf32> to vector<16x32xf32>
    %182 = arith.subf %176, %181 : vector<16x32xf32>
    %183 = arith.mulf %182, %182 : vector<16x32xf32>
    %cst_104 = arith.constant dense<0.000000e+00> : vector<16xf32>
    %184 = vector.multi_reduction <add>, %183, %cst_104 [1] : vector<16x32xf32> to vector<16xf32>
    %185 = vector.shape_cast %184 : vector<16xf32> to vector<16x1xf32>
    %cst_105 = arith.constant 0.0322580636 : f32
    %186 = vector.broadcast %cst_105 : f32 to vector<16x1xf32>
    %187 = arith.mulf %185, %186 : vector<16x1xf32>
    %188 = math.sqrt %187 : vector<16x1xf32>
    %189 = vector.broadcast %180 : vector<16x1xf32> to vector<16x32xf32>
    %190 = arith.subf %176, %189 : vector<16x32xf32>
    %191 = vector.broadcast %9 : vector<1x32xf32> to vector<16x32xf32>
    %192 = arith.mulf %191, %190 : vector<16x32xf32>
    %cst_106 = arith.constant 9.99999997E-7 : f32
    %193 = vector.broadcast %cst_106 : f32 to vector<16x1xf32>
    %194 = arith.addf %188, %193 : vector<16x1xf32>
    %195 = tpu.reciprocal %194 {approx = true} : vector<16x1xf32> -> vector<16x1xf32>
    %196 = arith.mulf %194, %195 : vector<16x1xf32>
    %cst_107 = arith.constant 2.000000e+00 : f32
    %197 = vector.broadcast %cst_107 : f32 to vector<16x1xf32>
    %198 = arith.subf %197, %196 : vector<16x1xf32>
    %199 = arith.mulf %195, %198 : vector<16x1xf32>
    %200 = vector.broadcast %199 : vector<16x1xf32> to vector<16x32xf32>
    %201 = arith.mulf %192, %200 : vector<16x32xf32>
    %202 = vector.broadcast %10 : vector<1x32xf32> to vector<16x32xf32>
    %203 = arith.addf %201, %202 : vector<16x32xf32>
    %c0_108 = arith.constant 0 : index
    %c64_109 = arith.constant 64 : index
    %204 = vector.load %arg5[%c0_108, %c64_109] : memref<136x128xf32, #tpu.memory_space<vmem>>, vector<32x8xf32>
    %c128_110 = arith.constant 128 : index
    %c64_111 = arith.constant 64 : index
    %205 = vector.load %arg5[%c128_110, %c64_111] : memref<136x128xf32, #tpu.memory_space<vmem>>, vector<1x8xf32>
    %c0_112 = arith.constant 0 : index
    %c96_113 = arith.constant 96 : index
    %206 = vector.load %arg5[%c0_112, %c96_113] : memref<136x128xf32, #tpu.memory_space<vmem>>, vector<32x8xf32>
    %c128_114 = arith.constant 128 : index
    %c96_115 = arith.constant 96 : index
    %207 = vector.load %arg5[%c128_114, %c96_115] : memref<136x128xf32, #tpu.memory_space<vmem>>, vector<1x8xf32>
    %c64_116 = arith.constant 64 : index
    %c0_117 = arith.constant 0 : index
    %208 = vector.load %arg5[%c64_116, %c0_117] : memref<136x128xf32, #tpu.memory_space<vmem>>, vector<32x32xf32>
    %c130 = arith.constant 130 : index
    %c0_118 = arith.constant 0 : index
    %209 = vector.load %arg5[%c130, %c0_118] : memref<136x128xf32, #tpu.memory_space<vmem>>, vector<1x32xf32>
    %cst_119 = arith.constant dense<0.000000e+00> : vector<16x8xf32>
    %210 = tpu.matmul %203, %204, %cst_119 {dimension_numbers = #tpu.dot_dimension_numbers<[1], [0], [0], [1], [0, 0, 1, 1], [], []>} : vector<16x32xf32>, vector<32x8xf32>, vector<16x8xf32> -> vector<16x8xf32>
    %211 = vector.broadcast %205 : vector<1x8xf32> to vector<16x8xf32>
    %212 = arith.addf %210, %211 : vector<16x8xf32>
    %cst_120 = arith.constant dense<0.000000e+00> : vector<16x8xf32>
    %213 = tpu.matmul %1, %206, %cst_120 {dimension_numbers = #tpu.dot_dimension_numbers<[1], [0], [0], [1], [0, 0, 1, 1], [], []>} : vector<16x32xf32>, vector<32x8xf32>, vector<16x8xf32> -> vector<16x8xf32>
    %214 = vector.broadcast %207 : vector<1x8xf32> to vector<16x8xf32>
    %215 = arith.addf %213, %214 : vector<16x8xf32>
    "tpu.trace_start"() <{level = 10 : i32, message = "td,sd->ts"}> : () -> ()
    %cst_121 = arith.constant dense<0.000000e+00> : vector<16x16xf32>
    %216 = tpu.matmul %212, %215, %cst_121 {dimension_numbers = #tpu.dot_dimension_numbers<[1], [1], [0], [0], [0, 0, 1, 0], [], []>} : vector<16x8xf32>, vector<16x8xf32>, vector<16x16xf32> -> vector<16x16xf32>
    "tpu.trace_stop"() : () -> ()
    %217 = arith.addf %216, %3 : vector<16x16xf32>
    %cst_122 = arith.constant dense<0xFF800000> : vector<16xf32>
    %218 = vector.multi_reduction <maximumf>, %217, %cst_122 [1] : vector<16x16xf32> to vector<16xf32>
    %219 = vector.shape_cast %218 : vector<16xf32> to vector<16x1xf32>
    %220 = vector.broadcast %219 : vector<16x1xf32> to vector<16x16xf32>
    %221 = arith.subf %217, %220 : vector<16x16xf32>
    %222 = math.exp %221 : vector<16x16xf32>
    %cst_123 = arith.constant dense<0.000000e+00> : vector<16xf32>
    %223 = vector.multi_reduction <add>, %222, %cst_123 [1] : vector<16x16xf32> to vector<16xf32>
    %224 = vector.shape_cast %223 : vector<16xf32> to vector<16x1xf32>
    %225 = tpu.reciprocal %224 {approx = true} : vector<16x1xf32> -> vector<16x1xf32>
    %226 = arith.mulf %224, %225 : vector<16x1xf32>
    %cst_124 = arith.constant 2.000000e+00 : f32
    %227 = vector.broadcast %cst_124 : f32 to vector<16x1xf32>
    %228 = arith.subf %227, %226 : vector<16x1xf32>
    %229 = arith.mulf %225, %228 : vector<16x1xf32>
    %230 = vector.broadcast %229 : vector<16x1xf32> to vector<16x16xf32>
    %231 = arith.mulf %222, %230 : vector<16x16xf32>
    %cst_125 = arith.constant dense<0.000000e+00> : vector<16x32xf32>
    %232 = tpu.matmul %1, %208, %cst_125 {dimension_numbers = #tpu.dot_dimension_numbers<[1], [0], [0], [1], [0, 0, 1, 1], [], []>} : vector<16x32xf32>, vector<32x32xf32>, vector<16x32xf32> -> vector<16x32xf32>
    %233 = vector.broadcast %209 : vector<1x32xf32> to vector<16x32xf32>
    %234 = arith.addf %232, %233 : vector<16x32xf32>
    %cst_126 = arith.constant dense<0.000000e+00> : vector<16x32xf32>
    %235 = tpu.matmul %231, %234, %cst_126 {dimension_numbers = #tpu.dot_dimension_numbers<[1], [0], [0], [1], [0, 0, 1, 1], [], []>} : vector<16x16xf32>, vector<16x32xf32>, vector<16x32xf32> -> vector<16x32xf32>
    %c0_127 = arith.constant 0 : index
    %c72 = arith.constant 72 : index
    %236 = vector.load %arg5[%c0_127, %c72] : memref<136x128xf32, #tpu.memory_space<vmem>>, vector<32x8xf32>
    %c128_128 = arith.constant 128 : index
    %c72_129 = arith.constant 72 : index
    %237 = vector.load %arg5[%c128_128, %c72_129] : memref<136x128xf32, #tpu.memory_space<vmem>>, vector<1x8xf32>
    %c0_130 = arith.constant 0 : index
    %c104 = arith.constant 104 : index
    %238 = vector.load %arg5[%c0_130, %c104] : memref<136x128xf32, #tpu.memory_space<vmem>>, vector<32x8xf32>
    %c128_131 = arith.constant 128 : index
    %c104_132 = arith.constant 104 : index
    %239 = vector.load %arg5[%c128_131, %c104_132] : memref<136x128xf32, #tpu.memory_space<vmem>>, vector<1x8xf32>
    %c64_133 = arith.constant 64 : index
    %c32_134 = arith.constant 32 : index
    %240 = vector.load %arg5[%c64_133, %c32_134] : memref<136x128xf32, #tpu.memory_space<vmem>>, vector<32x32xf32>
    %c130_135 = arith.constant 130 : index
    %c32_136 = arith.constant 32 : index
    %241 = vector.load %arg5[%c130_135, %c32_136] : memref<136x128xf32, #tpu.memory_space<vmem>>, vector<1x32xf32>
    %cst_137 = arith.constant dense<0.000000e+00> : vector<16x8xf32>
    %242 = tpu.matmul %203, %236, %cst_137 {dimension_numbers = #tpu.dot_dimension_numbers<[1], [0], [0], [1], [0, 0, 1, 1], [], []>} : vector<16x32xf32>, vector<32x8xf32>, vector<16x8xf32> -> vector<16x8xf32>
    %243 = vector.broadcast %237 : vector<1x8xf32> to vector<16x8xf32>
    %244 = arith.addf %242, %243 : vector<16x8xf32>
    %cst_138 = arith.constant dense<0.000000e+00> : vector<16x8xf32>
    %245 = tpu.matmul %1, %238, %cst_138 {dimension_numbers = #tpu.dot_dimension_numbers<[1], [0], [0], [1], [0, 0, 1, 1], [], []>} : vector<16x32xf32>, vector<32x8xf32>, vector<16x8xf32> -> vector<16x8xf32>
    %246 = vector.broadcast %239 : vector<1x8xf32> to vector<16x8xf32>
    %247 = arith.addf %245, %246 : vector<16x8xf32>
    "tpu.trace_start"() <{level = 10 : i32, message = "td,sd->ts"}> : () -> ()
    %cst_139 = arith.constant dense<0.000000e+00> : vector<16x16xf32>
    %248 = tpu.matmul %244, %247, %cst_139 {dimension_numbers = #tpu.dot_dimension_numbers<[1], [1], [0], [0], [0, 0, 1, 0], [], []>} : vector<16x8xf32>, vector<16x8xf32>, vector<16x16xf32> -> vector<16x16xf32>
    "tpu.trace_stop"() : () -> ()
    %249 = arith.addf %248, %3 : vector<16x16xf32>
    %cst_140 = arith.constant dense<0xFF800000> : vector<16xf32>
    %250 = vector.multi_reduction <maximumf>, %249, %cst_140 [1] : vector<16x16xf32> to vector<16xf32>
    %251 = vector.shape_cast %250 : vector<16xf32> to vector<16x1xf32>
    %252 = vector.broadcast %251 : vector<16x1xf32> to vector<16x16xf32>
    %253 = arith.subf %249, %252 : vector<16x16xf32>
    %254 = math.exp %253 : vector<16x16xf32>
    %cst_141 = arith.constant dense<0.000000e+00> : vector<16xf32>
    %255 = vector.multi_reduction <add>, %254, %cst_141 [1] : vector<16x16xf32> to vector<16xf32>
    %256 = vector.shape_cast %255 : vector<16xf32> to vector<16x1xf32>
    %257 = tpu.reciprocal %256 {approx = true} : vector<16x1xf32> -> vector<16x1xf32>
    %258 = arith.mulf %256, %257 : vector<16x1xf32>
    %cst_142 = arith.constant 2.000000e+00 : f32
    %259 = vector.broadcast %cst_142 : f32 to vector<16x1xf32>
    %260 = arith.subf %259, %258 : vector<16x1xf32>
    %261 = arith.mulf %257, %260 : vector<16x1xf32>
    %262 = vector.broadcast %261 : vector<16x1xf32> to vector<16x16xf32>
    %263 = arith.mulf %254, %262 : vector<16x16xf32>
    %cst_143 = arith.constant dense<0.000000e+00> : vector<16x32xf32>
    %264 = tpu.matmul %1, %240, %cst_143 {dimension_numbers = #tpu.dot_dimension_numbers<[1], [0], [0], [1], [0, 0, 1, 1], [], []>} : vector<16x32xf32>, vector<32x32xf32>, vector<16x32xf32> -> vector<16x32xf32>
    %265 = vector.broadcast %241 : vector<1x32xf32> to vector<16x32xf32>
    %266 = arith.addf %264, %265 : vector<16x32xf32>
    %cst_144 = arith.constant dense<0.000000e+00> : vector<16x32xf32>
    %267 = tpu.matmul %263, %266, %cst_144 {dimension_numbers = #tpu.dot_dimension_numbers<[1], [0], [0], [1], [0, 0, 1, 1], [], []>} : vector<16x16xf32>, vector<16x32xf32>, vector<16x32xf32> -> vector<16x32xf32>
    %268 = arith.addf %235, %267 : vector<16x32xf32>
    %c0_145 = arith.constant 0 : index
    %c80 = arith.constant 80 : index
    %269 = vector.load %arg5[%c0_145, %c80] : memref<136x128xf32, #tpu.memory_space<vmem>>, vector<32x8xf32>
    %c128_146 = arith.constant 128 : index
    %c80_147 = arith.constant 80 : index
    %270 = vector.load %arg5[%c128_146, %c80_147] : memref<136x128xf32, #tpu.memory_space<vmem>>, vector<1x8xf32>
    %c0_148 = arith.constant 0 : index
    %c112 = arith.constant 112 : index
    %271 = vector.load %arg5[%c0_148, %c112] : memref<136x128xf32, #tpu.memory_space<vmem>>, vector<32x8xf32>
    %c128_149 = arith.constant 128 : index
    %c112_150 = arith.constant 112 : index
    %272 = vector.load %arg5[%c128_149, %c112_150] : memref<136x128xf32, #tpu.memory_space<vmem>>, vector<1x8xf32>
    %c64_151 = arith.constant 64 : index
    %c64_152 = arith.constant 64 : index
    %273 = vector.load %arg5[%c64_151, %c64_152] : memref<136x128xf32, #tpu.memory_space<vmem>>, vector<32x32xf32>
    %c130_153 = arith.constant 130 : index
    %c64_154 = arith.constant 64 : index
    %274 = vector.load %arg5[%c130_153, %c64_154] : memref<136x128xf32, #tpu.memory_space<vmem>>, vector<1x32xf32>
    %cst_155 = arith.constant dense<0.000000e+00> : vector<16x8xf32>
    %275 = tpu.matmul %203, %269, %cst_155 {dimension_numbers = #tpu.dot_dimension_numbers<[1], [0], [0], [1], [0, 0, 1, 1], [], []>} : vector<16x32xf32>, vector<32x8xf32>, vector<16x8xf32> -> vector<16x8xf32>
    %276 = vector.broadcast %270 : vector<1x8xf32> to vector<16x8xf32>
    %277 = arith.addf %275, %276 : vector<16x8xf32>
    %cst_156 = arith.constant dense<0.000000e+00> : vector<16x8xf32>
    %278 = tpu.matmul %1, %271, %cst_156 {dimension_numbers = #tpu.dot_dimension_numbers<[1], [0], [0], [1], [0, 0, 1, 1], [], []>} : vector<16x32xf32>, vector<32x8xf32>, vector<16x8xf32> -> vector<16x8xf32>
    %279 = vector.broadcast %272 : vector<1x8xf32> to vector<16x8xf32>
    %280 = arith.addf %278, %279 : vector<16x8xf32>
    "tpu.trace_start"() <{level = 10 : i32, message = "td,sd->ts"}> : () -> ()
    %cst_157 = arith.constant dense<0.000000e+00> : vector<16x16xf32>
    %281 = tpu.matmul %277, %280, %cst_157 {dimension_numbers = #tpu.dot_dimension_numbers<[1], [1], [0], [0], [0, 0, 1, 0], [], []>} : vector<16x8xf32>, vector<16x8xf32>, vector<16x16xf32> -> vector<16x16xf32>
    "tpu.trace_stop"() : () -> ()
    %282 = arith.addf %281, %3 : vector<16x16xf32>
    %cst_158 = arith.constant dense<0xFF800000> : vector<16xf32>
    %283 = vector.multi_reduction <maximumf>, %282, %cst_158 [1] : vector<16x16xf32> to vector<16xf32>
    %284 = vector.shape_cast %283 : vector<16xf32> to vector<16x1xf32>
    %285 = vector.broadcast %284 : vector<16x1xf32> to vector<16x16xf32>
    %286 = arith.subf %282, %285 : vector<16x16xf32>
    %287 = math.exp %286 : vector<16x16xf32>
    %cst_159 = arith.constant dense<0.000000e+00> : vector<16xf32>
    %288 = vector.multi_reduction <add>, %287, %cst_159 [1] : vector<16x16xf32> to vector<16xf32>
    %289 = vector.shape_cast %288 : vector<16xf32> to vector<16x1xf32>
    %290 = tpu.reciprocal %289 {approx = true} : vector<16x1xf32> -> vector<16x1xf32>
    %291 = arith.mulf %289, %290 : vector<16x1xf32>
    %cst_160 = arith.constant 2.000000e+00 : f32
    %292 = vector.broadcast %cst_160 : f32 to vector<16x1xf32>
    %293 = arith.subf %292, %291 : vector<16x1xf32>
    %294 = arith.mulf %290, %293 : vector<16x1xf32>
    %295 = vector.broadcast %294 : vector<16x1xf32> to vector<16x16xf32>
    %296 = arith.mulf %287, %295 : vector<16x16xf32>
    %cst_161 = arith.constant dense<0.000000e+00> : vector<16x32xf32>
    %297 = tpu.matmul %1, %273, %cst_161 {dimension_numbers = #tpu.dot_dimension_numbers<[1], [0], [0], [1], [0, 0, 1, 1], [], []>} : vector<16x32xf32>, vector<32x32xf32>, vector<16x32xf32> -> vector<16x32xf32>
    %298 = vector.broadcast %274 : vector<1x32xf32> to vector<16x32xf32>
    %299 = arith.addf %297, %298 : vector<16x32xf32>
    %cst_162 = arith.constant dense<0.000000e+00> : vector<16x32xf32>
    %300 = tpu.matmul %296, %299, %cst_162 {dimension_numbers = #tpu.dot_dimension_numbers<[1], [0], [0], [1], [0, 0, 1, 1], [], []>} : vector<16x16xf32>, vector<16x32xf32>, vector<16x32xf32> -> vector<16x32xf32>
    %301 = arith.addf %268, %300 : vector<16x32xf32>
    %c0_163 = arith.constant 0 : index
    %c88 = arith.constant 88 : index
    %302 = vector.load %arg5[%c0_163, %c88] : memref<136x128xf32, #tpu.memory_space<vmem>>, vector<32x8xf32>
    %c128_164 = arith.constant 128 : index
    %c88_165 = arith.constant 88 : index
    %303 = vector.load %arg5[%c128_164, %c88_165] : memref<136x128xf32, #tpu.memory_space<vmem>>, vector<1x8xf32>
    %c0_166 = arith.constant 0 : index
    %c120 = arith.constant 120 : index
    %304 = vector.load %arg5[%c0_166, %c120] : memref<136x128xf32, #tpu.memory_space<vmem>>, vector<32x8xf32>
    %c128_167 = arith.constant 128 : index
    %c120_168 = arith.constant 120 : index
    %305 = vector.load %arg5[%c128_167, %c120_168] : memref<136x128xf32, #tpu.memory_space<vmem>>, vector<1x8xf32>
    %c64_169 = arith.constant 64 : index
    %c96_170 = arith.constant 96 : index
    %306 = vector.load %arg5[%c64_169, %c96_170] : memref<136x128xf32, #tpu.memory_space<vmem>>, vector<32x32xf32>
    %c130_171 = arith.constant 130 : index
    %c96_172 = arith.constant 96 : index
    %307 = vector.load %arg5[%c130_171, %c96_172] : memref<136x128xf32, #tpu.memory_space<vmem>>, vector<1x32xf32>
    %cst_173 = arith.constant dense<0.000000e+00> : vector<16x8xf32>
    %308 = tpu.matmul %203, %302, %cst_173 {dimension_numbers = #tpu.dot_dimension_numbers<[1], [0], [0], [1], [0, 0, 1, 1], [], []>} : vector<16x32xf32>, vector<32x8xf32>, vector<16x8xf32> -> vector<16x8xf32>
    %309 = vector.broadcast %303 : vector<1x8xf32> to vector<16x8xf32>
    %310 = arith.addf %308, %309 : vector<16x8xf32>
    %cst_174 = arith.constant dense<0.000000e+00> : vector<16x8xf32>
    %311 = tpu.matmul %1, %304, %cst_174 {dimension_numbers = #tpu.dot_dimension_numbers<[1], [0], [0], [1], [0, 0, 1, 1], [], []>} : vector<16x32xf32>, vector<32x8xf32>, vector<16x8xf32> -> vector<16x8xf32>
    %312 = vector.broadcast %305 : vector<1x8xf32> to vector<16x8xf32>
    %313 = arith.addf %311, %312 : vector<16x8xf32>
    "tpu.trace_start"() <{level = 10 : i32, message = "td,sd->ts"}> : () -> ()
    %cst_175 = arith.constant dense<0.000000e+00> : vector<16x16xf32>
    %314 = tpu.matmul %310, %313, %cst_175 {dimension_numbers = #tpu.dot_dimension_numbers<[1], [1], [0], [0], [0, 0, 1, 0], [], []>} : vector<16x8xf32>, vector<16x8xf32>, vector<16x16xf32> -> vector<16x16xf32>
    "tpu.trace_stop"() : () -> ()
    %315 = arith.addf %314, %3 : vector<16x16xf32>
    %cst_176 = arith.constant dense<0xFF800000> : vector<16xf32>
    %316 = vector.multi_reduction <maximumf>, %315, %cst_176 [1] : vector<16x16xf32> to vector<16xf32>
    %317 = vector.shape_cast %316 : vector<16xf32> to vector<16x1xf32>
    %318 = vector.broadcast %317 : vector<16x1xf32> to vector<16x16xf32>
    %319 = arith.subf %315, %318 : vector<16x16xf32>
    %320 = math.exp %319 : vector<16x16xf32>
    %cst_177 = arith.constant dense<0.000000e+00> : vector<16xf32>
    %321 = vector.multi_reduction <add>, %320, %cst_177 [1] : vector<16x16xf32> to vector<16xf32>
    %322 = vector.shape_cast %321 : vector<16xf32> to vector<16x1xf32>
    %323 = tpu.reciprocal %322 {approx = true} : vector<16x1xf32> -> vector<16x1xf32>
    %324 = arith.mulf %322, %323 : vector<16x1xf32>
    %cst_178 = arith.constant 2.000000e+00 : f32
    %325 = vector.broadcast %cst_178 : f32 to vector<16x1xf32>
    %326 = arith.subf %325, %324 : vector<16x1xf32>
    %327 = arith.mulf %323, %326 : vector<16x1xf32>
    %328 = vector.broadcast %327 : vector<16x1xf32> to vector<16x16xf32>
    %329 = arith.mulf %320, %328 : vector<16x16xf32>
    %cst_179 = arith.constant dense<0.000000e+00> : vector<16x32xf32>
    %330 = tpu.matmul %1, %306, %cst_179 {dimension_numbers = #tpu.dot_dimension_numbers<[1], [0], [0], [1], [0, 0, 1, 1], [], []>} : vector<16x32xf32>, vector<32x32xf32>, vector<16x32xf32> -> vector<16x32xf32>
    %331 = vector.broadcast %307 : vector<1x32xf32> to vector<16x32xf32>
    %332 = arith.addf %330, %331 : vector<16x32xf32>
    %cst_180 = arith.constant dense<0.000000e+00> : vector<16x32xf32>
    %333 = tpu.matmul %329, %332, %cst_180 {dimension_numbers = #tpu.dot_dimension_numbers<[1], [0], [0], [1], [0, 0, 1, 1], [], []>} : vector<16x16xf32>, vector<16x32xf32>, vector<16x32xf32> -> vector<16x32xf32>
    %334 = arith.addf %301, %333 : vector<16x32xf32>
    %335 = arith.addf %176, %334 : vector<16x32xf32>
    %336 = vector.broadcast %5 : vector<1x32xf32> to vector<16x32xf32>
    %337 = arith.addf %335, %336 : vector<16x32xf32>
    %cst_181 = arith.constant dense<0.000000e+00> : vector<16xf32>
    %338 = vector.multi_reduction <add>, %337, %cst_181 [1] : vector<16x32xf32> to vector<16xf32>
    %339 = vector.shape_cast %338 : vector<16xf32> to vector<16x1xf32>
    %cst_182 = arith.constant 3.200000e+01 : f32
    %340 = vector.broadcast %cst_182 : f32 to vector<16x1xf32>
    %341 = arith.divf %339, %340 : vector<16x1xf32>
    %342 = vector.broadcast %341 : vector<16x1xf32> to vector<16x32xf32>
    %343 = arith.subf %337, %342 : vector<16x32xf32>
    %344 = arith.mulf %343, %343 : vector<16x32xf32>
    %cst_183 = arith.constant dense<0.000000e+00> : vector<16xf32>
    %345 = vector.multi_reduction <add>, %344, %cst_183 [1] : vector<16x32xf32> to vector<16xf32>
    %346 = vector.shape_cast %345 : vector<16xf32> to vector<16x1xf32>
    %cst_184 = arith.constant 0.0322580636 : f32
    %347 = vector.broadcast %cst_184 : f32 to vector<16x1xf32>
    %348 = arith.mulf %346, %347 : vector<16x1xf32>
    %349 = math.sqrt %348 : vector<16x1xf32>
    %350 = vector.broadcast %341 : vector<16x1xf32> to vector<16x32xf32>
    %351 = arith.subf %337, %350 : vector<16x32xf32>
    %352 = vector.broadcast %11 : vector<1x32xf32> to vector<16x32xf32>
    %353 = arith.mulf %352, %351 : vector<16x32xf32>
    %cst_185 = arith.constant 9.99999997E-7 : f32
    %354 = vector.broadcast %cst_185 : f32 to vector<16x1xf32>
    %355 = arith.addf %349, %354 : vector<16x1xf32>
    %356 = tpu.reciprocal %355 {approx = true} : vector<16x1xf32> -> vector<16x1xf32>
    %357 = arith.mulf %355, %356 : vector<16x1xf32>
    %cst_186 = arith.constant 2.000000e+00 : f32
    %358 = vector.broadcast %cst_186 : f32 to vector<16x1xf32>
    %359 = arith.subf %358, %357 : vector<16x1xf32>
    %360 = arith.mulf %356, %359 : vector<16x1xf32>
    %361 = vector.broadcast %360 : vector<16x1xf32> to vector<16x32xf32>
    %362 = arith.mulf %353, %361 : vector<16x32xf32>
    %363 = vector.broadcast %12 : vector<1x32xf32> to vector<16x32xf32>
    %364 = arith.addf %362, %363 : vector<16x32xf32>
    %cst_187 = arith.constant dense<0.000000e+00> : vector<16x64xf32>
    %365 = tpu.matmul %364, %14, %cst_187 {dimension_numbers = #tpu.dot_dimension_numbers<[1], [0], [0], [1], [0, 0, 1, 1], [], []>} : vector<16x32xf32>, vector<32x64xf32>, vector<16x64xf32> -> vector<16x64xf32>
    %366 = vector.broadcast %13 : vector<1x64xf32> to vector<16x64xf32>
    %367 = arith.addf %365, %366 : vector<16x64xf32>
    %cst_188 = arith.constant 0.000000e+00 : f32
    %368 = vector.broadcast %cst_188 : f32 to vector<16x64xf32>
    %369 = arith.maximumf %367, %368 : vector<16x64xf32>
    "tpu.trace_start"() <{level = 10 : i32, message = "rf,df->rd"}> : () -> ()
    %cst_189 = arith.constant dense<0.000000e+00> : vector<16x32xf32>
    %370 = tpu.matmul %369, %15, %cst_189 {dimension_numbers = #tpu.dot_dimension_numbers<[1], [1], [0], [0], [0, 0, 1, 0], [], []>} : vector<16x64xf32>, vector<32x64xf32>, vector<16x32xf32> -> vector<16x32xf32>
    "tpu.trace_stop"() : () -> ()
    %371 = vector.broadcast %6 : vector<1x32xf32> to vector<16x32xf32>
    %372 = arith.addf %370, %371 : vector<16x32xf32>
    %373 = arith.addf %337, %372 : vector<16x32xf32>
    %c0_190 = arith.constant 0 : index
    %c0_191 = arith.constant 0 : index
    %374 = vector.load %arg6[%c0_190, %c0_191] : memref<16x32xf32, #tpu.memory_space<vmem>>, vector<16x32xf32>
    tpu.vector_store %arg6[%c0_190, %c0_191], %373 {strides = array<i32>} : memref<16x32xf32, #tpu.memory_space<vmem>>, vector<16x32xf32>,
    return
  }
  func.func @transform_0(%arg0: i32) -> (i32, i32) {
    %c0_i32 = arith.constant 0 : i32
    %c0_i32_0 = arith.constant 0 : i32
    %c0_i32_1 = arith.constant 0 : i32
    return %c0_i32, %c0_i32_0 : i32, i32
  }
  func.func @transform_1(%arg0: i32) -> (i32, i32) {
    %c0_i32 = arith.constant 0 : i32
    %c0_i32_0 = arith.constant 0 : i32
    %c0_i32_1 = arith.constant 0 : i32
    return %c0_i32, %c0_i32_0 : i32, i32
  }
  func.func @transform_2(%arg0: i32) -> (i32, i32) {
    %c0_i32 = arith.constant 0 : i32
    %c0_i32_0 = arith.constant 0 : i32
    %c0_i32_1 = arith.constant 0 : i32
    return %c0_i32, %c0_i32_0 : i32, i32
  }
  func.func @transform_3(%arg0: i32) -> (i32, i32) {
    %c0_i32 = arith.constant 0 : i32
    %c0_i32_0 = arith.constant 0 : i32
    %c0_i32_1 = arith.constant 0 : i32
    return %c0_i32, %c0_i32_0 : i32, i32
  }
  func.func @transform_4(%arg0: i32) -> (i32, i32) {
    %c0_i32 = arith.constant 0 : i32
    %c0_i32_0 = arith.constant 0 : i32
    %c0_i32_1 = arith.constant 0 : i32
    return %c0_i32, %c0_i32_0 : i32, i32
  }
  func.func @transform_5(%arg0: i32) -> (i32, i32) {
    %c0_i32 = arith.constant 0 : i32
    %c0_i32_0 = arith.constant 0 : i32
    %c0_i32_1 = arith.constant 0 : i32
    return %c0_i32, %c0_i32_0 : i32, i32
  }
}

</mosaic_0001>

<bundles_post_ra>
// kernel: tpu_custom_call.1
= control target key start
LH: loop header
LB: loop body
LE: loop exit
PB: predicated region body
PF: predicated region fallthrough
CT: control target
= control target key end

     0   :  { %10 = vsyncpa [#allocation3], 0  ;;  %s6642_s0 = inlined_call_operand.hbm [shape: f32[16,32], index: 0, kind: input, shape index: {}]   ;;  %s6643_s1 = inlined_call_operand.hbm [shape: f32[16,32], index: 1, kind: input, shape index: {}]   ;;  %s6644_s2 = inlined_call_operand.hbm [shape: f32[16,16], index: 2, kind: input, shape index: {}]   ;;  %s6645_s3 = inlined_call_operand.hbm [shape: f32[16,16], index: 3, kind: input, shape index: {}]   ;;  %s6646_s4 = inlined_call_operand.hbm [shape: f32[136,128], index: 4, kind: input, shape index: {}]   ;;  %s6647_s5 = inlined_call_operand.hbm [shape: f32[16,32], index: 5, kind: output, shape index: {}]  }
   0x1   :  { %11 = vsyncpa [#allocation6], 0 }
   0x2   :  { %12 = vsyncpa [#allocation9], 0 }
   0x3   :  { %13 = vsyncpa [#allocation4], 0  ;;  %s5980_s18 = smov [#allocation5]   ;;  %s5981_s20 = smov [#allocation8]  }
   0x4   :  { %s31_s19 = sshll.u32 %s5980_s18, 4  ;;  %s55_s21 = sshll.u32 %s5981_s20, 4  ;;  %s32_s19 = int_to_ptr.vmem [resolvable:$true] %s31_s19  ;;  %s6032_s21 = int_to_ptr.vmem [resolvable:$true] %s55_s21 }
   0x5   :  { %s5840_s24 = scalar_lea.hbm %s6643_s1, 256 }
   0x6   :  { %p5841_p0 = scmp.ne.s32.totalorder %s6643_s1, %s5840_s24  ;;  %p5844_p1 = scmp.lt.u32.totalorder %s5840_s24, %s6643_s1 }
   0x8   :  { %p5846_p2 = pnand %p5844_p1, %p5841_p0 }
   0xa   :  { %5849 = shalt.err (!%p5846_p2)
}
   0xb   :  { %s5850_s29 = scalar_lea.vmem %s32_s19, 256  ;;  %p5855_p4 = scmp.lt.s32.totalorder %s32_s19, %s32_s19 }
   0xc   :  { %p5851_p3 = scmp.ne.s32.totalorder %s32_s19, %s5850_s29  ;;  %p5856_p5 = scmp.lt.s32.totalorder %s5850_s29, %s5850_s29 }
   0xe   :  { %p5857_p6 = por %p5856_p5, %p5855_p4 }
  0x10   :  { %p5858_p7 = pnand %p5857_p6, %p5851_p3 }
  0x12   :  { %5861 = shalt.err (!%p5858_p7)
}
  0x13   :  { %s5982_s30 = smov 128   ;;  %s5983_s6 = smov 8  }
  0x14   :  { %37 = dma.hbm_to_vmem [thread:$0]  %s6643_s1, 256, %s32_s19, [#allocation6], %s5982_s30, %s5982_s30, %s5983_s6  }
  0x15   :  { %s5862_s11 = scalar_lea.hbm %s6645_s3, 256 }
  0x16   :  { %p5863_p8 = scmp.ne.s32.totalorder %s6645_s3, %s5862_s11  ;;  %p5866_p9 = scmp.lt.u32.totalorder %s5862_s11, %s6645_s3 }
  0x18   :  { %p5868_p10 = pnand %p5866_p9, %p5863_p8 }
  0x1a   :  { %5871 = shalt.err (!%p5868_p10)
}
  0x1b   :  { %s5872_s16 = scalar_lea.vmem %s6032_s21, 256  ;;  %p5877_p12 = scmp.lt.s32.totalorder %s6032_s21, %s6032_s21 }
  0x1c   :  { %p5873_p11 = scmp.ne.s32.totalorder %s6032_s21, %s5872_s16  ;;  %p5878_p13 = scmp.lt.s32.totalorder %s5872_s16, %s5872_s16 }
  0x1e   :  { %p5879_p0 = por %p5878_p13, %p5877_p12 }
  0x20   :  { %p5880_p1 = pnand %p5879_p0, %p5873_p11 }
  0x22   :  { %5883 = shalt.err (!%p5880_p1)
}
  0x23   :  { %61 = dma.hbm_to_vmem [thread:$0]  %s6645_s3, 256, %s6032_s21, [#allocation9], %s5982_s30, %s5982_s30, %s5983_s6  }
  0x24   :  { %s5984_s18 = smov [#allocation2]   ;;  %s5985_s20 = smov [#allocation7]  }
  0x25   :  { %s19_s19 = sshll.u32 %s5984_s18, 4  ;;  %s43_s22 = sshll.u32 %s5985_s20, 4  ;;  %s20_s19 = int_to_ptr.vmem [resolvable:$true] %s19_s19  ;;  %s6069_s22 = int_to_ptr.vmem [resolvable:$true] %s43_s22 }
  0x26   :  { %s5884_s25 = scalar_lea.hbm %s6642_s0, 256 }
  0x27   :  { %p5885_p2 = scmp.ne.s32.totalorder %s6642_s0, %s5884_s25  ;;  %p5888_p3 = scmp.lt.u32.totalorder %s5884_s25, %s6642_s0 }
  0x29   :  { %p5890_p4 = pnand %p5888_p3, %p5885_p2 }
  0x2b   :  { %5893 = shalt.err (!%p5890_p4)
}
  0x2c   :  { %s5894_s3 = scalar_lea.vmem %s20_s19, 256  ;;  %p5899_p6 = scmp.lt.s32.totalorder %s20_s19, %s20_s19 }
  0x2d   :  { %p5895_p5 = scmp.ne.s32.totalorder %s20_s19, %s5894_s3  ;;  %p5900_p7 = scmp.lt.s32.totalorder %s5894_s3, %s5894_s3 }
  0x2f   :  { %p5901_p8 = por %p5900_p7, %p5899_p6 }
  0x31   :  { %p5902_p9 = pnand %p5901_p8, %p5895_p5 }
  0x33   :  { %5905 = shalt.err (!%p5902_p9)
}
  0x34   :  { %25 = dma.hbm_to_vmem [thread:$0]  %s6642_s0, 256, %s20_s19, [#allocation3], %s5982_s30, %s5982_s30, %s5983_s6  }
  0x35   :  { %s5906_s10 = scalar_lea.hbm %s6644_s2, 256 }
  0x36   :  { %p5907_p10 = scmp.ne.s32.totalorder %s6644_s2, %s5906_s10  ;;  %p5910_p11 = scmp.lt.u32.totalorder %s5906_s10, %s6644_s2 }
  0x38   :  { %p5912_p12 = pnand %p5910_p11, %p5907_p10 }
  0x3a   :  { %5915 = shalt.err (!%p5912_p12)
}
  0x3b   :  { %s5916_s15 = scalar_lea.vmem %s6069_s22, 256  ;;  %p5921_p0 = scmp.lt.s32.totalorder %s6069_s22, %s6069_s22 }
  0x3c   :  { %p5917_p13 = scmp.ne.s32.totalorder %s6069_s22, %s5916_s15  ;;  %p5922_p1 = scmp.lt.s32.totalorder %s5916_s15, %s5916_s15 }
  0x3e   :  { %p5923_p2 = por %p5922_p1, %p5921_p0 }
  0x40   :  { %p5924_p3 = pnand %p5923_p2, %p5917_p13 }
  0x42   :  { %5927 = shalt.err (!%p5924_p3)
}
  0x43   :  { %49 = dma.hbm_to_vmem [thread:$0]  %s6644_s2, 256, %s6069_s22, [#allocation6], %s5982_s30, %s5982_s30, %s5983_s6  }
  0x44   :  { %s5986_s1 = smov [#allocation10]   ;;  %s5928_s20 = scalar_lea.hbm %s6646_s4, 2176 }
  0x45   :  { %s67_s17 = sshll.u32 %s5986_s1, 4  ;;  %p5929_p4 = scmp.ne.s32.totalorder %s6646_s4, %s5928_s20  ;;  %s68_s17 = int_to_ptr.vmem [resolvable:$true] %s67_s17 }
  0x46   :  { %p5932_p5 = scmp.lt.u32.totalorder %s5928_s20, %s6646_s4 }
  0x48   :  { %p5934_p6 = pnand %p5932_p5, %p5929_p4 }
  0x4a   :  { %5937 = shalt.err (!%p5934_p6)
}
  0x4b   :  { %s5938_s27 = scalar_lea.vmem %s68_s17, 2176  ;;  %p5943_p8 = scmp.lt.s32.totalorder %s68_s17, %s68_s17 }
  0x4c   :  { %p5939_p7 = scmp.ne.s32.totalorder %s68_s17, %s5938_s27  ;;  %p5944_p9 = scmp.lt.s32.totalorder %s5938_s27, %s5938_s27 }
  0x4e   :  { %p5945_p10 = por %p5944_p9, %p5943_p8 }
  0x50   :  { %p5946_p11 = pnand %p5945_p10, %p5939_p7 }
  0x52   :  { %5949 = shalt.err (!%p5946_p11)
}
  0x53   :  { %73 = dma.hbm_to_vmem [thread:$0]  %s6646_s4, 2176, %s68_s17, [#allocation9], %s5982_s30, %s5982_s30, %s5983_s6  }
  0x54   :  { %5972 = dma.done.wait [#allocation3], 256  }
  0x55   :  { %5973 = vsyncadd [#allocation3], 4294967040 }
  0x56   :  { %5974 = dma.done.wait [#allocation6], 512  }
  0x57   :  { %5975 = vsyncadd [#allocation6], 4294966784 }
  0x58   :  { %5976 = dma.done.wait [#allocation9], 2432  }
  0x59   :  { %5977 = vsyncadd [#allocation9], 4294964864  ;;  %vm104_vm0 = vcmask 261120   ;;  %v89_v0 = vld [vmem:[#allocation2] sm:$0xff]  ;;  %v90_v1 = vld [vmem:[#allocation2 + $0x8] sm:$0xff]  ;;  %s5987_s4 = smov 96  }
  0x5a   :  { %v105_v2 = vsel %vm104_vm0, %v89_v0, 0.0  ;;  %v108_v3 = vsel %vm104_vm0, %v90_v1, 0.0  ;;  %v4461_v14 = vld [vmem:[#allocation10 + $0x84] ss:$0 sm:$0xff]  ;;  %v177_v16 = vld [vmem:[#allocation10 + $0x8] sm:$0xff]  ;;  %v178_v18 = vld [vmem:[#allocation10 + $0x10] sm:$0xff] }
  0x5b   :  { %106 = vadd.xlane.f32.xlu0 %v105_v2  ;;  %v176_v15 = vld [vmem:[#allocation10] sm:$0xff]  ;;  %v179_v19 = vld [vmem:[#allocation10 + $0x18] sm:$0xff]  ;;  %v572_v51 = vld [vmem:[#allocation10 + $0x28] sm:$0xff]  ;;  %s5988_s28 = smov 32   ;;  %s5989_s29 = smov 88   ;;  %vm370_vm5 = vcmask 64512  }
  0x5c   :  { %v6128_v17 = vpack.i.bf16 %v177_v16, %v176_v15  ;;  %v6132_v20 = vpack.i.bf16 %v179_v19, %v178_v18  ;;  %v5201_v21 = vpack.c.bf16 %v177_v16, %v176_v15  ;;  %v5205_v49 = vpack.c.bf16 %v179_v19, %v178_v18  ;;  %v571_v50 = vld [vmem:[#allocation10 + $0x20] sm:$0xff]  ;;  %s5990_s3 = smov 120   ;;  %vm6195_vm6 = vmpackc.low %vm370_vm5, %vm370_vm5  ;;  %s5991_s21 = smov 80  }
  0x5d   :  { %v5223_v52 = vpack.c.bf16 %v572_v51, %v571_v50  ;;  %v6138_v55 = vld [vmem:[#allocation10 + $0x83] ss:$0 sm:$0xff]  ;;  %vm458_vm7 = vcmask 130048   ;;  %s5992_s7 = smov 112   ;;  %s5993_s8 = smov 64  }
  0x5e   :  { %5202 = vmatprep.subr.bf16.mxu0 %v5201_v21  ;;  %s5994_s9 = smov 104   ;;  %s5995_s10 = smov 72  }
  0x5f   :  { %109 = vadd.xlane.f32.xlu0 %v108_v3  ;;  %5204 = vmatpush3.bf16.msra.mxu0 %v5201_v21  ;;  %v6144_v3 = vld [vmem:[#allocation10 + $0x80] ss:$0 sm:$0xff]  ;;  %s5996_s11 = smov 24   ;;  %s5997_s12 = smov 56  }
  0x60   :  { %5206 = vmatprep.subr.bf16.mxu0 %v5205_v49  ;;  %s5998_s13 = smov 16   ;;  %s5999_s14 = smov 48  }
  0x61   :  { %s6000_s15 = smov 40   ;;  %s6001_s0 = smov [#allocation11]  }
  0x62   :  { %s4446_s16 = sshll.u32 %s6001_s0, 4  ;;  %s4447_s16 = int_to_ptr.vmem [resolvable:$true] %s4446_s16 }
  0x63   :  { %5208 = vmatpush3.bf16.msra.mxu0 %v5205_v49  ;;  %s5950_s1 = scalar_lea.vmem %s4447_s16, 256  ;;  %p5955_p13 = scmp.lt.s32.totalorder %s4447_s16, %s4447_s16 }
  0x64   :  { %p5951_p12 = scmp.ne.s32.totalorder %s4447_s16, %s5950_s1  ;;  %p5956_p0 = scmp.lt.s32.totalorder %s5950_s1, %s5950_s1 }
  0x66   :  { %p5957_p1 = por %p5956_p0, %p5955_p13 }
  0x68   :  { %p5958_p2 = pnand %p5957_p1, %p5951_p12 }
  0xe8   :  { %v107_v4 = vpop.xlane.xlu0 %106 }
  0xe9   :  { %v112_v5 = vmul.f32 0.03125, %v107_v4 }
  0xeb   :  { %v114_v6 = vsub.f32 %v89_v0, %v112_v5  ;;  %v573_v5 = vld [vmem:[#allocation10 + $0x30] sm:$0xff] }
  0xec   :  { %v110_v7 = vpop.xlane.xlu0 %109 }
  0xed   :  { %v113_v8 = vmul.f32 0.03125, %v110_v7  ;;  %146 = vrot.lane.b32.xlu0 %v114_v6, %s5987_s4  ;;  %v116_v9 = vmul.f32 %v114_v6, %v114_v6  ;;  %v574_v6 = vld [vmem:[#allocation10 + $0x38] sm:$0xff]  ;;  %v6155_v7 = vpack.i.bf16 %v572_v51, %v571_v50 }
  0xef   :  { %v115_v10 = vsub.f32 %v90_v1, %v113_v8  ;;  %v118_v11 = vsel %vm104_vm0, %v116_v9, 0.0  ;;  %v6158_v8 = vpack.i.bf16 %v574_v6, %v573_v5 }
  0xf0   :  { %119 = vadd.xlane.f32.xlu1 %v118_v11 }
  0xf1   :  { %v117_v12 = vmul.f32 %v115_v10, %v115_v10  ;;  %5533 = vrot.lane.b32.xlu0 %v6132_v20, %s5987_s4 }
  0xf3   :  { %v121_v13 = vsel %vm104_vm0, %v117_v12, 0.0 }
  0xf4   :  { %122 = vadd.xlane.f32.xlu1 %v121_v13 }
 0x105   :  { %148 = vrot.lane.b32.xlu1 %v115_v10, %s5987_s4  ;;  %v5227_v10 = vpack.c.bf16 %v574_v6, %v573_v5 }
 0x109   :  { %171 = vrot.lane.b32.xlu1 %v4461_v14, %s5987_s4 }
 0x10d   :  { %5528 = vrot.lane.b32.xlu1 %v6128_v17, %s5987_s4 }
 0x15f   :  { %v147_v34 = vpop.permute.xlu0 %146 }
 0x160   :  { %v152_v58 = vmul.f32 %v6138_v55, %v147_v34 }
 0x163   :  { %v5534_v45 = vpop.permute.xlu0 %5533 }
 0x164   :  { %v5536_v46 = vunpack.i.h.bf16 %v5534_v45  ;;  %v5535_v47 = vunpack.i.l.bf16 %v5534_v45 }
 0x166   :  { %v5213_v48 = vpack.c.bf16 %v5536_v46, %v5535_v47 }
 0x17d   :  { %v120_v22 = vpop.xlane.xlu1 %119 }
 0x17e   :  { %v124_v23 = vmul.f32 0.032258064, %v120_v22 }
 0x180   :  { %5747 = vrsqrt.f32 %v124_v23  ;;  %vm128_vm1 = vcmp.eq.f32.partialorder %v124_v23, inf  ;;  %v131_v30 = vand.u32 2147483648, %v124_v23  ;;  %vm130_vm2 = vcmp.eq.f32.partialorder %v124_v23, 0.0 }
 0x181   :  { %v123_v24 = vpop.xlane.xlu1 %122 }
 0x182   :  { %v125_v25 = vmul.f32 0.032258064, %v123_v24 }
 0x184   :  { %5749 = vrsqrt.f32 %v125_v25  ;;  %vm135_vm3 = vcmp.eq.f32.partialorder %v125_v25, inf  ;;  %v138_v38 = vand.u32 2147483648, %v125_v25  ;;  %vm137_vm4 = vcmp.eq.f32.partialorder %v125_v25, 0.0 }
 0x185   :  { %v149_v26 = vpop.permute.xlu1 %148 }
 0x186   :  { %v153_v0 = vmul.f32 %v6138_v55, %v149_v26 }
 0x189   :  { %v6136_v28 = vpop.permute.xlu1 %171 }
 0x18a   :  { %v5748_v27 = vpop.eup %5747 }
 0x18b   :  { %v127_v29 = vmul.f32 %v5748_v27, %v124_v23 }
 0x18d   :  { %v129_v31 = vsel %vm128_vm1, %v124_v23, %v127_v29  ;;  %v5529_v37 = vpop.permute.xlu1 %5528  ;;  %vm4347_vm1 = vcmask 523264  }
 0x18e   :  { %v5750_v32 = vpop.eup %5749  ;;  %v132_v33 = vsel %vm130_vm2, %v131_v30, %v129_v31  ;;  %v5531_v39 = vunpack.i.h.bf16 %v5529_v37  ;;  %v5530_v40 = vunpack.i.l.bf16 %v5529_v37  ;;  %vm6604_vm2 = vmpackc.low %vm4347_vm1, %vm4347_vm1 }
 0x18f   :  { %v134_v35 = vmul.f32 %v5750_v32, %v125_v25  ;;  %v154_v36 = vadd.f32 1e-06, %v132_v33 }
 0x190   :  { %v5209_v43 = vpack.c.bf16 %v5531_v39, %v5530_v40 }
 0x191   :  { %v136_v41 = vsel %vm135_vm3, %v125_v25, %v134_v35  ;;  %5751 = vrcp.f32 %v154_v36 }
 0x192   :  { %v139_v42 = vsel %vm137_vm4, %v138_v38, %v136_v41  ;;  %5210 = vmatprep.subr.bf16.mxu1 %v5209_v43 }
 0x193   :  { %v155_v44 = vadd.f32 1e-06, %v139_v42  ;;  %5212 = vmatpush3.bf16.msra.mxu1 %v5209_v43 }
 0x194   :  { %5214 = vmatprep.subr.bf16.mxu1 %v5213_v48 }
 0x195   :  { %5753 = vrcp.f32 %v155_v44 }
 0x197   :  { %5216 = vmatpush3.bf16.msra.mxu1 %v5213_v48  ;;  %v6202_v48 = vld [vmem:[#allocation10 + $0x81] ss:$0 sm:$0xff] }
 0x198   :  { %5224 = vmatprep.subr.bf16.mxu1 %v5223_v52 }
 0x19b   :  { %v5752_v53 = vpop.eup %5751 }
 0x19c   :  { %v158_v54 = vmul.f32 %v5752_v53, %v154_v36 }
 0x19e   :  { %v160_v56 = vsub.f32 2.0, %v158_v54 }
 0x19f   :  { %v5754_v57 = vpop.eup %5753 }
 0x1a0   :  { %v159_v59 = vmul.f32 %v5754_v57, %v155_v44  ;;  %v162_v60 = vmul.f32 %v5752_v53, %v160_v56 }
 0x1a2   :  { %v161_v61 = vsub.f32 2.0, %v159_v59  ;;  %v164_v62 = vmul.f32 %v162_v60, %v152_v58 }
 0x1a4   :  { %v163_v63 = vmul.f32 %v5754_v57, %v161_v61  ;;  %v174_v1 = vadd.f32 %v6136_v28, %v164_v62 }
 0x1a6   :  { %v165_v2 = vmul.f32 %v163_v63, %v153_v0  ;;  %192 = vrot.lane.b32.xlu1 %v174_v1, %s5988_s28 }
 0x1a8   :  { %v175_v4 = vadd.f32 %v6136_v28, %v165_v2 }
 0x1aa   :  { %194 = vrot.lane.b32.xlu0 %v175_v4, %s5988_s28  ;;  %292 = vrot.lane.b32.xlu1 %v6144_v3, %s5987_s4 }
 0x1ae   :  { %5538 = vrot.lane.b32.xlu0 %v6128_v17, %s5989_s29  ;;  %5543 = vrot.lane.b32.xlu1 %v6132_v20, %s5989_s29 }
 0x1b2   :  { %5548 = vrot.lane.b32.xlu0 %v6128_v17, %s5990_s3  ;;  %5553 = vrot.lane.b32.xlu1 %v6132_v20, %s5990_s3 }
 0x1b6   :  { %687 = vrot.lane.b32.xlu0 %v6144_v3, %s5989_s29  ;;  %597 = vrot.lane.b32.xlu1 %v6144_v3, %s5990_s3 }
 0x1ba   :  { %5558 = vrot.lane.b32.xlu0 %v6155_v7, %s5987_s4  ;;  %5563 = vrot.lane.b32.xlu1 %v6158_v8, %s5987_s4 }
 0x218   :  { %v6164_v9 = vpop.permute.xlu1 %192 }
 0x219   :  { %4811 = vmatprep.mubr.msk.f32.mxu0 %vm104_vm0, %v6164_v9  ;;  %4822 = vmatprep.mubr.msk.f32.mxu1 %vm104_vm0, %v6164_v9 }
 0x21c   :  { %v6170_v11 = vpop.permute.xlu0 %194  ;;  %v293_v12 = vpop.permute.xlu1 %292 }
 0x21d   :  { %4812 = vmatmul.mubr.msk.f32.vlgmr.msra.gmra.mrb[0].mxu0 %vm104_vm0, %v6170_v11  ;;  %4823 = vmatmul.mubr.msk.f32.vlgmr.msra.gmra.mrb[0].mxu1 %vm104_vm0, %v6170_v11 }
 0x21e   :  { %5226 = vmatpush3.bf16.msra.mxu1 %v5223_v52  ;;  %4840 = vmatprep.mubr.msk.f32.mxu1 %vm104_vm0, %v6164_v9 }
 0x21f   :  { %5228 = vmatprep.subr.bf16.mxu1 %v5227_v10 }
 0x220   :  { %v5539_v13 = vpop.permute.xlu0 %5538  ;;  %v5544_v14 = vpop.permute.xlu1 %5543 }
 0x221   :  { %v5541_v15 = vunpack.i.h.bf16 %v5539_v13  ;;  %v5540_v16 = vunpack.i.l.bf16 %v5539_v13  ;;  %v5546_v18 = vunpack.i.h.bf16 %v5544_v14  ;;  %v5545_v19 = vunpack.i.l.bf16 %v5544_v14  ;;  %v6228_v13 = vld [vmem:[#allocation7 + $0x8] sm:$0xff] }
 0x222   :  { %5230 = vmatpush3.bf16.msra.mxu1 %v5227_v10 }
 0x223   :  { %v5239_v21 = vpack.c.bf16 %v5541_v15, %v5540_v16  ;;  %v5243_v22 = vpack.c.bf16 %v5546_v18, %v5545_v19  ;;  %v6230_v15 = vld [vmem:[#allocation7] sm:$0xff] }
 0x224   :  { %v5549_v23 = vpop.permute.xlu0 %5548  ;;  %v5554_v24 = vpop.permute.xlu1 %5553 }
 0x225   :  { %4841 = vmatmul.mubr.msk.f32.vlgmr.msra.gmra.mrb[2].mxu1 %vm104_vm0, %v6170_v11  ;;  %5240 = vmatprep.subr.bf16.mxu1 %v5239_v21  ;;  %v5551_v36 = vunpack.i.h.bf16 %v5549_v23  ;;  %v5550_v37 = vunpack.i.l.bf16 %v5549_v23  ;;  %v5556_v49 = vunpack.i.h.bf16 %v5554_v24  ;;  %v5555_v50 = vunpack.i.l.bf16 %v5554_v24 }
 0x226   :  { %4862 = vmatprep.mubr.msk.f32.mxu1 %vm104_vm0, %v6164_v9  ;;  %5242 = vmatpush3.bf16.msra.mxu1 %v5239_v21 }
 0x227   :  { %5244 = vmatprep.subr.bf16.mxu1 %v5243_v22  ;;  %v5231_v47 = vpack.c.bf16 %v5551_v36, %v5550_v37  ;;  %v5235_v58 = vpack.c.bf16 %v5556_v49, %v5555_v50 }
 0x228   :  { %v688_v25 = vpop.permute.xlu0 %687  ;;  %v6182_v26 = vpop.permute.xlu1 %597 }
 0x22a   :  { %5246 = vmatpush3.bf16.msra.mxu1 %v5243_v22 }
 0x22c   :  { %v5559_v27 = vpop.permute.xlu0 %5558  ;;  %v5564_v29 = vpop.permute.xlu1 %5563 }
 0x22d   :  { %v5561_v30 = vunpack.i.h.bf16 %v5559_v27  ;;  %v5560_v31 = vunpack.i.l.bf16 %v5559_v27  ;;  %4863 = vmatmul.mubr.msk.f32.vlgmr.msra.gmra.mrb[4].mxu1 %vm104_vm0, %v6170_v11  ;;  %v5566_v32 = vunpack.i.h.bf16 %v5564_v29  ;;  %v5565_v33 = vunpack.i.l.bf16 %v5564_v29 }
 0x22e   :  { %4880 = vmatprep.mubr.msk.f32.mxu1 %vm104_vm0, %v6164_v9 }
 0x22f   :  { %v5253_v34 = vpack.c.bf16 %v5561_v30, %v5560_v31  ;;  %v5257_v35 = vpack.c.bf16 %v5566_v32, %v5565_v33 }
 0x231   :  { %5254 = vmatprep.subr.bf16.mxu1 %v5253_v34 }
 0x232   :  { %5256 = vmatpush3.bf16.msra.mxu1 %v5253_v34 }
 0x233   :  { %5258 = vmatprep.subr.bf16.mxu1 %v5257_v35 }
 0x236   :  { %5260 = vmatpush3.bf16.msra.mxu1 %v5257_v35 }
 0x239   :  { %4881 = vmatmul.mubr.msk.f32.vlgmr.msra.gmra.mrb[6].mxu1 %vm104_vm0, %v6170_v11 }
 0x23a   :  { %4905 = vmatprep.mubr.msk.f32.mxu1 %vm104_vm0, %v6164_v9 }
 0x2f0   :  { %v4813_v38 = vpop.f32.mrb[0].mxu0  ;;  %v4824_v39 = vpop.f32.mrb[0].mxu1 }
 0x2f1   :  { %v367_v40 = vadd.f32 %v4824_v39, %v293_v12  ;;  %v266_v41 = vpop.f32.mrb[1].mxu0  ;;  %v361_v42 = vpop.f32.mrb[1].mxu1  ;;  %v272_v56 = vadd.f32 %v4813_v38, %v6144_v3 }
 0x2f2   :  { %v267_v43 = vadd.f32 %v6144_v3, %v266_v41  ;;  %v362_v44 = vadd.f32 %v361_v42, %v293_v12 }
 0x2f4   :  { %v5217_v46 = vpack.c.bf16 %v367_v40, %v362_v44  ;;  %4829 = vmatprep.mubr.msk.f32.mxu0 %vm370_vm5, %v267_v43 }
 0x2f6   :  { %5219 = vmatprep.subr.msk.bf16.mxu0 %vm6195_vm6, %v5217_v46 }
 0x2f7   :  { %5222 = vmatpush3.bf16.xpose.msk.msra.mxu0 %vm6195_vm6, %v5217_v46 }
 0x2f8   :  { %v4842_v51 = vpop.f32.mrb[2].mxu1  ;;  %5232 = vmatprep.subr.bf16.mxu0 %v5231_v47 }
 0x2f9   :  { %v563_v52 = vadd.f32 %v4842_v51, %v6202_v48  ;;  %v557_v53 = vpop.f32.mrb[3].mxu1 }
 0x2fa   :  { %v558_v54 = vadd.f32 %v6202_v48, %v557_v53 }
 0x2fc   :  { %v6209_v57 = vpack.c.bf16 %v563_v52, %v558_v54 }
 0x2fe   :  { %4830 = vmatmul.mubr.msk.f32.vlgmr.msra.gmra.mrb[2].mxu0 %vm370_vm5, %v272_v56 }
 0x2ff   :  { %5234 = vmatpush3.bf16.msra.mxu0 %v5231_v47  ;;  %4851 = vmatprep.mubr.msk.f32.mxu0 %vm104_vm0, %v6164_v9 }
 0x300   :  { %v4864_v59 = vpop.f32.mrb[4].mxu1  ;;  %5236 = vmatprep.subr.bf16.mxu0 %v5235_v58 }
 0x301   :  { %v762_v60 = vadd.f32 %v4864_v59, %v688_v25  ;;  %v756_v61 = vpop.f32.mrb[5].mxu1 }
 0x302   :  { %v757_v62 = vadd.f32 %v756_v61, %v688_v25 }
 0x303   :  { %5238 = vmatpush3.bf16.msra.mxu0 %v5235_v58 }
 0x304   :  { %v5247_v63 = vpack.c.bf16 %v762_v60, %v757_v62 }
 0x306   :  { %4852 = vmatmul.mubr.msk.f32.vlgmr.msra.gmra.mrb[4].mxu0 %vm104_vm0, %v6170_v11  ;;  %5249 = vmatprep.subr.msk.bf16.mxu0 %vm6195_vm6, %v5247_v63 }
 0x30c   :  { %5252 = vmatpush3.bf16.xpose.msk.msra.mxu0 %vm6195_vm6, %v5247_v63  ;;  %v6220_v0 = vpop.f32.mrb[6].mxu1 }
 0x30d   :  { %v6222_v1 = vpop.f32.mrb[7].mxu1 }
 0x3d1   :  { %v4831_v2 = vpop.f32.mrb[2].mxu0 }
 0x3d2   :  { %v449_v4 = vpop.f32.mrb[3].mxu0  ;;  %v455_v24 = vadd.f32 %v4831_v2, %v6228_v13 }
 0x3d3   :  { %v450_v22 = vadd.f32 %v449_v4, %v6230_v15 }
 0x3d5   :  { %v459_v25 = vsel %vm458_vm7, %v450_v22, -inf }
 0x3d9   :  { %v4853_v5 = vpop.f32.mrb[4].mxu0 }
 0x3da   :  { %v666_v6 = vpop.f32.mrb[5].mxu0  ;;  %v672_v12 = vadd.f32 %v4853_v5, %v6182_v26 }
 0x3db   :  { %v667_v10 = vadd.f32 %v666_v6, %v6182_v26  ;;  %v462_v26 = vsel %vm458_vm7, %v455_v24, -inf }
 0x3dd   :  { %4869 = vmatprep.mubr.msk.f32.mxu0 %vm370_vm5, %v667_v10 }
 0x3de   :  { %4870 = vmatmul.mubr.msk.f32.vlgmr.msra.gmra.mrb[6].mxu0 %vm370_vm5, %v672_v12 }
 0x4b1   :  { %v4871_v14 = vpop.f32.mrb[6].mxu0 }
 0x4b2   :  { %v849_v16 = vadd.f32 %v4871_v14, %v6228_v13  ;;  %v843_v18 = vpop.f32.mrb[7].mxu0 }
 0x4b3   :  { %v844_v19 = vadd.f32 %v843_v18, %v6230_v15 }
 0x4b4   :  { %v855_v21 = vsel %vm458_vm7, %v849_v16, -inf }
 0x4b5   :  { %856 = vmax.xlane.f32.xlu1 %v855_v21  ;;  %v852_v23 = vsel %vm458_vm7, %v844_v19, -inf }
 0x4b6   :  { %853 = vmax.xlane.f32.xlu0 %v852_v23 }
 0x4ba   :  { %460 = vmax.xlane.f32.xlu0 %v459_v25 }
 0x4be   :  { %463 = vmax.xlane.f32.xlu0 %v462_v26 }
 0x542   :  { %v857_v27 = vpop.xlane.xlu1 %856 }
 0x543   :  { %v859_v29 = vsub.f32 %v849_v16, %v857_v27  ;;  %v854_v30 = vpop.xlane.xlu0 %853 }
 0x544   :  { %v858_v32 = vsub.f32 %v844_v19, %v854_v30 }
 0x545   :  { %v862_v31 = vmul.f32 1.442695, %v859_v29 }
 0x546   :  { %v860_v35 = vmul.f32 1.442695, %v858_v32 }
 0x547   :  { %5755 = vpow2.f32 %v862_v31  ;;  %v461_v33 = vpop.xlane.xlu0 %460 }
 0x548   :  { %v465_v34 = vsub.f32 %v450_v22, %v461_v33 }
 0x54a   :  { %v467_v36 = vmul.f32 1.442695, %v465_v34 }
 0x54b   :  { %v464_v37 = vpop.xlane.xlu0 %463 }
 0x54c   :  { %5757 = vpow2.f32 %v467_v36  ;;  %v466_v38 = vsub.f32 %v455_v24, %v464_v37 }
 0x54d   :  { %5759 = vpow2.f32 %v860_v35 }
 0x54e   :  { %v469_v39 = vmul.f32 1.442695, %v466_v38 }
 0x550   :  { %5761 = vpow2.f32 %v469_v39 }
 0x551   :  { %v6240_v40 = vpop.eup %5755 }
 0x552   :  { %v867_v41 = vsel %vm458_vm7, %v6240_v40, 0.0 }
 0x553   :  { %868 = vadd.xlane.f32.xlu1 %v867_v41 }
 0x556   :  { %v6244_v42 = vpop.eup %5757 }
 0x557   :  { %v471_v43 = vsel %vm458_vm7, %v6244_v42, 0.0  ;;  %v6248_v44 = vpop.eup %5759 }
 0x558   :  { %472 = vadd.xlane.f32.xlu0 %v471_v43  ;;  %v864_v47 = vsel %vm458_vm7, %v6248_v44, 0.0 }
 0x55a   :  { %v6250_v46 = vpop.eup %5761 }
 0x55b   :  { %v474_v49 = vsel %vm458_vm7, %v6250_v46, 0.0 }
 0x55c   :  { %865 = vadd.xlane.f32.xlu0 %v864_v47  ;;  %475 = vadd.xlane.f32.xlu1 %v474_v49 }
 0x56d   :  { %5568 = vrot.lane.b32.xlu1 %v6128_v17, %s5991_s21 }
 0x571   :  { %5573 = vrot.lane.b32.xlu1 %v6132_v20, %s5991_s21 }
 0x572   :  { %901 = vrot.lane.b32.xlu0 %v6202_v48, %s5987_s4 }
 0x575   :  { %5578 = vrot.lane.b32.xlu1 %v6128_v17, %s5992_s7 }
 0x576   :  { %5583 = vrot.lane.b32.xlu0 %v6132_v20, %s5992_s7 }
 0x579   :  { %1262 = vrot.lane.b32.xlu1 %v6144_v3, %s5991_s21 }
 0x57a   :  { %1172 = vrot.lane.b32.xlu0 %v6144_v3, %s5992_s7 }
 0x57d   :  { %5588 = vrot.lane.b32.xlu1 %v6155_v7, %s5993_s8 }
 0x57e   :  { %5593 = vrot.lane.b32.xlu0 %v6128_v17, %s5994_s9 }
 0x581   :  { %5598 = vrot.lane.b32.xlu1 %v6158_v8, %s5993_s8 }
 0x582   :  { %5603 = vrot.lane.b32.xlu0 %v6132_v20, %s5994_s9 }
 0x585   :  { %5608 = vrot.lane.b32.xlu1 %v6128_v17, %s5995_s10 }
 0x586   :  { %5613 = vrot.lane.b32.xlu0 %v6132_v20, %s5995_s10 }
 0x5e0   :  { %v869_v50 = vpop.xlane.xlu1 %868 }
 0x5e1   :  { %5763 = vrcp.f32 %v869_v50 }
 0x5e5   :  { %v473_v51 = vpop.xlane.xlu0 %472 }
 0x5e6   :  { %5765 = vrcp.f32 %v473_v51 }
 0x5e9   :  { %v476_v52 = vpop.xlane.xlu1 %475  ;;  %v866_v53 = vpop.xlane.xlu0 %865 }
 0x5ea   :  { %5767 = vrcp.f32 %v866_v53 }
 0x5eb   :  { %5769 = vrcp.f32 %v476_v52  ;;  %v5764_v58 = vpop.eup %5763 }
 0x5ec   :  { %v873_v61 = vmul.f32 %v5764_v58, %v869_v50 }
 0x5ed   :  { %v5569_v54 = vpop.permute.xlu1 %5568  ;;  %v902_v56 = vpop.permute.xlu0 %901 }
 0x5ee   :  { %v971_v59 = vadd.f32 %v6222_v1, %v902_v56  ;;  %v976_v17 = vadd.f32 %v6220_v0, %v902_v56  ;;  %v875_v10 = vsub.f32 2.0, %v873_v61  ;;  %v5571_v25 = vunpack.i.h.bf16 %v5569_v54 }
 0x5ef   :  { %v5570_v26 = vunpack.i.l.bf16 %v5569_v54 }
 0x5f0   :  { %v5766_v60 = vpop.eup %5765  ;;  %v5261_v62 = vpack.c.bf16 %v976_v17, %v971_v59  ;;  %v877_v23 = vmul.f32 %v5764_v58, %v875_v10 }
 0x5f1   :  { %v5574_v63 = vpop.permute.xlu1 %5573  ;;  %v5584_v20 = vpop.permute.xlu0 %5583  ;;  %v479_v2 = vmul.f32 %v5766_v60, %v473_v51  ;;  %v5277_v34 = vpack.c.bf16 %v5571_v25, %v5570_v26 }
 0x5f2   :  { %5262 = vmatprep.subr.bf16.mxu0 %v5261_v62  ;;  %v5586_v4 = vunpack.i.h.bf16 %v5584_v20  ;;  %v5585_v5 = vunpack.i.l.bf16 %v5584_v20  ;;  %v879_v32 = vmul.f32 %v6240_v40, %v877_v23  ;;  %v5576_v38 = vunpack.i.h.bf16 %v5574_v63 }
 0x5f3   :  { %5264 = vmatpush3.bf16.msra.mxu0 %v5261_v62  ;;  %v481_v16 = vsub.f32 2.0, %v479_v2  ;;  %v5575_v39 = vunpack.i.l.bf16 %v5574_v63 }
 0x5f4   :  { %v5768_v6 = vpop.eup %5767  ;;  %5266 = vmatprep.subr.bf16.mxu0 %v6209_v57  ;;  %v5273_v22 = vpack.c.bf16 %v5586_v4, %v5585_v5 }
 0x5f5   :  { %v5579_v12 = vpop.permute.xlu1 %5578  ;;  %v5770_v14 = vpop.eup %5769  ;;  %v872_v1 = vmul.f32 %v5768_v6, %v866_v53  ;;  %v483_v27 = vmul.f32 %v5766_v60, %v481_v16  ;;  %v5281_v41 = vpack.c.bf16 %v5576_v38, %v5575_v39 }
 0x5f6   :  { %v5581_v18 = vunpack.i.h.bf16 %v5579_v12  ;;  %v5580_v0 = vunpack.i.l.bf16 %v5579_v12  ;;  %v480_v24 = vmul.f32 %v5770_v14, %v476_v52 }
 0x5f7   :  { %v874_v19 = vsub.f32 2.0, %v872_v1  ;;  %v485_v35 = vmul.f32 %v6244_v42, %v483_v27 }
 0x5f8   :  { %v5269_v21 = vpack.c.bf16 %v5581_v18, %v5580_v0  ;;  %v482_v33 = vsub.f32 2.0, %v480_v24 }
 0x5f9   :  { %v876_v29 = vmul.f32 %v5768_v6, %v874_v19  ;;  %v1263_v30 = vpop.permute.xlu1 %1262 }
 0x5fa   :  { %5270 = vmatprep.subr.bf16.mxu1 %v5269_v21  ;;  %v484_v37 = vmul.f32 %v5770_v14, %v482_v33 }
 0x5fb   :  { %5272 = vmatpush3.bf16.msra.mxu1 %v5269_v21  ;;  %v878_v31 = vmul.f32 %v6248_v44, %v876_v29 }
 0x5fc   :  { %5274 = vmatprep.subr.bf16.mxu1 %v5273_v22  ;;  %v486_v40 = vmul.f32 %v6250_v46, %v484_v37  ;;  %v1173_v46 = vpop.permute.xlu0 %1172 }
 0x5fd   :  { %4887 = vmatprep.mubr.msk.f32.mxu0 %vm458_vm7, %v878_v31  ;;  %v5589_v36 = vpop.permute.xlu1 %5588 }
 0x5fe   :  { %4888 = vmatmul.mubr.msk.f32.vlgmr.msra.gmra.mrb[8].mxu0 %vm458_vm7, %v879_v32  ;;  %v5591_v43 = vunpack.i.h.bf16 %v5589_v36  ;;  %v5590_v42 = vunpack.i.l.bf16 %v5589_v36 }
 0x5ff   :  { %5276 = vmatpush3.bf16.msra.mxu1 %v5273_v22  ;;  %5268 = vmatpush3.bf16.msra.mxu0 %v6209_v57 }
 0x600   :  { %4894 = vmatprep.mubr.msk.f32.mxu0 %vm458_vm7, %v485_v35  ;;  %5278 = vmatprep.subr.bf16.mxu0 %v5277_v34  ;;  %v5291_v57 = vpack.c.bf16 %v5591_v43, %v5590_v42  ;;  %v5594_v54 = vpop.permute.xlu0 %5593 }
 0x601   :  { %v5599_v44 = vpop.permute.xlu1 %5598  ;;  %v5596_v58 = vunpack.i.h.bf16 %v5594_v54  ;;  %v5595_v59 = vunpack.i.l.bf16 %v5594_v54 }
 0x602   :  { %4906 = vmatmul.mubr.msk.f32.vlgmr.msra.gmra.mrb[8].mxu1 %vm104_vm0, %v6170_v11  ;;  %v5601_v47 = vunpack.i.h.bf16 %v5599_v44  ;;  %v5600_v49 = vunpack.i.l.bf16 %v5599_v44 }
 0x603   :  { %v5303_v63 = vpack.c.bf16 %v5596_v58, %v5595_v59 }
 0x604   :  { %v5295_v50 = vpack.c.bf16 %v5601_v47, %v5600_v49  ;;  %v5604_v20 = vpop.permute.xlu0 %5603 }
 0x605   :  { %v5606_v4 = vunpack.i.h.bf16 %v5604_v20  ;;  %v5605_v5 = vunpack.i.l.bf16 %v5604_v20  ;;  %v5609_v10 = vpop.permute.xlu1 %5608 }
 0x606   :  { %4895 = vmatmul.mubr.msk.f32.vlgmr.msra.gmra.mrb[8].mxu0 %vm458_vm7, %v486_v40  ;;  %v5611_v16 = vunpack.i.h.bf16 %v5609_v10  ;;  %v5610_v1 = vunpack.i.l.bf16 %v5609_v10 }
 0x607   :  { %5280 = vmatpush3.bf16.msra.mxu0 %v5277_v34  ;;  %4916 = vmatprep.mubr.msk.f32.mxu0 %vm104_vm0, %v6164_v9  ;;  %v5307_v14 = vpack.c.bf16 %v5606_v4, %v5605_v5 }
 0x608   :  { %5282 = vmatprep.subr.bf16.mxu0 %v5281_v41  ;;  %v5614_v18 = vpop.permute.xlu0 %5613  ;;  %v5311_v0 = vpack.c.bf16 %v5611_v16, %v5610_v1 }
 0x609   :  { %v5616_v19 = vunpack.i.h.bf16 %v5614_v18  ;;  %v5615_v21 = vunpack.i.l.bf16 %v5614_v18 }
 0x60b   :  { %5284 = vmatpush3.bf16.msra.mxu0 %v5281_v41  ;;  %v5315_v22 = vpack.c.bf16 %v5616_v19, %v5615_v21 }
 0x60c   :  { %5292 = vmatprep.subr.bf16.mxu0 %v5291_v57 }
 0x60e   :  { %4917 = vmatmul.mubr.msk.f32.vlgmr.msra.gmra.mrb[10].mxu0 %vm104_vm0, %v6170_v11 }
 0x60f   :  { %5294 = vmatpush3.bf16.msra.mxu0 %v5291_v57  ;;  %4934 = vmatprep.mubr.msk.f32.mxu0 %vm104_vm0, %v6164_v9 }
 0x610   :  { %5296 = vmatprep.subr.bf16.mxu0 %v5295_v50 }
 0x613   :  { %5298 = vmatpush3.bf16.msra.mxu0 %v5295_v50 }
 0x616   :  { %4935 = vmatmul.mubr.msk.f32.vlgmr.msra.gmra.mrb[12].mxu0 %vm104_vm0, %v6170_v11 }
 0x6d5   :  { %v4907_v51 = vpop.f32.mrb[8].mxu1 }
 0x6d6   :  { %v1241_v52 = vpop.f32.mrb[9].mxu1  ;;  %v1247_v12 = vadd.f32 %v4907_v51, %v1173_v46 }
 0x6d7   :  { %v1242_v53 = vadd.f32 %v1241_v52, %v1173_v46 }
 0x6d9   :  { %4923 = vmatprep.mubr.msk.f32.mxu1 %vm370_vm5, %v1242_v53 }
 0x6e1   :  { %v4918_v56 = vpop.f32.mrb[10].mxu0 }
 0x6e2   :  { %v1337_v17 = vadd.f32 %v4918_v56, %v1263_v30  ;;  %v1331_v60 = vpop.f32.mrb[11].mxu0 }
 0x6e3   :  { %v1332_v61 = vadd.f32 %v1331_v60, %v1263_v30 }
 0x6e5   :  { %v5285_v62 = vpack.c.bf16 %v1337_v17, %v1332_v61 }
 0x6e7   :  { %5287 = vmatprep.subr.msk.bf16.mxu1 %vm6195_vm6, %v5285_v62 }
 0x6e8   :  { %5290 = vmatpush3.bf16.xpose.msk.msra.mxu1 %vm6195_vm6, %v5285_v62 }
 0x6e9   :  { %v4936_v2 = vpop.f32.mrb[12].mxu0  ;;  %5304 = vmatprep.subr.bf16.mxu1 %v5303_v63 }
 0x6ea   :  { %v1545_v6 = vpop.f32.mrb[13].mxu0 }
 0x6ef   :  { %4924 = vmatmul.mubr.msk.f32.vlgmr.msra.gmra.mrb[10].mxu1 %vm370_vm5, %v1247_v12 }
 0x6f0   :  { %5306 = vmatpush3.bf16.msra.mxu1 %v5303_v63  ;;  %4952 = vmatprep.mubr.msk.f32.mxu1 %vm104_vm0, %v6164_v9 }
 0x6f1   :  { %5308 = vmatprep.subr.bf16.mxu1 %v5307_v14 }
 0x6f4   :  { %5310 = vmatpush3.bf16.msra.mxu1 %v5307_v14 }
 0x6f5   :  { %5312 = vmatprep.subr.bf16.mxu1 %v5311_v0 }
 0x6f7   :  { %4953 = vmatmul.mubr.msk.f32.vlgmr.msra.gmra.mrb[12].mxu1 %vm104_vm0, %v6170_v11 }
 0x6f8   :  { %5314 = vmatpush3.bf16.msra.mxu1 %v5311_v0  ;;  %4963 = vmatprep.mubr.msk.f32.mxu1 %vm104_vm0, %v6164_v9 }
 0x6f9   :  { %5316 = vmatprep.subr.bf16.mxu1 %v5315_v22 }
 0x6fc   :  { %5318 = vmatpush3.bf16.msra.mxu1 %v5315_v22 }
 0x6ff   :  { %4964 = vmatmul.mubr.msk.f32.vlgmr.msra.gmra.mrb[14].mxu1 %vm104_vm0, %v6170_v11 }
 0x700   :  { %4981 = vmatprep.mubr.msk.f32.mxu1 %vm104_vm0, %v6164_v9 }
 0x7c2   :  { %v4925_v23 = vpop.f32.mrb[10].mxu1 }
 0x7c3   :  { %v1424_v24 = vadd.f32 %v4925_v23, %v6228_v13  ;;  %v1418_v25 = vpop.f32.mrb[11].mxu1 }
 0x7c4   :  { %v1419_v26 = vadd.f32 %v1418_v25, %v6230_v15 }
 0x7c5   :  { %v1430_v27 = vsel %vm458_vm7, %v1424_v24, -inf }
 0x7c6   :  { %1431 = vmax.xlane.f32.xlu0 %v1430_v27  ;;  %v1427_v29 = vsel %vm458_vm7, %v1419_v26, -inf }
 0x7c7   :  { %1428 = vmax.xlane.f32.xlu1 %v1427_v29 }
 0x7ca   :  { %v4954_v30 = vpop.f32.mrb[12].mxu1 }
 0x7cb   :  { %v1737_v31 = vpop.f32.mrb[13].mxu1 }
 0x7d2   :  { %v4965_v32 = vpop.f32.mrb[14].mxu1 }
 0x7d3   :  { %v1827_v33 = vpop.f32.mrb[15].mxu1 }
 0x7d8   :  { %1476 = vrot.lane.b32.xlu1 %v6202_v48, %s5993_s8 }
 0x7dc   :  { %1668 = vrot.lane.b32.xlu1 %v6144_v3, %s5994_s9 }
 0x7e0   :  { %5618 = vrot.lane.b32.xlu1 %v6155_v7, %s5988_s28 }
 0x7e4   :  { %5623 = vrot.lane.b32.xlu1 %v6158_v8, %s5988_s28 }
 0x853   :  { %v1432_v9 = vpop.xlane.xlu0 %1431 }
 0x854   :  { %v1434_v34 = vsub.f32 %v1424_v24, %v1432_v9  ;;  %v1429_v35 = vpop.xlane.xlu1 %1428 }
 0x855   :  { %v1433_v36 = vsub.f32 %v1419_v26, %v1429_v35 }
 0x856   :  { %v1437_v37 = vmul.f32 1.442695, %v1434_v34 }
 0x857   :  { %v1435_v38 = vmul.f32 1.442695, %v1433_v36 }
 0x858   :  { %5771 = vpow2.f32 %v1437_v37  ;;  %v1477_v39 = vpop.permute.xlu1 %1476 }
 0x859   :  { %v1546_v40 = vadd.f32 %v1545_v6, %v1477_v39  ;;  %v1551_v41 = vadd.f32 %v4936_v2, %v1477_v39  ;;  %5773 = vpow2.f32 %v1435_v38 }
 0x85b   :  { %v5299_v43 = vpack.c.bf16 %v1551_v41, %v1546_v40 }
 0x85c   :  { %v1669_v42 = vpop.permute.xlu1 %1668 }
 0x85d   :  { %v1738_v44 = vadd.f32 %v1737_v31, %v1669_v42  ;;  %v1743_v57 = vadd.f32 %v4954_v30, %v1669_v42  ;;  %5300 = vmatprep.subr.bf16.mxu0 %v5299_v43 }
 0x85e   :  { %5302 = vmatpush3.bf16.msra.mxu0 %v5299_v43 }
 0x860   :  { %v5619_v7 = vpop.permute.xlu1 %5618 }
 0x861   :  { %v5621_v47 = vunpack.i.h.bf16 %v5619_v7  ;;  %v5620_v8 = vunpack.i.l.bf16 %v5619_v7 }
 0x862   :  { %v5772_v49 = vpop.eup %5771 }
 0x863   :  { %v5325_v50 = vpack.c.bf16 %v5621_v47, %v5620_v8  ;;  %v1442_v46 = vsel %vm458_vm7, %v5772_v49, 0.0  ;;  %v5774_v51 = vpop.eup %5773 }
 0x864   :  { %1443 = vadd.xlane.f32.xlu0 %v1442_v46  ;;  %v5624_v52 = vpop.permute.xlu1 %5623  ;;  %v1439_v58 = vsel %vm458_vm7, %v5774_v51, 0.0  ;;  %v5836_v46 = vld [vmem:[#allocation2] sm:$0xff] }
 0x865   :  { %v5626_v53 = vunpack.i.h.bf16 %v5624_v52  ;;  %v5625_v54 = vunpack.i.l.bf16 %v5624_v52  ;;  %5326 = vmatprep.subr.bf16.mxu1 %v5325_v50 }
 0x866   :  { %5328 = vmatpush3.bf16.msra.mxu1 %v5325_v50 }
 0x867   :  { %v5329_v56 = vpack.c.bf16 %v5626_v53, %v5625_v54 }
 0x868   :  { %1440 = vadd.xlane.f32.xlu0 %v1439_v58 }
 0x869   :  { %5330 = vmatprep.subr.bf16.mxu1 %v5329_v56 }
 0x86a   :  { %5332 = vmatpush3.bf16.msra.mxu1 %v5329_v56 }
 0x86d   :  { %4982 = vmatmul.mubr.msk.f32.vlgmr.msra.gmra.mrb[16].mxu1 %vm104_vm0, %v6170_v11 }
 0x87e   :  { %1758 = vrot.lane.b32.xlu0 %v6144_v3, %s5995_s10 }
 0x8f1   :  { %v1444_v59 = vpop.xlane.xlu0 %1443 }
 0x8f2   :  { %5775 = vrcp.f32 %v1444_v59 }
 0x8f5   :  { %v1441_v17 = vpop.xlane.xlu0 %1440 }
 0x8f6   :  { %5777 = vrcp.f32 %v1441_v17 }
 0x8f9   :  { %v1759_v60 = vpop.permute.xlu0 %1758 }
 0x8fa   :  { %v1828_v61 = vadd.f32 %v1827_v33, %v1759_v60  ;;  %v1833_v62 = vadd.f32 %v4965_v32, %v1759_v60 }
 0x8fc   :  { %v5776_v63 = vpop.eup %5775  ;;  %v5319_v20 = vpack.c.bf16 %v1833_v62, %v1828_v61 }
 0x8fd   :  { %v1448_v2 = vmul.f32 %v5776_v63, %v1444_v59 }
 0x8fe   :  { %5321 = vmatprep.subr.msk.bf16.mxu0 %vm6195_vm6, %v5319_v20 }
 0x8ff   :  { %v1450_v5 = vsub.f32 2.0, %v1448_v2 }
 0x900   :  { %v5778_v4 = vpop.eup %5777 }
 0x901   :  { %v1447_v6 = vmul.f32 %v5778_v4, %v1441_v17  ;;  %v1452_v10 = vmul.f32 %v5776_v63, %v1450_v5  ;;  %v2196_v5 = vld [vmem:[#allocation10 + $0x8] sm:$0xff] }
 0x903   :  { %v1449_v11 = vsub.f32 2.0, %v1447_v6  ;;  %v1454_v14 = vmul.f32 %v5772_v49, %v1452_v10  ;;  %v5835_v49 = vld [vmem:[#allocation2 + $0x8] sm:$0xff]  ;;  %v2198_v10 = vld [vmem:[#allocation10 + $0x18] sm:$0xff] }
 0x905   :  { %v1451_v12 = vmul.f32 %v5778_v4, %v1449_v11  ;;  %v2195_v4 = vld [vmem:[#allocation10] sm:$0xff]  ;;  %v2197_v11 = vld [vmem:[#allocation10 + $0x10] sm:$0xff] }
 0x906   :  { %v6366_v6 = vpack.i.bf16 %v2196_v5, %v2195_v4 }
 0x907   :  { %v1453_v3 = vmul.f32 %v5774_v51, %v1451_v12  ;;  %v6372_v12 = vpack.i.bf16 %v2198_v10, %v2197_v11  ;;  %v6397_v11 = vld [vmem:[#allocation10 + $0x80] ss:$0 sm:$0xff] }
 0x909   :  { %4941 = vmatprep.mubr.msk.f32.mxu0 %vm458_vm7, %v1453_v3  ;;  %v6378_v3 = vld [vmem:[#allocation5] sm:$0xff] }
 0x90a   :  { %4942 = vmatmul.mubr.msk.f32.vlgmr.msra.gmra.mrb[8].mxu0 %vm458_vm7, %v1454_v14  ;;  %5010 = vmatprep.mubr.msk.f32.mxu1 %vm104_vm0, %v6378_v3 }
 0x90b   :  { %5324 = vmatpush3.bf16.xpose.msk.msra.mxu0 %vm6195_vm6, %v5319_v20  ;;  %4970 = vmatprep.mubr.msk.f32.mxu0 %vm370_vm5, %v1738_v44 }
 0x912   :  { %4971 = vmatmul.mubr.msk.f32.vlgmr.msra.gmra.mrb[14].mxu0 %vm370_vm5, %v1743_v57 }
 0x940   :  { %v4983_v16 = vpop.f32.mrb[16].mxu1 }
 0x941   :  { %v2041_v1 = vpop.f32.mrb[17].mxu1 }
 0x9e5   :  { %v4972_v18 = vpop.f32.mrb[14].mxu0 }
 0x9e6   :  { %v1920_v0 = vadd.f32 %v4972_v18, %v6228_v13  ;;  %v1914_v19 = vpop.f32.mrb[15].mxu0 }
 0x9e7   :  { %v1915_v21 = vadd.f32 %v1914_v19, %v6230_v15 }
 0x9e8   :  { %v1926_v22 = vsel %vm458_vm7, %v1920_v0, -inf }
 0x9e9   :  { %1927 = vmax.xlane.f32.xlu1 %v1926_v22  ;;  %v1923_v23 = vsel %vm458_vm7, %v1915_v21, -inf }
 0x9ea   :  { %1924 = vmax.xlane.f32.xlu0 %v1923_v23 }
 0xa76   :  { %v1928_v24 = vpop.xlane.xlu1 %1927 }
 0xa77   :  { %v1930_v25 = vsub.f32 %v1920_v0, %v1928_v24  ;;  %v1925_v26 = vpop.xlane.xlu0 %1924 }
 0xa78   :  { %v1929_v27 = vsub.f32 %v1915_v21, %v1925_v26 }
 0xa79   :  { %v1933_v29 = vmul.f32 1.442695, %v1930_v25 }
 0xa7a   :  { %v1931_v30 = vmul.f32 1.442695, %v1929_v27 }
 0xa7b   :  { %5779 = vpow2.f32 %v1933_v29 }
 0xa7c   :  { %5781 = vpow2.f32 %v1931_v30 }
 0xa85   :  { %v5780_v31 = vpop.eup %5779 }
 0xa86   :  { %v1938_v13 = vsel %vm458_vm7, %v5780_v31, 0.0  ;;  %v5782_v32 = vpop.eup %5781 }
 0xa87   :  { %1939 = vadd.xlane.f32.xlu0 %v1938_v13  ;;  %v1935_v15 = vsel %vm458_vm7, %v5782_v32, 0.0 }
 0xa8b   :  { %1936 = vadd.xlane.f32.xlu0 %v1935_v15 }
 0xaa1   :  { %1972 = vrot.lane.b32.xlu0 %v6202_v48, %s5988_s28 }
 0xb14   :  { %v1940_v33 = vpop.xlane.xlu0 %1939 }
 0xb15   :  { %5783 = vrcp.f32 %v1940_v33 }
 0xb18   :  { %v1937_v9 = vpop.xlane.xlu0 %1936 }
 0xb19   :  { %5785 = vrcp.f32 %v1937_v9 }
 0xb1c   :  { %v1973_v34 = vpop.permute.xlu0 %1972 }
 0xb1d   :  { %v2042_v35 = vadd.f32 %v2041_v1, %v1973_v34  ;;  %v2047_v36 = vadd.f32 %v4983_v16, %v1973_v34 }
 0xb1f   :  { %v5784_v37 = vpop.eup %5783  ;;  %v5333_v38 = vpack.c.bf16 %v2047_v36, %v2042_v35 }
 0xb20   :  { %v1944_v39 = vmul.f32 %v5784_v37, %v1940_v33 }
 0xb21   :  { %5334 = vmatprep.subr.bf16.mxu0 %v5333_v38 }
 0xb22   :  { %5336 = vmatpush3.bf16.msra.mxu0 %v5333_v38  ;;  %v1946_v41 = vsub.f32 2.0, %v1944_v39 }
 0xb23   :  { %v5786_v40 = vpop.eup %5785 }
 0xb24   :  { %v1943_v43 = vmul.f32 %v5786_v40, %v1937_v9  ;;  %v1948_v44 = vmul.f32 %v5784_v37, %v1946_v41 }
 0xb26   :  { %v1945_v42 = vsub.f32 2.0, %v1943_v43  ;;  %v1950_v48 = vmul.f32 %v5780_v31, %v1948_v44 }
 0xb28   :  { %v1947_v57 = vmul.f32 %v5786_v40, %v1945_v42  ;;  %v6384_v40 = vld [vmem:[#allocation5 + $0x8] sm:$0xff] }
 0xb2a   :  { %v1949_v7 = vmul.f32 %v5782_v32, %v1947_v57 }
 0xb2c   :  { %4988 = vmatprep.mubr.msk.f32.mxu0 %vm458_vm7, %v1949_v7 }
 0xb2d   :  { %4989 = vmatmul.mubr.msk.f32.vlgmr.msra.gmra.mrb[8].mxu0 %vm458_vm7, %v1950_v48 }
 0xc00   :  { %v4990_v47 = vpop.f32.mrb[8].mxu0 }
 0xc01   :  { %v2122_v8 = vpop.f32.mrb[9].mxu0  ;;  %v2134_v50 = vadd.f32 %v5835_v49, %v4990_v47 }
 0xc02   :  { %v2133_v51 = vadd.f32 %v5836_v46, %v2122_v8  ;;  %v2610_v46 = vld [vmem:[#allocation10 + $0x48] sm:$0xff] }
 0xc03   :  { %v6354_v53 = vadd.f32 %v6138_v55, %v2134_v50  ;;  %v2609_v50 = vld [vmem:[#allocation10 + $0x40] sm:$0xff] }
 0xc04   :  { %v6351_v52 = vadd.f32 %v6138_v55, %v2133_v51 }
 0xc05   :  { %v2140_v56 = vsel %vm104_vm0, %v6354_v53, 0.0 }
 0xc06   :  { %v2137_v54 = vsel %vm104_vm0, %v6351_v52, 0.0 }
 0xc07   :  { %2138 = vadd.xlane.f32.xlu1 %v2137_v54  ;;  %v5359_v54 = vpack.c.bf16 %v2610_v46, %v2609_v50 }
 0xc0b   :  { %2141 = vadd.xlane.f32.xlu1 %v2140_v56 }
 0xc94   :  { %v2139_v58 = vpop.xlane.xlu1 %2138 }
 0xc95   :  { %v2143_v59 = vmul.f32 0.03125, %v2139_v58  ;;  %v6390_v58 = vld [vmem:[#allocation10 + $0x84] ss:$0 sm:$0xff] }
 0xc97   :  { %v2145_v17 = vsub.f32 %v6351_v52, %v2143_v59 }
 0xc98   :  { %v2142_v60 = vpop.xlane.xlu1 %2141 }
 0xc99   :  { %v2144_v61 = vmul.f32 0.03125, %v2142_v60  ;;  %v2147_v62 = vmul.f32 %v2145_v17, %v2145_v17 }
 0xc9b   :  { %v2146_v63 = vsub.f32 %v6354_v53, %v2144_v61  ;;  %v2149_v55 = vsel %vm104_vm0, %v2147_v62, 0.0  ;;  %v2611_v62 = vld [vmem:[#allocation10 + $0x50] sm:$0xff] }
 0xc9c   :  { %2150 = vadd.xlane.f32.xlu1 %v2149_v55 }
 0xc9d   :  { %2175 = vrot.lane.b32.xlu0 %v2146_v63, %s5988_s28  ;;  %v2148_v20 = vmul.f32 %v2146_v63, %v2146_v63  ;;  %v2612_v63 = vld [vmem:[#allocation10 + $0x58] sm:$0xff] }
 0xc9e   :  { %v5363_v55 = vpack.c.bf16 %v2612_v63, %v2611_v62 }
 0xc9f   :  { %v2152_v2 = vsel %vm104_vm0, %v2148_v20, 0.0 }
 0xca0   :  { %2153 = vadd.xlane.f32.xlu1 %v2152_v2 }
 0xca1   :  { %5628 = vrot.lane.b32.xlu0 %v6366_v6, %s5988_s28 }
 0xca5   :  { %5633 = vrot.lane.b32.xlu0 %v6372_v12, %s5988_s28 }
 0xca9   :  { %5643 = vrot.lane.b32.xlu0 %v6372_v12, %s5993_s8 }
 0xcb1   :  { %2173 = vrot.lane.b32.xlu1 %v2145_v17, %s5988_s28 }
 0xcb5   :  { %5638 = vrot.lane.b32.xlu1 %v6366_v6, %s5993_s8 }
 0xd0f   :  { %v6382_v1 = vpop.permute.xlu0 %2175 }
 0xd10   :  { %v2180_v20 = vmul.f32 %v6390_v58, %v6382_v1 }
 0xd13   :  { %v5629_v19 = vpop.permute.xlu0 %5628 }
 0xd14   :  { %v5631_v22 = vunpack.i.h.bf16 %v5629_v19  ;;  %v5630_v23 = vunpack.i.l.bf16 %v5629_v19 }
 0xd16   :  { %v5345_v24 = vpack.c.bf16 %v5631_v22, %v5630_v23 }
 0xd17   :  { %v5634_v25 = vpop.permute.xlu0 %5633 }
 0xd18   :  { %v5636_v26 = vunpack.i.h.bf16 %v5634_v25  ;;  %v5635_v27 = vunpack.i.l.bf16 %v5634_v25  ;;  %5346 = vmatprep.subr.bf16.mxu1 %v5345_v24 }
 0xd19   :  { %5348 = vmatpush3.bf16.msra.mxu1 %v5345_v24 }
 0xd1a   :  { %v5349_v15 = vpack.c.bf16 %v5636_v26, %v5635_v27 }
 0xd1b   :  { %v5644_v34 = vpop.permute.xlu0 %5643 }
 0xd1c   :  { %5350 = vmatprep.subr.bf16.mxu1 %v5349_v15  ;;  %v5646_v36 = vunpack.i.h.bf16 %v5644_v34  ;;  %v5645_v37 = vunpack.i.l.bf16 %v5644_v34 }
 0xd1d   :  { %5352 = vmatpush3.bf16.msra.mxu1 %v5349_v15 }
 0xd1e   :  { %v5341_v42 = vpack.c.bf16 %v5646_v36, %v5645_v37  ;;  %5360 = vmatprep.subr.bf16.mxu1 %v5359_v54 }
 0xd20   :  { %5011 = vmatmul.mubr.msk.f32.vlgmr.msra.gmra.mrb[18].mxu1 %vm104_vm0, %v6384_v40 }
 0xd21   :  { %5028 = vmatprep.mubr.msk.f32.mxu1 %vm104_vm0, %v6378_v3  ;;  %5362 = vmatpush3.bf16.msra.mxu1 %v5359_v54 }
 0xd22   :  { %5364 = vmatprep.subr.bf16.mxu1 %v5363_v55 }
 0xd25   :  { %5366 = vmatpush3.bf16.msra.mxu1 %v5363_v55 }
 0xd28   :  { %5029 = vmatmul.mubr.msk.f32.vlgmr.msra.gmra.mrb[20].mxu1 %vm104_vm0, %v6384_v40 }
 0xd29   :  { %v2151_v14 = vpop.xlane.xlu1 %2150  ;;  %5050 = vmatprep.mubr.msk.f32.mxu1 %vm104_vm0, %v6378_v3 }
 0xd2a   :  { %v2155_v16 = vmul.f32 0.032258064, %v2151_v14  ;;  %v6419_v14 = vpack.i.bf16 %v2612_v63, %v2611_v62 }
 0xd2c   :  { %5787 = vrsqrt.f32 %v2155_v16  ;;  %vm2159_vm8 = vcmp.eq.f32.partialorder %v2155_v16, inf  ;;  %v2162_v33 = vand.u32 2147483648, %v2155_v16  ;;  %vm2161_vm9 = vcmp.eq.f32.partialorder %v2155_v16, 0.0 }
 0xd2d   :  { %v2154_v18 = vpop.xlane.xlu1 %2153 }
 0xd2e   :  { %v2156_v0 = vmul.f32 0.032258064, %v2154_v18 }
 0xd30   :  { %5789 = vrsqrt.f32 %v2156_v0  ;;  %vm2166_vm10 = vcmp.eq.f32.partialorder %v2156_v0, inf  ;;  %v2169_v44 = vand.u32 2147483648, %v2156_v0  ;;  %vm2168_vm11 = vcmp.eq.f32.partialorder %v2156_v0, 0.0 }
 0xd31   :  { %v2174_v21 = vpop.permute.xlu1 %2173 }
 0xd32   :  { %v2179_v59 = vmul.f32 %v6390_v58, %v2174_v21 }
 0xd35   :  { %v5639_v29 = vpop.permute.xlu1 %5638 }
 0xd36   :  { %v5788_v30 = vpop.eup %5787  ;;  %v5641_v31 = vunpack.i.h.bf16 %v5639_v29  ;;  %v5640_v13 = vunpack.i.l.bf16 %v5639_v29 }
 0xd37   :  { %v2158_v32 = vmul.f32 %v5788_v30, %v2155_v16 }
 0xd38   :  { %v5337_v9 = vpack.c.bf16 %v5641_v31, %v5640_v13 }
 0xd39   :  { %v2160_v35 = vsel %vm2159_vm8, %v2155_v16, %v2158_v32 }
 0xd3a   :  { %v5790_v38 = vpop.eup %5789  ;;  %v2163_v39 = vsel %vm2161_vm9, %v2162_v33, %v2160_v35  ;;  %5338 = vmatprep.subr.bf16.mxu0 %v5337_v9 }
 0xd3b   :  { %v2165_v41 = vmul.f32 %v5790_v38, %v2156_v0  ;;  %v2181_v43 = vadd.f32 1e-06, %v2163_v39  ;;  %5340 = vmatpush3.bf16.msra.mxu0 %v5337_v9 }
 0xd3c   :  { %5342 = vmatprep.subr.bf16.mxu0 %v5341_v42 }
 0xd3d   :  { %5791 = vrcp.f32 %v2181_v43  ;;  %v2167_v57 = vsel %vm2166_vm10, %v2156_v0, %v2165_v41 }
 0xd3e   :  { %v2170_v7 = vsel %vm2168_vm11, %v2169_v44, %v2167_v57 }
 0xd3f   :  { %v2182_v48 = vadd.f32 1e-06, %v2170_v7  ;;  %5344 = vmatpush3.bf16.msra.mxu0 %v5341_v42 }
 0xd41   :  { %5793 = vrcp.f32 %v2182_v48 }
 0xd47   :  { %v5792_v47 = vpop.eup %5791 }
 0xd48   :  { %v2185_v8 = vmul.f32 %v5792_v47, %v2181_v43 }
 0xd4a   :  { %v2187_v49 = vsub.f32 2.0, %v2185_v8 }
 0xd4b   :  { %v5794_v51 = vpop.eup %5793 }
 0xd4c   :  { %v2189_v56 = vmul.f32 %v5792_v47, %v2187_v49  ;;  %v2186_v17 = vmul.f32 %v5794_v51, %v2182_v48  ;;  %v6443_v47 = vld [vmem:[#allocation10 + $0x82] ss:$0 sm:$0xff] }
 0xd4e   :  { %v2191_v60 = vmul.f32 %v2189_v56, %v2179_v59  ;;  %v2188_v61 = vsub.f32 2.0, %v2186_v17 }
 0xd50   :  { %v2193_v2 = vadd.f32 %v2191_v60, %v6136_v28  ;;  %v2190_v4 = vmul.f32 %v5794_v51, %v2188_v61 }
 0xd52   :  { %2211 = vrot.lane.b32.xlu1 %v2193_v2, %s5987_s4  ;;  %v2192_v5 = vmul.f32 %v2190_v4, %v2180_v20 }
 0xd54   :  { %v2194_v10 = vadd.f32 %v2192_v5, %v6136_v28  ;;  %v6414_v28 = vpack.i.bf16 %v2610_v46, %v2609_v50 }
 0xd56   :  { %2213 = vrot.lane.b32.xlu0 %v2194_v10, %s5987_s4  ;;  %2326 = vrot.lane.b32.xlu1 %v6397_v11, %s5988_s28 }
 0xd5a   :  { %5648 = vrot.lane.b32.xlu0 %v6366_v6, %s5996_s11  ;;  %5653 = vrot.lane.b32.xlu1 %v6372_v12, %s5996_s11 }
 0xd5e   :  { %2232 = vrot.lane.b32.xlu0 %v6397_v11, %s5993_s8  ;;  %5658 = vrot.lane.b32.xlu1 %v6366_v6, %s5997_s12 }
 0xd62   :  { %5663 = vrot.lane.b32.xlu0 %v6372_v12, %s5997_s12  ;;  %2725 = vrot.lane.b32.xlu1 %v6397_v11, %s5996_s11 }
 0xd66   :  { %2635 = vrot.lane.b32.xlu0 %v6397_v11, %s5997_s12  ;;  %5668 = vrot.lane.b32.xlu1 %v6414_v28, %s5987_s4 }
 0xd6a   :  { %5673 = vrot.lane.b32.xlu0 %v6419_v14, %s5987_s4 }
 0xdc4   :  { %v6423_v16 = vpop.permute.xlu1 %2211 }
 0xdc5   :  { %4999 = vmatprep.mubr.msk.f32.mxu0 %vm104_vm0, %v6423_v16 }
 0xdc8   :  { %v6427_v1 = vpop.permute.xlu0 %2213  ;;  %v2327_v18 = vpop.permute.xlu1 %2326 }
 0xdc9   :  { %5000 = vmatmul.mubr.msk.f32.vlgmr.msra.gmra.mrb[16].mxu0 %vm104_vm0, %v6427_v1 }
 0xdcc   :  { %v5649_v0 = vpop.permute.xlu0 %5648  ;;  %v5654_v19 = vpop.permute.xlu1 %5653 }
 0xdcd   :  { %v5651_v21 = vunpack.i.h.bf16 %v5649_v0  ;;  %v5650_v22 = vunpack.i.l.bf16 %v5649_v0  ;;  %v5656_v23 = vunpack.i.h.bf16 %v5654_v19  ;;  %v5655_v24 = vunpack.i.l.bf16 %v5654_v19 }
 0xdcf   :  { %v5375_v25 = vpack.c.bf16 %v5651_v21, %v5650_v22  ;;  %v5379_v26 = vpack.c.bf16 %v5656_v23, %v5655_v24  ;;  %v6461_v21 = vld [vmem:[#allocation8 + $0x8] sm:$0xff]  ;;  %v6463_v22 = vld [vmem:[#allocation8] sm:$0xff] }
 0xdd0   :  { %v2233_v27 = vpop.permute.xlu0 %2232  ;;  %v5659_v29 = vpop.permute.xlu1 %5658 }
 0xdd1   :  { %5376 = vmatprep.subr.bf16.mxu1 %v5375_v25  ;;  %v5661_v38 = vunpack.i.h.bf16 %v5659_v29  ;;  %v5660_v39 = vunpack.i.l.bf16 %v5659_v29 }
 0xdd2   :  { %5378 = vmatpush3.bf16.msra.mxu1 %v5375_v25 }
 0xdd3   :  { %5380 = vmatprep.subr.bf16.mxu1 %v5379_v26  ;;  %v5367_v57 = vpack.c.bf16 %v5661_v38, %v5660_v39 }
 0xdd4   :  { %v5664_v30 = vpop.permute.xlu0 %5663  ;;  %v2726_v31 = vpop.permute.xlu1 %2725 }
 0xdd5   :  { %v5666_v51 = vunpack.i.h.bf16 %v5664_v30  ;;  %v5665_v54 = vunpack.i.l.bf16 %v5664_v30 }
 0xdd6   :  { %5382 = vmatpush3.bf16.msra.mxu1 %v5379_v26 }
 0xdd7   :  { %v5371_v60 = vpack.c.bf16 %v5666_v51, %v5665_v54 }
 0xdd8   :  { %v2636_v13 = vpop.permute.xlu0 %2635  ;;  %v5669_v32 = vpop.permute.xlu1 %5668 }
 0xdd9   :  { %v5671_v15 = vunpack.i.h.bf16 %v5669_v32  ;;  %v5670_v33 = vunpack.i.l.bf16 %v5669_v32  ;;  %5051 = vmatmul.mubr.msk.f32.vlgmr.msra.gmra.mrb[22].mxu1 %vm104_vm0, %v6384_v40 }
 0xdda   :  { %5068 = vmatprep.mubr.msk.f32.mxu1 %vm104_vm0, %v6378_v3 }
 0xddb   :  { %v5389_v9 = vpack.c.bf16 %v5671_v15, %v5670_v33 }
 0xddc   :  { %v5674_v34 = vpop.permute.xlu0 %5673 }
 0xddd   :  { %v5676_v35 = vunpack.i.h.bf16 %v5674_v34  ;;  %v5675_v36 = vunpack.i.l.bf16 %v5674_v34  ;;  %5390 = vmatprep.subr.bf16.mxu1 %v5389_v9 }
 0xdde   :  { %5392 = vmatpush3.bf16.msra.mxu1 %v5389_v9 }
 0xddf   :  { %v5393_v37 = vpack.c.bf16 %v5676_v35, %v5675_v36 }
 0xde1   :  { %5394 = vmatprep.subr.bf16.mxu1 %v5393_v37 }
 0xde2   :  { %5396 = vmatpush3.bf16.msra.mxu1 %v5393_v37 }
 0xde5   :  { %5069 = vmatmul.mubr.msk.f32.vlgmr.msra.gmra.mrb[24].mxu1 %vm104_vm0, %v6384_v40 }
 0xde6   :  { %5093 = vmatprep.mubr.msk.f32.mxu1 %vm104_vm0, %v6423_v16 }
 0xdf3   :  { %v5012_v41 = vpop.f32.mrb[18].mxu1 }
 0xdf4   :  { %v2407_v43 = vadd.f32 %v5012_v41, %v2327_v18  ;;  %v2401_v42 = vpop.f32.mrb[19].mxu1 }
 0xdf5   :  { %v2402_v44 = vadd.f32 %v2401_v42, %v2327_v18 }
 0xdf7   :  { %v5353_v7 = vpack.c.bf16 %v2407_v43, %v2402_v44 }
 0xdf9   :  { %5355 = vmatprep.subr.msk.bf16.mxu0 %vm6195_vm6, %v5353_v7 }
 0xdfa   :  { %5358 = vmatpush3.bf16.xpose.msk.msra.mxu0 %vm6195_vm6, %v5353_v7 }
 0xdfb   :  { %5368 = vmatprep.subr.bf16.mxu0 %v5367_v57  ;;  %v5030_v48 = vpop.f32.mrb[20].mxu1 }
 0xdfc   :  { %v2601_v8 = vadd.f32 %v5030_v48, %v6443_v47  ;;  %v2595_v49 = vpop.f32.mrb[21].mxu1 }
 0xdfd   :  { %v2596_v50 = vadd.f32 %v6443_v47, %v2595_v49 }
 0xdff   :  { %v6447_v46 = vpack.c.bf16 %v2601_v8, %v2596_v50 }
 0xe9c   :  { %v5001_v56 = vpop.f32.mrb[16].mxu0 }
 0xe9d   :  { %v2305_v59 = vpop.f32.mrb[17].mxu0  ;;  %v2311_v61 = vadd.f32 %v5001_v56, %v2233_v27 }
 0xe9e   :  { %v2306_v17 = vadd.f32 %v2305_v59, %v2233_v27 }
 0xea0   :  { %5017 = vmatprep.mubr.msk.f32.mxu0 %vm370_vm5, %v2306_v17 }
 0xea1   :  { %5018 = vmatmul.mubr.msk.f32.vlgmr.msra.gmra.mrb[18].mxu0 %vm370_vm5, %v2311_v61 }
 0xea2   :  { %5370 = vmatpush3.bf16.msra.mxu0 %v5367_v57  ;;  %5039 = vmatprep.mubr.msk.f32.mxu0 %vm104_vm0, %v6423_v16 }
 0xea3   :  { %5372 = vmatprep.subr.bf16.mxu0 %v5371_v60 }
 0xea6   :  { %5374 = vmatpush3.bf16.msra.mxu0 %v5371_v60 }
 0xea9   :  { %5040 = vmatmul.mubr.msk.f32.vlgmr.msra.gmra.mrb[20].mxu0 %vm104_vm0, %v6427_v1 }
 0xeac   :  { %v5052_v62 = vpop.f32.mrb[22].mxu1 }
 0xead   :  { %v2800_v63 = vadd.f32 %v5052_v62, %v2726_v31  ;;  %v2794_v55 = vpop.f32.mrb[23].mxu1 }
 0xeae   :  { %v2795_v20 = vadd.f32 %v2794_v55, %v2726_v31 }
 0xeb0   :  { %v5383_v2 = vpack.c.bf16 %v2800_v63, %v2795_v20 }
 0xeb2   :  { %5385 = vmatprep.subr.msk.bf16.mxu0 %vm6195_vm6, %v5383_v2 }
 0xeb3   :  { %5388 = vmatpush3.bf16.xpose.msk.msra.mxu0 %vm6195_vm6, %v5383_v2 }
 0xeb8   :  { %v5070_v54 = vpop.f32.mrb[24].mxu1 }
 0xeb9   :  { %v3008_v56 = vpop.f32.mrb[25].mxu1 }
 0xf74   :  { %v5019_v4 = vpop.f32.mrb[18].mxu0 }
 0xf75   :  { %v2488_v5 = vpop.f32.mrb[19].mxu0  ;;  %v2494_v31 = vadd.f32 %v5019_v4, %v6461_v21 }
 0xf76   :  { %v2489_v27 = vadd.f32 %v2488_v5, %v6463_v22 }
 0xf77   :  { %v2500_v32 = vsel %vm458_vm7, %v2494_v31, -inf }
 0xf7c   :  { %v5041_v10 = vpop.f32.mrb[20].mxu0 }
 0xf7d   :  { %v2704_v18 = vpop.f32.mrb[21].mxu0  ;;  %v2710_v19 = vadd.f32 %v5041_v10, %v2636_v13 }
 0xf7e   :  { %v2705_v0 = vadd.f32 %v2704_v18, %v2636_v13  ;;  %v2497_v13 = vsel %vm458_vm7, %v2489_v27, -inf }
 0xf80   :  { %5057 = vmatprep.mubr.msk.f32.mxu0 %vm370_vm5, %v2705_v0 }
 0xf81   :  { %5058 = vmatmul.mubr.msk.f32.vlgmr.msra.gmra.mrb[22].mxu0 %vm370_vm5, %v2710_v19 }
0x1054   :  { %v5059_v23 = vpop.f32.mrb[22].mxu0 }
0x1055   :  { %v2887_v24 = vadd.f32 %v5059_v23, %v6461_v21  ;;  %v2881_v25 = vpop.f32.mrb[23].mxu0 }
0x1056   :  { %v2882_v26 = vadd.f32 %v2881_v25, %v6463_v22 }
0x1057   :  { %v2893_v29 = vsel %vm458_vm7, %v2887_v24, -inf }
0x1058   :  { %2894 = vmax.xlane.f32.xlu0 %v2893_v29  ;;  %v2890_v30 = vsel %vm458_vm7, %v2882_v26, -inf }
0x1059   :  { %2891 = vmax.xlane.f32.xlu1 %v2890_v30 }
0x105c   :  { %2498 = vmax.xlane.f32.xlu0 %v2497_v13 }
0x1060   :  { %2501 = vmax.xlane.f32.xlu0 %v2500_v32 }
0x10e5   :  { %v2895_v15 = vpop.xlane.xlu0 %2894 }
0x10e6   :  { %v2897_v33 = vsub.f32 %v2887_v24, %v2895_v15  ;;  %v2892_v9 = vpop.xlane.xlu1 %2891 }
0x10e7   :  { %v2896_v35 = vsub.f32 %v2882_v26, %v2892_v9 }
0x10e8   :  { %v2900_v34 = vmul.f32 1.442695, %v2897_v33 }
0x10e9   :  { %v2499_v36 = vpop.xlane.xlu0 %2498  ;;  %v2898_v38 = vmul.f32 1.442695, %v2896_v35 }
0x10ea   :  { %5795 = vpow2.f32 %v2900_v34  ;;  %v2503_v37 = vsub.f32 %v2489_v27, %v2499_v36 }
0x10ec   :  { %v2505_v39 = vmul.f32 1.442695, %v2503_v37 }
0x10ed   :  { %v2502_v41 = vpop.xlane.xlu0 %2501 }
0x10ee   :  { %5797 = vpow2.f32 %v2505_v39  ;;  %v2504_v43 = vsub.f32 %v2494_v31, %v2502_v41 }
0x10ef   :  { %5799 = vpow2.f32 %v2898_v38 }
0x10f0   :  { %v2507_v42 = vmul.f32 1.442695, %v2504_v43 }
0x10f2   :  { %5801 = vpow2.f32 %v2507_v42 }
0x10f4   :  { %v6473_v44 = vpop.eup %5795 }
0x10f5   :  { %v2905_v57 = vsel %vm458_vm7, %v6473_v44, 0.0 }
0x10f6   :  { %2906 = vadd.xlane.f32.xlu0 %v2905_v57 }
0x10f8   :  { %v6477_v7 = vpop.eup %5797 }
0x10f9   :  { %v2509_v48 = vsel %vm458_vm7, %v6477_v7, 0.0  ;;  %v6481_v8 = vpop.eup %5799 }
0x10fa   :  { %2510 = vadd.xlane.f32.xlu1 %v2509_v48  ;;  %v2902_v50 = vsel %vm458_vm7, %v6481_v8, 0.0 }
0x10fc   :  { %v6483_v49 = vpop.eup %5801 }
0x10fd   :  { %v2512_v51 = vsel %vm458_vm7, %v6483_v49, 0.0 }
0x10fe   :  { %2903 = vadd.xlane.f32.xlu1 %v2902_v50  ;;  %2513 = vadd.xlane.f32.xlu0 %v2512_v51 }
0x110f   :  { %2939 = vrot.lane.b32.xlu1 %v6443_v47, %s5987_s4 }
0x1113   :  { %5683 = vrot.lane.b32.xlu1 %v6372_v12, %s5998_s13 }
0x1114   :  { %5678 = vrot.lane.b32.xlu0 %v6366_v6, %s5998_s13 }
0x1117   :  { %5688 = vrot.lane.b32.xlu1 %v6366_v6, %s5999_s14 }
0x1118   :  { %3300 = vrot.lane.b32.xlu0 %v6397_v11, %s5998_s13 }
0x111b   :  { %5693 = vrot.lane.b32.xlu1 %v6372_v12, %s5999_s14 }
0x111c   :  { %5698 = vrot.lane.b32.xlu0 %v6414_v28, %s5993_s8 }
0x111f   :  { %3210 = vrot.lane.b32.xlu1 %v6397_v11, %s5999_s14 }
0x1120   :  { %5708 = vrot.lane.b32.xlu0 %v6419_v14, %s5993_s8 }
0x1123   :  { %5703 = vrot.lane.b32.xlu1 %v6366_v6, %s6000_s15 }
0x1124   :  { %5718 = vrot.lane.b32.xlu0 %v6366_v6, %s5983_s6 }
0x1127   :  { %5713 = vrot.lane.b32.xlu1 %v6372_v12, %s6000_s15 }
0x112b   :  { %5723 = vrot.lane.b32.xlu1 %v6372_v12, %s5983_s6 }
0x1183   :  { %v2907_v59 = vpop.xlane.xlu0 %2906 }
0x1184   :  { %5803 = vrcp.f32 %v2907_v59 }
0x1187   :  { %v2511_v17 = vpop.xlane.xlu1 %2510 }
0x1188   :  { %5805 = vrcp.f32 %v2511_v17 }
0x118b   :  { %v2904_v60 = vpop.xlane.xlu1 %2903  ;;  %v2514_v61 = vpop.xlane.xlu0 %2513 }
0x118c   :  { %5807 = vrcp.f32 %v2904_v60 }
0x118d   :  { %5809 = vrcp.f32 %v2514_v61 }
0x118e   :  { %v5804_v62 = vpop.eup %5803 }
0x118f   :  { %v2940_v63 = vpop.permute.xlu1 %2939  ;;  %v2911_v6 = vmul.f32 %v5804_v62, %v2907_v59  ;;  %v5679_v0 = vpop.permute.xlu0 %5678 }
0x1190   :  { %v3009_v55 = vadd.f32 %v3008_v56, %v2940_v63  ;;  %v3014_v20 = vadd.f32 %v5070_v54, %v2940_v63  ;;  %v5681_v30 = vunpack.i.h.bf16 %v5679_v0  ;;  %v5680_v15 = vunpack.i.l.bf16 %v5679_v0 }
0x1191   :  { %v2913_v18 = vsub.f32 2.0, %v2911_v6 }
0x1192   :  { %v5806_v2 = vpop.eup %5805  ;;  %v5397_v4 = vpack.c.bf16 %v3014_v20, %v3009_v55  ;;  %v5413_v43 = vpack.c.bf16 %v5681_v30, %v5680_v15 }
0x1193   :  { %v2517_v5 = vmul.f32 %v5806_v2, %v2511_v17  ;;  %v5684_v10 = vpop.permute.xlu1 %5683  ;;  %v2915_v31 = vmul.f32 %v5804_v62, %v2913_v18  ;;  %v3301_v56 = vpop.permute.xlu0 %3300 }
0x1194   :  { %5398 = vmatprep.subr.bf16.mxu0 %v5397_v4  ;;  %v5686_v48 = vunpack.i.h.bf16 %v5684_v10 }
0x1195   :  { %5400 = vmatpush3.bf16.msra.mxu0 %v5397_v4  ;;  %v2519_v23 = vsub.f32 2.0, %v2517_v5  ;;  %v2917_v38 = vmul.f32 %v6473_v44, %v2915_v31 }
0x1196   :  { %v5808_v12 = vpop.eup %5807  ;;  %5402 = vmatprep.subr.bf16.mxu0 %v6447_v46 }
0x1197   :  { %v5810_v19 = vpop.eup %5809  ;;  %v2910_v24 = vmul.f32 %v5808_v12, %v2904_v60  ;;  %v5689_v25 = vpop.permute.xlu1 %5688  ;;  %v2521_v33 = vmul.f32 %v5806_v2, %v2519_v23 }
0x1198   :  { %v5691_v26 = vunpack.i.h.bf16 %v5689_v25  ;;  %v5690_v27 = vunpack.i.l.bf16 %v5689_v25  ;;  %v2518_v13 = vmul.f32 %v5810_v19, %v2514_v61 }
0x1199   :  { %v2912_v29 = vsub.f32 2.0, %v2910_v24  ;;  %v2523_v42 = vmul.f32 %v6477_v7, %v2521_v33 }
0x119a   :  { %v5405_v32 = vpack.c.bf16 %v5691_v26, %v5690_v27  ;;  %v2520_v39 = vsub.f32 2.0, %v2518_v13 }
0x119b   :  { %v2914_v9 = vmul.f32 %v5808_v12, %v2912_v29  ;;  %v5694_v34 = vpop.permute.xlu1 %5693  ;;  %v5699_v12 = vpop.permute.xlu0 %5698 }
0x119c   :  { %v5696_v35 = vunpack.i.h.bf16 %v5694_v34  ;;  %v5695_v36 = vunpack.i.l.bf16 %v5694_v34  ;;  %5406 = vmatprep.subr.bf16.mxu1 %v5405_v32  ;;  %v2522_v57 = vmul.f32 %v5810_v19, %v2520_v39  ;;  %v5701_v18 = vunpack.i.h.bf16 %v5699_v12 }
0x119d   :  { %v2916_v37 = vmul.f32 %v6481_v8, %v2914_v9  ;;  %5408 = vmatpush3.bf16.msra.mxu1 %v5405_v32  ;;  %v5685_v8 = vunpack.i.l.bf16 %v5684_v10  ;;  %v5700_v0 = vunpack.i.l.bf16 %v5699_v12 }
0x119e   :  { %v5409_v41 = vpack.c.bf16 %v5696_v35, %v5695_v36  ;;  %v2524_v44 = vmul.f32 %v6483_v49, %v2522_v57 }
0x119f   :  { %5075 = vmatprep.mubr.msk.f32.mxu0 %vm458_vm7, %v2916_v37  ;;  %v5417_v7 = vpack.c.bf16 %v5686_v48, %v5685_v8  ;;  %v5427_v19 = vpack.c.bf16 %v5701_v18, %v5700_v0  ;;  %v5709_v23 = vpop.permute.xlu0 %5708 }
0x11a0   :  { %5076 = vmatmul.mubr.msk.f32.vlgmr.msra.gmra.mrb[24].mxu0 %vm458_vm7, %v2917_v38  ;;  %5410 = vmatprep.subr.bf16.mxu1 %v5409_v41  ;;  %v5711_v25 = vunpack.i.h.bf16 %v5709_v23  ;;  %v5710_v26 = vunpack.i.l.bf16 %v5709_v23 }
0x11a1   :  { %5404 = vmatpush3.bf16.msra.mxu0 %v6447_v46  ;;  %5082 = vmatprep.mubr.msk.f32.mxu0 %vm458_vm7, %v2523_v42  ;;  %v3211_v46 = vpop.permute.xlu1 %3210 }
0x11a2   :  { %5412 = vmatpush3.bf16.msra.mxu1 %v5409_v41  ;;  %5414 = vmatprep.subr.bf16.mxu0 %v5413_v43  ;;  %v5431_v27 = vpack.c.bf16 %v5711_v25, %v5710_v26 }
0x11a3   :  { %v5719_v30 = vpop.permute.xlu0 %5718 }
0x11a4   :  { %v5721_v31 = vunpack.i.h.bf16 %v5719_v30  ;;  %v5720_v13 = vunpack.i.l.bf16 %v5719_v30 }
0x11a5   :  { %5094 = vmatmul.mubr.msk.f32.vlgmr.msra.gmra.mrb[26].mxu1 %vm104_vm0, %v6427_v1  ;;  %v5704_v49 = vpop.permute.xlu1 %5703 }
0x11a6   :  { %v5706_v17 = vunpack.i.h.bf16 %v5704_v49  ;;  %v5705_v60 = vunpack.i.l.bf16 %v5704_v49 }
0x11a8   :  { %5083 = vmatmul.mubr.msk.f32.vlgmr.msra.gmra.mrb[24].mxu0 %vm458_vm7, %v2524_v44  ;;  %v5439_v20 = vpack.c.bf16 %v5706_v17, %v5705_v60 }
0x11a9   :  { %5416 = vmatpush3.bf16.msra.mxu0 %v5413_v43  ;;  %5104 = vmatprep.mubr.msk.f32.mxu0 %vm104_vm0, %v6378_v3  ;;  %v5714_v2 = vpop.permute.xlu1 %5713 }
0x11aa   :  { %5418 = vmatprep.subr.bf16.mxu0 %v5417_v7  ;;  %v5716_v6 = vunpack.i.h.bf16 %v5714_v2  ;;  %v5715_v4 = vunpack.i.l.bf16 %v5714_v2 }
0x11ac   :  { %v5443_v10 = vpack.c.bf16 %v5716_v6, %v5715_v4 }
0x11ad   :  { %5420 = vmatpush3.bf16.msra.mxu0 %v5417_v7  ;;  %v5724_v24 = vpop.permute.xlu1 %5723 }
0x11ae   :  { %5428 = vmatprep.subr.bf16.mxu0 %v5427_v19  ;;  %v5725_v29 = vunpack.i.l.bf16 %v5724_v24 }
0x11b0   :  { %5105 = vmatmul.mubr.msk.f32.vlgmr.msra.gmra.mrb[26].mxu0 %vm104_vm0, %v6384_v40 }
0x11b1   :  { %5122 = vmatprep.mubr.msk.f32.mxu0 %vm104_vm0, %v6378_v3  ;;  %5430 = vmatpush3.bf16.msra.mxu0 %v5427_v19 }
0x11b2   :  { %5432 = vmatprep.subr.bf16.mxu0 %v5431_v27 }
0x11b5   :  { %5434 = vmatpush3.bf16.msra.mxu0 %v5431_v27 }
0x11b8   :  { %5123 = vmatmul.mubr.msk.f32.vlgmr.msra.gmra.mrb[28].mxu0 %vm104_vm0, %v6384_v40 }
0x1278   :  { %v5095_v50 = vpop.f32.mrb[26].mxu1 }
0x1279   :  { %v3279_v51 = vpop.f32.mrb[27].mxu1  ;;  %v3285_v5 = vadd.f32 %v5095_v50, %v3211_v46 }
0x127a   :  { %v3280_v54 = vadd.f32 %v3279_v51, %v3211_v46 }
0x127c   :  { %5111 = vmatprep.mubr.msk.f32.mxu1 %vm370_vm5, %v3280_v54 }
0x1283   :  { %v5106_v59 = vpop.f32.mrb[26].mxu0 }
0x1284   :  { %v3375_v61 = vadd.f32 %v5106_v59, %v3301_v56  ;;  %v3369_v62 = vpop.f32.mrb[27].mxu0 }
0x1285   :  { %v3370_v63 = vadd.f32 %v3369_v62, %v3301_v56 }
0x1287   :  { %v5421_v55 = vpack.c.bf16 %v3375_v61, %v3370_v63 }
0x1289   :  { %5423 = vmatprep.subr.msk.bf16.mxu1 %vm6195_vm6, %v5421_v55 }
0x128a   :  { %5426 = vmatpush3.bf16.xpose.msk.msra.mxu1 %vm6195_vm6, %v5421_v55 }
0x128b   :  { %5440 = vmatprep.subr.bf16.mxu1 %v5439_v20 }
0x1291   :  { %5112 = vmatmul.mubr.msk.f32.vlgmr.msra.gmra.mrb[28].mxu1 %vm370_vm5, %v3285_v5 }
0x1292   :  { %5442 = vmatpush3.bf16.msra.mxu1 %v5439_v20  ;;  %5140 = vmatprep.mubr.msk.f32.mxu1 %vm104_vm0, %v6423_v16  ;;  %v5726_v16 = vunpack.i.h.bf16 %v5724_v24 }
0x1293   :  { %5444 = vmatprep.subr.bf16.mxu1 %v5443_v10 }
0x1294   :  { %v5451_v32 = vpack.c.bf16 %v5726_v16, %v5725_v29 }
0x1296   :  { %5446 = vmatpush3.bf16.msra.mxu1 %v5443_v10 }
0x1299   :  { %5141 = vmatmul.mubr.msk.f32.vlgmr.msra.gmra.mrb[30].mxu1 %vm104_vm0, %v6427_v1  ;;  %v5447_v1 = vpack.c.bf16 %v5721_v31, %v5720_v13 }
0x129a   :  { %5151 = vmatprep.mubr.msk.f32.mxu1 %vm104_vm0, %v6378_v3 }
0x129b   :  { %5448 = vmatprep.subr.bf16.mxu1 %v5447_v1 }
0x129c   :  { %5450 = vmatpush3.bf16.msra.mxu1 %v5447_v1 }
0x129d   :  { %5452 = vmatprep.subr.bf16.mxu1 %v5451_v32 }
0x12a0   :  { %5454 = vmatpush3.bf16.msra.mxu1 %v5451_v32 }
0x12a3   :  { %5152 = vmatmul.mubr.msk.f32.vlgmr.msra.gmra.mrb[32].mxu1 %vm104_vm0, %v6384_v40 }
0x12a4   :  { %5169 = vmatprep.mubr.msk.f32.mxu1 %vm104_vm0, %v6378_v3 }
0x1364   :  { %v5113_v15 = vpop.f32.mrb[28].mxu1 }
0x1365   :  { %v3462_v33 = vadd.f32 %v5113_v15, %v6461_v21  ;;  %v3456_v9 = vpop.f32.mrb[29].mxu1 }
0x1366   :  { %v3457_v34 = vadd.f32 %v3456_v9, %v6463_v22 }
0x1367   :  { %v3468_v35 = vsel %vm458_vm7, %v3462_v33, -inf }
0x1368   :  { %3469 = vmax.xlane.f32.xlu1 %v3468_v35  ;;  %v3465_v36 = vsel %vm458_vm7, %v3457_v34, -inf }
0x1369   :  { %3466 = vmax.xlane.f32.xlu0 %v3465_v36 }
0x136c   :  { %v5142_v37 = vpop.f32.mrb[30].mxu1 }
0x136d   :  { %v3775_v38 = vpop.f32.mrb[31].mxu1 }
0x1379   :  { %3796 = vrot.lane.b32.xlu1 %v6397_v11, %s5983_s6 }
0x137d   :  { %3706 = vrot.lane.b32.xlu1 %v6397_v11, %s6000_s15  ;;  %v5124_v11 = vpop.f32.mrb[28].mxu0 }
0x137e   :  { %v3583_v46 = vpop.f32.mrb[29].mxu0 }
0x1381   :  { %5728 = vrot.lane.b32.xlu1 %v6414_v28, %s5988_s28  ;;  %v5153_v28 = vpop.f32.mrb[32].mxu1 }
0x1382   :  { %v3865_v51 = vpop.f32.mrb[33].mxu1 }
0x13f5   :  { %v3470_v3 = vpop.xlane.xlu1 %3469 }
0x13f6   :  { %v3472_v39 = vsub.f32 %v3462_v33, %v3470_v3  ;;  %v3467_v41 = vpop.xlane.xlu0 %3466 }
0x13f7   :  { %v3471_v43 = vsub.f32 %v3457_v34, %v3467_v41 }
0x13f8   :  { %v3475_v42 = vmul.f32 1.442695, %v3472_v39 }
0x13f9   :  { %v3473_v57 = vmul.f32 1.442695, %v3471_v43  ;;  %v3797_v50 = vpop.permute.xlu1 %3796 }
0x13fa   :  { %5811 = vpow2.f32 %v3475_v42  ;;  %v3871_v54 = vadd.f32 %v5153_v28, %v3797_v50  ;;  %v3866_v49 = vadd.f32 %v3865_v51, %v3797_v50 }
0x13fb   :  { %5813 = vpow2.f32 %v3473_v57 }
0x13fc   :  { %v5455_v56 = vpack.c.bf16 %v3871_v54, %v3866_v49 }
0x13fd   :  { %v3707_v12 = vpop.permute.xlu1 %3706 }
0x13fe   :  { %v3776_v19 = vadd.f32 %v3775_v38, %v3707_v12  ;;  %v3781_v23 = vadd.f32 %v5142_v37, %v3707_v12 }
0x1401   :  { %v5729_v24 = vpop.permute.xlu1 %5728 }
0x1402   :  { %v5731_v26 = vunpack.i.h.bf16 %v5729_v24  ;;  %v5730_v27 = vunpack.i.l.bf16 %v5729_v24  ;;  %v100_v24 = vld [vmem:[#allocation10 + $0x60] sm:$0xff] }
0x1404   :  { %v5812_v48 = vpop.eup %5811  ;;  %v5461_v30 = vpack.c.bf16 %v5731_v26, %v5730_v27 }
0x1405   :  { %v3480_v8 = vsel %vm458_vm7, %v5812_v48, 0.0  ;;  %v5814_v44 = vpop.eup %5813 }
0x1406   :  { %3481 = vadd.xlane.f32.xlu0 %v3480_v8  ;;  %v3477_v7 = vsel %vm458_vm7, %v5814_v44, 0.0  ;;  %5462 = vmatprep.subr.bf16.mxu1 %v5461_v30 }
0x1407   :  { %5464 = vmatpush3.bf16.msra.mxu1 %v5461_v30 }
0x140a   :  { %3478 = vadd.xlane.f32.xlu0 %v3477_v7 }
0x1420   :  { %3514 = vrot.lane.b32.xlu0 %v6443_v47, %s5993_s8 }
0x1424   :  { %5733 = vrot.lane.b32.xlu0 %v6419_v14, %s5988_s28 }
0x1493   :  { %v3482_v59 = vpop.xlane.xlu0 %3481 }
0x1494   :  { %5815 = vrcp.f32 %v3482_v59 }
0x1497   :  { %v3479_v17 = vpop.xlane.xlu0 %3478 }
0x1498   :  { %5817 = vrcp.f32 %v3479_v17 }
0x149b   :  { %v3515_v60 = vpop.permute.xlu0 %3514 }
0x149c   :  { %v3584_v61 = vadd.f32 %v3583_v46, %v3515_v60  ;;  %v3589_v62 = vadd.f32 %v5124_v11, %v3515_v60 }
0x149e   :  { %v5816_v63 = vpop.eup %5815  ;;  %v5435_v55 = vpack.c.bf16 %v3589_v62, %v3584_v61 }
0x149f   :  { %v3486_v20 = vmul.f32 %v5816_v63, %v3482_v59  ;;  %v5734_v25 = vpop.permute.xlu0 %5733 }
0x14a0   :  { %5436 = vmatprep.subr.bf16.mxu0 %v5435_v55  ;;  %v5736_v16 = vunpack.i.h.bf16 %v5734_v25  ;;  %v5735_v29 = vunpack.i.l.bf16 %v5734_v25  ;;  %v101_v25 = vld [vmem:[#allocation10 + $0x68] sm:$0xff] }
0x14a1   :  { %5438 = vmatpush3.bf16.msra.mxu0 %v5435_v55  ;;  %v3488_v6 = vsub.f32 2.0, %v3486_v20  ;;  %v5737_v26 = vpack.i.bf16 %v101_v25, %v100_v24  ;;  %v5473_v27 = vpack.c.bf16 %v101_v25, %v100_v24 }
0x14a2   :  { %v5818_v2 = vpop.eup %5817  ;;  %5457 = vmatprep.subr.msk.bf16.mxu0 %vm6195_vm6, %v5455_v56  ;;  %v5465_v31 = vpack.c.bf16 %v5736_v16, %v5735_v29 }
0x14a3   :  { %v3485_v14 = vmul.f32 %v5818_v2, %v3479_v17  ;;  %v3490_v5 = vmul.f32 %v5816_v63, %v3488_v6 }
0x14a4   :  { %5466 = vmatprep.subr.bf16.mxu1 %v5465_v31 }
0x14a5   :  { %v3487_v4 = vsub.f32 2.0, %v3485_v14  ;;  %v3492_v0 = vmul.f32 %v5812_v48, %v3490_v5  ;;  %5468 = vmatpush3.bf16.msra.mxu1 %v5465_v31 }
0x14a7   :  { %v3489_v10 = vmul.f32 %v5818_v2, %v3487_v4 }
0x14a8   :  { %5170 = vmatmul.mubr.msk.f32.vlgmr.msra.gmra.mrb[34].mxu1 %vm104_vm0, %v6384_v40 }
0x14a9   :  { %v3491_v18 = vmul.f32 %v5814_v44, %v3489_v10 }
0x14ab   :  { %5129 = vmatprep.mubr.msk.f32.mxu0 %vm458_vm7, %v3491_v18 }
0x14ac   :  { %5130 = vmatmul.mubr.msk.f32.vlgmr.msra.gmra.mrb[24].mxu0 %vm458_vm7, %v3492_v0 }
0x14ad   :  { %5460 = vmatpush3.bf16.xpose.msk.msra.mxu0 %vm6195_vm6, %v5455_v56  ;;  %5158 = vmatprep.mubr.msk.f32.mxu0 %vm370_vm5, %v3776_v19 }
0x14b4   :  { %5159 = vmatmul.mubr.msk.f32.vlgmr.msra.gmra.mrb[30].mxu0 %vm370_vm5, %v3781_v23  ;;  %v4574_v23 = vld [vmem:[#allocation10 + $0x85] ss:$0 sm:$0xff] }
0x157b   :  { %v5171_v39 = vpop.f32.mrb[34].mxu1 }
0x157c   :  { %v4079_v43 = vpop.f32.mrb[35].mxu1 }
0x1587   :  { %v5160_v45 = vpop.f32.mrb[30].mxu0 }
0x1588   :  { %v3958_v13 = vadd.f32 %v5160_v45, %v6461_v21  ;;  %v3952_v1 = vpop.f32.mrb[31].mxu0 }
0x1589   :  { %v3953_v32 = vadd.f32 %v3952_v1, %v6463_v22 }
0x158a   :  { %v3964_v15 = vsel %vm458_vm7, %v3958_v13, -inf }
0x158b   :  { %3965 = vmax.xlane.f32.xlu0 %v3964_v15  ;;  %v3961_v33 = vsel %vm458_vm7, %v3953_v32, -inf }
0x158c   :  { %3962 = vmax.xlane.f32.xlu1 %v3961_v33 }
0x159d   :  { %4010 = vrot.lane.b32.xlu1 %v6443_v47, %s5988_s28  ;;  %v5838_v47 = vld [vmem:[#allocation10 + $0x83] ss:$0 sm:$0xff] }
0x1618   :  { %v3966_v9 = vpop.xlane.xlu0 %3965 }
0x1619   :  { %v3968_v34 = vsub.f32 %v3958_v13, %v3966_v9  ;;  %v3963_v35 = vpop.xlane.xlu1 %3962 }
0x161a   :  { %v3967_v36 = vsub.f32 %v3953_v32, %v3963_v35 }
0x161b   :  { %v3971_v40 = vmul.f32 1.442695, %v3968_v34 }
0x161c   :  { %v3969_v37 = vmul.f32 1.442695, %v3967_v36 }
0x161d   :  { %v4011_v41 = vpop.permute.xlu1 %4010 }
0x161e   :  { %5819 = vpow2.f32 %v3969_v37  ;;  %v4085_v42 = vadd.f32 %v5171_v39, %v4011_v41  ;;  %v4080_v57 = vadd.f32 %v4079_v43, %v4011_v41 }
0x161f   :  { %5821 = vpow2.f32 %v3971_v40 }
0x1620   :  { %v5469_v48 = vpack.c.bf16 %v4085_v42, %v4080_v57 }
0x1622   :  { %5470 = vmatprep.subr.bf16.mxu0 %v5469_v48 }
0x1623   :  { %5472 = vmatpush3.bf16.msra.mxu0 %v5469_v48 }
0x1624   :  { %5474 = vmatprep.subr.bf16.mxu0 %v5473_v27 }
0x1628   :  { %v5820_v21 = vpop.eup %5819 }
0x1629   :  { %v3973_v22 = vsel %vm458_vm7, %v5820_v21, 0.0  ;;  %v5822_v38 = vpop.eup %5821 }
0x162a   :  { %3974 = vadd.xlane.f32.xlu0 %v3973_v22  ;;  %v3976_v3 = vsel %vm458_vm7, %v5822_v38, 0.0  ;;  %v103_v22 = vld [vmem:[#allocation10 + $0x78] sm:$0xff] }
0x162e   :  { %3977 = vadd.xlane.f32.xlu0 %v3976_v3 }
0x1644   :  { %4174 = vrot.lane.b32.xlu0 %v5838_v47, %s5987_s4 }
0x16b7   :  { %v3975_v8 = vpop.xlane.xlu0 %3974 }
0x16b8   :  { %5823 = vrcp.f32 %v3975_v8 }
0x16bb   :  { %v3978_v44 = vpop.xlane.xlu0 %3977 }
0x16bc   :  { %5825 = vrcp.f32 %v3978_v44 }
0x16bf   :  { %v4175_v60 = vpop.permute.xlu0 %4174 }
0x16c2   :  { %v5824_v7 = vpop.eup %5823 }
0x16c3   :  { %v3981_v11 = vmul.f32 %v5824_v7, %v3975_v8 }
0x16c5   :  { %v3983_v46 = vsub.f32 2.0, %v3981_v11 }
0x16c6   :  { %v5826_v28 = vpop.eup %5825 }
0x16c7   :  { %v3985_v50 = vmul.f32 %v5824_v7, %v3983_v46  ;;  %v3982_v51 = vmul.f32 %v5826_v28, %v3978_v44 }
0x16c9   :  { %v3987_v54 = vmul.f32 %v5820_v21, %v3985_v50  ;;  %v3984_v49 = vsub.f32 2.0, %v3982_v51  ;;  %v102_v21 = vld [vmem:[#allocation10 + $0x70] sm:$0xff] }
0x16cb   :  { %v3986_v56 = vmul.f32 %v5826_v28, %v3984_v49  ;;  %5176 = vmatprep.mubr.msk.f32.mxu0 %vm458_vm7, %v3987_v54  ;;  %v5839_v54 = vld [vmem:[#allocation10 + $0x84] ss:$0 sm:$0xff] }
0x16cd   :  { %v3988_v59 = vmul.f32 %v5822_v38, %v3986_v56  ;;  %v5477_v38 = vpack.c.bf16 %v103_v22, %v102_v21 }
0x16cf   :  { %5177 = vmatmul.mubr.msk.f32.vlgmr.msra.gmra.mrb[24].mxu0 %vm458_vm7, %v3988_v59 }
0x16d0   :  { %5476 = vmatpush3.bf16.msra.mxu0 %v5473_v27 }
0x16d1   :  { %5478 = vmatprep.subr.bf16.mxu0 %v5477_v38 }
0x16d4   :  { %5480 = vmatpush3.bf16.msra.mxu0 %v5477_v38 }
0x17a2   :  { %v5178_v17 = vpop.f32.mrb[24].mxu0 }
0x17a3   :  { %v4172_v61 = vadd.f32 %v5178_v17, %v6354_v53  ;;  %v4160_v62 = vpop.f32.mrb[25].mxu0 }
0x17a4   :  { %v4171_v63 = vadd.f32 %v4160_v62, %v6351_v52 }
0x17a5   :  { %v6584_v55 = vadd.f32 %v4175_v60, %v4172_v61  ;;  %v5742_v61 = vpack.i.bf16 %v103_v22, %v102_v21 }
0x17a6   :  { %v6586_v20 = vadd.f32 %v4175_v60, %v4171_v63 }
0x17a7   :  { %v4182_v2 = vsel %vm104_vm0, %v6584_v55, 0.0 }
0x17a8   :  { %4183 = vadd.xlane.f32.xlu0 %v4182_v2  ;;  %v4179_v6 = vsel %vm104_vm0, %v6586_v20, 0.0 }
0x17a9   :  { %4180 = vadd.xlane.f32.xlu1 %v4179_v6 }
0x1835   :  { %v4184_v14 = vpop.xlane.xlu0 %4183 }
0x1836   :  { %v4186_v4 = vmul.f32 0.03125, %v4184_v14  ;;  %v4181_v5 = vpop.xlane.xlu1 %4180 }
0x1837   :  { %v4185_v10 = vmul.f32 0.03125, %v4181_v5 }
0x1838   :  { %v4188_v53 = vsub.f32 %v6584_v55, %v4186_v4 }
0x1839   :  { %v4187_v52 = vsub.f32 %v6586_v20, %v4185_v10 }
0x183a   :  { %v4190_v12 = vmul.f32 %v4188_v53, %v4188_v53 }
0x183b   :  { %v4189_v18 = vmul.f32 %v4187_v52, %v4187_v52 }
0x183c   :  { %v4194_v0 = vsel %vm104_vm0, %v4190_v12, 0.0 }
0x183d   :  { %4195 = vadd.xlane.f32.xlu0 %v4194_v0  ;;  %v4191_v19 = vsel %vm104_vm0, %v4189_v18, 0.0 }
0x183e   :  { %4192 = vadd.xlane.f32.xlu1 %v4191_v19 }
0x184f   :  { %4215 = vrot.lane.b32.xlu1 %v4187_v52, %s5987_s4 }
0x1853   :  { %4217 = vrot.lane.b32.xlu0 %v4188_v53, %s5987_s4  ;;  %4240 = vrot.lane.b32.xlu1 %v4574_v23, %s5987_s4 }
0x1857   :  { %5738 = vrot.lane.b32.xlu0 %v5737_v26, %s5993_s8 }
0x185b   :  { %4344 = vrot.lane.b32.xlu0 %v5838_v47, %s5993_s8 }
0x18ca   :  { %v4196_v16 = vpop.xlane.xlu0 %4195 }
0x18cb   :  { %v4198_v29 = vmul.f32 0.032258064, %v4196_v16  ;;  %v4193_v30 = vpop.xlane.xlu1 %4192 }
0x18cc   :  { %v4197_v31 = vmul.f32 0.032258064, %v4193_v30 }
0x18cd   :  { %5827 = vrsqrt.f32 %v4198_v29  ;;  %vm4208_vm12 = vcmp.eq.f32.partialorder %v4198_v29, inf  ;;  %v4211_v32 = vand.u32 2147483648, %v4198_v29  ;;  %vm4210_vm13 = vcmp.eq.f32.partialorder %v4198_v29, 0.0 }
0x18ce   :  { %5829 = vrsqrt.f32 %v4197_v31  ;;  %vm4201_vm14 = vcmp.eq.f32.partialorder %v4197_v31, inf  ;;  %v4204_v9 = vand.u32 2147483648, %v4197_v31  ;;  %vm4203_vm15 = vcmp.eq.f32.partialorder %v4197_v31, 0.0  ;;  %v4218_v43 = vpop.permute.xlu0 %4217 }
0x18cf   :  { %v4216_v42 = vpop.permute.xlu1 %4215  ;;  %v4222_v49 = vmul.f32 %v5839_v54, %v4218_v43 }
0x18d0   :  { %v4221_v8 = vmul.f32 %v6390_v58, %v4216_v42 }
0x18d2   :  { %v5739_v44 = vpop.permute.xlu0 %5738 }
0x18d3   :  { %v5741_v46 = vunpack.i.h.bf16 %v5739_v44  ;;  %v5740_v28 = vunpack.i.l.bf16 %v5739_v44  ;;  %v4241_v50 = vpop.permute.xlu1 %4240 }
0x18d5   :  { %v5481_v59 = vpack.c.bf16 %v5741_v46, %v5740_v28 }
0x18d6   :  { %v4345_v0 = vpop.permute.xlu0 %4344 }
0x18d7   :  { %v5828_v45 = vpop.eup %5827  ;;  %5483 = vmatprep.subr.msk.bf16.mxu1 %vm6604_vm2, %v5481_v59 }
0x18d8   :  { %v5830_v13 = vpop.eup %5829  ;;  %v4207_v1 = vmul.f32 %v5828_v45, %v4198_v29  ;;  %5486 = vmatpush3.bf16.xpose.msk.msra.mxu1 %vm6604_vm2, %v5481_v59 }
0x18d9   :  { %v4200_v15 = vmul.f32 %v5830_v13, %v4197_v31 }
0x18da   :  { %v4209_v33 = vsel %vm4208_vm12, %v4198_v29, %v4207_v1 }
0x18db   :  { %v4212_v34 = vsel %vm4210_vm13, %v4211_v32, %v4209_v33  ;;  %v4202_v35 = vsel %vm4201_vm14, %v4197_v31, %v4200_v15 }
0x18dc   :  { %v4224_v36 = vadd.f32 1e-06, %v4212_v34  ;;  %v4205_v40 = vsel %vm4203_vm15, %v4204_v9, %v4202_v35 }
0x18dd   :  { %v4223_v37 = vadd.f32 1e-06, %v4205_v40 }
0x18de   :  { %5831 = vrcp.f32 %v4224_v36 }
0x18df   :  { %5833 = vrcp.f32 %v4223_v37 }
0x18e8   :  { %v5832_v3 = vpop.eup %5831 }
0x18e9   :  { %v5834_v39 = vpop.eup %5833  ;;  %v4228_v41 = vmul.f32 %v5832_v3, %v4224_v36 }
0x18ea   :  { %v4227_v47 = vmul.f32 %v5834_v39, %v4223_v37 }
0x18eb   :  { %v4230_v57 = vsub.f32 2.0, %v4228_v41 }
0x18ec   :  { %v4229_v48 = vsub.f32 2.0, %v4227_v47 }
0x18ed   :  { %v4232_v7 = vmul.f32 %v5832_v3, %v4230_v57 }
0x18ee   :  { %v4231_v11 = vmul.f32 %v5834_v39, %v4229_v48 }
0x18ef   :  { %v4234_v17 = vmul.f32 %v4232_v7, %v4222_v49 }
0x18f0   :  { %v4233_v56 = vmul.f32 %v4231_v11, %v4221_v8 }
0x18f1   :  { %v4244_v58 = vadd.f32 %v4241_v50, %v4234_v17 }
0x18f2   :  { %v4243_v60 = vadd.f32 %v4241_v50, %v4233_v56 }
0x18f4   :  { %4247 = vrot.lane.b32.xlu1 %v4243_v60, %s5988_s28 }
0x18f8   :  { %4249 = vrot.lane.b32.xlu1 %v4244_v58, %s5988_s28 }
0x18fc   :  { %5743 = vrot.lane.b32.xlu1 %v5742_v61, %s5993_s8 }
0x1966   :  { %v4248_v62 = vpop.permute.xlu1 %4247 }
0x1967   :  { %5187 = vmatprep.mubr.msk.f32.mxu0 %vm104_vm0, %v4248_v62 }
0x196a   :  { %v4250_v63 = vpop.permute.xlu1 %4249 }
0x196b   :  { %5188 = vmatmul.mubr.msk.f32.vlgmr.msra.gmra.mrb[32].mxu0 %vm104_vm0, %v4250_v63 }
0x196e   :  { %v5744_v2 = vpop.permute.xlu1 %5743 }
0x196f   :  { %v5746_v6 = vunpack.i.h.bf16 %v5744_v2  ;;  %v5745_v14 = vunpack.i.l.bf16 %v5744_v2 }
0x1971   :  { %v5487_v4 = vpack.c.bf16 %v5746_v6, %v5745_v14 }
0x1973   :  { %5489 = vmatprep.subr.msk.bf16.mxu1 %vm6604_vm2, %v5487_v4 }
0x1974   :  { %5492 = vmatpush3.bf16.xpose.msk.msra.mxu1 %vm6604_vm2, %v5487_v4 }
0x1a3e   :  { %v5189_v5 = vpop.f32.mrb[32].mxu0 }
0x1a3f   :  { %v4327_v10 = vadd.f32 %v5189_v5, %v4241_v50  ;;  %v4321_v53 = vpop.f32.mrb[33].mxu0 }
0x1a40   :  { %v4322_v52 = vadd.f32 %v4321_v53, %v4241_v50 }
0x1a41   :  { %v4331_v18 = vmax.f32 %v4327_v10, 0.0 }
0x1a42   :  { %v4330_v12 = vmax.f32 %v4322_v52, 0.0 }
0x1a44   :  { %5198 = vmatprep.mubr.msk.f32.mxu1 %vm4347_vm1, %v4330_v12 }
0x1a45   :  { %5199 = vmatmul.mubr.msk.f32.vlgmr.msra.gmra.mrb[36].mxu1 %vm4347_vm1, %v4331_v18 }
0x1b18   :  { %v5200_v19 = vpop.f32.mrb[36].mxu1 }
0x1b19   :  { %v4434_v23 = vadd.f32 %v5200_v19, %v4345_v0  ;;  %v4428_v24 = vpop.f32.mrb[37].mxu1 }
0x1b1a   :  { %v4429_v25 = vadd.f32 %v4428_v24, %v4345_v0 }
0x1b1b   :  { %v4438_v26 = vadd.f32 %v4434_v23, %v6584_v55 }
0x1b1c   :  { %v4437_v27 = vadd.f32 %v4429_v25, %v6586_v20 }
0x1b1d   :  { %4440 = vst.msk [vmem:[#allocation11 + $0x8] sm:$0xff] %vm104_vm0, %v4438_v26 }
0x1b1e   :  { %4439 = vst.msk [vmem:[#allocation11] sm:$0xff] %vm104_vm0, %v4437_v27 }
0x1b1f   :  { %5961 = shalt.err (!%p5958_p2)
}
0x1b20   :  { %s5962_s19 = scalar_lea.hbm %s6647_s5, 256 }
0x1b21   :  { %p5963_p3 = scmp.ne.s32.totalorder %s6647_s5, %s5962_s19  ;;  %p5966_p4 = scmp.lt.u32.totalorder %s5962_s19, %s6647_s5 }
0x1b23   :  { %p5968_p5 = pnand %p5966_p4, %p5963_p3 }
0x1b25   :  { %5971 = shalt.err (!%p5968_p5)
}
0x1b26   :  { %4452 = dma.vmem_to_hbm [thread:$0]  %s4447_s16, 256, %s6647_s5, [#allocation4], %s5982_s30, %s5982_s30, %s5983_s6  }
0x1b27   :  { %5978 = dma.done.wait [#allocation4], 256  }
0x1b28   :  { %5979 = vsyncadd [#allocation4], 4294967040 }
0x1b29   :  { %4456 = vsyncpa [#allocation3], 1 }
0x1b2a   :  { %4457 = vsyncpa [#allocation6], 1 }
0x1b2b   :  { %4458 = vsyncpa [#allocation9], 1 }
0x1b2c   :  { %4459 = vsyncpa [#allocation4], 1 }

</bundles_post_ra>
